<compile_context>
chip_gen: v7x
topology: tpu7x:2x2x1
jax: 0.10.0
libtpu: 0.0.40
codegen_flags: <defaults>
</compile_context>

<pallas_src>
import jax
import jax.numpy as jnp
from jax import lax
from jax.experimental import pallas as pl
from jax.experimental.pallas import tpu as pltpu

KS = 7            # conv kernel size (fixed by the module)
PAD = KS // 2     # 3
HALO = 8          # rows fetched per halo block (sublane aligned, >= PAD)


def _sarm_kernel(x_ref, xt_ref, xb_ref, imu_ref, imut_ref, imub_ref,
                 w_ref, b_ref, o_ref, pad_ref):
    # x_ref    (1, C, TH, W)   current x tile
    # xt_ref   (1, C, 8, W)    8 rows ending just above the tile (clamped at h==0)
    # xb_ref   (1, C, 8, W)    8 rows starting just below the tile (clamped at last h)
    # imu_ref  (1, 1, TH, W)   imu mask tile
    # imut_ref (1, 1, 8, W)    imu rows above
    # imub_ref (1, 1, 8, W)    imu rows below
    # w_ref    (3*KS*KS,) SMEM conv weight, flattened [c, ky, kx]
    # b_ref    (1,)       SMEM conv bias
    # o_ref    (1, C, TH, W)   gated output tile
    # pad_ref  (3, TH+6, W+6)  VMEM scratch: zero-padded (mean, max, imu) planes
    _, C, TH, W = x_ref.shape
    h = pl.program_id(1)
    n_h = pl.num_programs(1)
    # Out-of-image halo rows must be zero: mean/max over channels of the
    # zero-padded x is zero and imu is zero-padded, so zero matches the
    # reference conv's "same" padding exactly.
    flag_top = jnp.where(h > 0, 1.0, 0.0)
    flag_bot = jnp.where(h < n_h - 1, 1.0, 0.0)

    # ---- channel mean / max (VPU reductions over the leading, untiled axis) ----
    x = x_ref[0].astype(jnp.float32)                         # (C, TH, W)
    mean_mid = jnp.mean(x, axis=0)                           # (TH, W)
    max_mid = jnp.max(x, axis=0)

    xt = xt_ref[0].astype(jnp.float32)                       # (C, 8, W)
    xb = xb_ref[0].astype(jnp.float32)
    mean_top = jnp.mean(xt, axis=0)[HALO - PAD:, :] * flag_top   # (3, W)
    max_top = jnp.max(xt, axis=0)[HALO - PAD:, :] * flag_top
    mean_bot = jnp.mean(xb, axis=0)[:PAD, :] * flag_bot
    max_bot = jnp.max(xb, axis=0)[:PAD, :] * flag_bot

    imu_mid = imu_ref[0, 0].astype(jnp.float32)              # (TH, W)
    imu_top = imut_ref[0, 0].astype(jnp.float32)[HALO - PAD:, :] * flag_top
    imu_bot = imub_ref[0, 0].astype(jnp.float32)[:PAD, :] * flag_bot

    # ---- build the zero-padded 3-channel map for the "same" 7x7 conv ----
    # Only the left/right PAD columns are never rewritten -> zero just them,
    # every step (scratch is per-core under "parallel" semantics, so a
    # program_id==0 one-shot init would be unsafe).
    zcol = jnp.zeros((TH + 2 * PAD, PAD), jnp.float32)
    for c in range(3):
        pad_ref[c, :, :PAD] = zcol
        pad_ref[c, :, PAD + W:] = zcol

    for c, (top, mid, bot) in enumerate((
            (mean_top, mean_mid, mean_bot),
            (max_top, max_mid, max_bot),
            (imu_top, imu_mid, imu_bot))):
        pad_ref[c, :PAD, PAD:PAD + W] = top
        pad_ref[c, PAD:PAD + TH, PAD:PAD + W] = mid
        pad_ref[c, PAD + TH:, PAD:PAD + W] = bot

    # ---- 7x7 conv, 3 -> 1 channels, unrolled on the VPU ----
    # kx (lane) shift hoisted out of the ky loop: 21 lane relayouts instead of
    # 147; the inner loop only takes sublane-offset slices.  One partial
    # accumulator per input channel breaks the serial add chain.
    accs = [jnp.zeros((TH, W), jnp.float32) for _ in range(3)]
    for c in range(3):
        plane = pad_ref[c]                                   # (TH+6, W+6)
        for kx in range(KS):
            shifted = plane[:, kx:kx + W]                    # (TH+6, W), hoisted
            base = c * KS * KS + kx
            for ky in range(KS):
                accs[c] = accs[c] + shifted[ky:ky + TH, :] * w_ref[base + ky * KS]
    conv = (accs[0] + accs[1]) + (accs[2] + b_ref[0])

    # exp -> EUP; exact reciprocal keeps us inside the 1e-4 test tolerance
    # (pl.reciprocal(..., approx=True) is the cheaper production variant).
    gate = 1.0 / (1.0 + jnp.exp(-conv))                      # (TH, W)

    o_ref[0] = (x * gate[None, :, :]).astype(o_ref.dtype)


def _choose_tile_h(C, H, W, itemsize, budget_bytes=20 << 20):
    """Largest multiple-of-8 divisor of H whose double-buffered in+out x blocks
    (the dominant VMEM consumers: 2 bufs x (in + out) x C*tile_h*W*itemsize)
    fit the budget — keeps the kernel resident even in v7x's 64 MiB VMEM."""
    best = 8
    for t in range(8, H + 1, 8):
        if H % t == 0 and 4 * C * t * W * itemsize <= budget_bytes:
            best = t
    return best


def spatial_attention_refinement(x, imu_mask, conv_w, conv_b, *, tile_h=None):
    """x: (N,C,H,W), imu_mask: (N,1,H,W), conv_w: (1,3,7,7), conv_b: (1,)."""
    N, C, H, W = x.shape
    assert imu_mask.shape == (N, 1, H, W)
    assert conv_w.shape == (1, 3, KS, KS)
    assert H % 8 == 0, "H must be a multiple of 8 (TPU sublane tiling)"
    # TODO(synk): for early WASR stages with W not a multiple of 128, pad W to a
    # lane multiple in the producer (fused) so output stores stay unmasked.

    itemsize = jnp.dtype(x.dtype).itemsize
    if tile_h is None:
        tile_h = _choose_tile_h(C, H, W, itemsize)
    assert tile_h % 8 == 0 and H % tile_h == 0
    n_h = H // tile_h
    t_blk = tile_h // HALO        # 8-row blocks per tile
    h_blk = H // HALO             # 8-row blocks per image

    w_flat = conv_w.reshape(-1).astype(jnp.float32)   # layout [c, ky, kx]
    b = conv_b.reshape(1).astype(jnp.float32)

    # Block index maps.  Halo maps are clamped so they always address a valid
    # block; the kernel zeroes out-of-image halo contributions itself.
    def main_map(n, h):
        return (n, 0, h, 0)

    def top_map(n, h):
        return (n, 0, jnp.maximum(h * t_blk - 1, 0), 0)

    def bot_map(n, h):
        return (n, 0, jnp.minimum((h + 1) * t_blk, h_blk - 1), 0)

    # Explicit scoped-VMEM budget: double-buffered x in/out tiles + halo blocks
    # + imu blocks + padded-plane scratch + headroom for f32 temporaries.
    per_step = (2 * C * tile_h * W              # x tile in + out
                + 2 * C * HALO * W              # x halo blocks
                + (tile_h + 2 * HALO) * W       # imu blocks
                ) * itemsize
    scratch_bytes = 3 * (tile_h + 2 * PAD) * (W + 2 * PAD) * 4
    vmem_bytes = int(min(max(3 * per_step + scratch_bytes + (8 << 20), 32 << 20),
                         64 << 20))

    return pl.pallas_call(
        _sarm_kernel,
        out_shape=jax.ShapeDtypeStruct((N, C, H, W), x.dtype),
        grid_spec=pltpu.PrefetchScalarGridSpec(
            num_scalar_prefetch=0,
            grid=(N, n_h),
            in_specs=[
                pl.BlockSpec((1, C, tile_h, W), main_map),                 # x tile
                pl.BlockSpec((1, C, HALO, W), top_map),                    # x top halo
                pl.BlockSpec((1, C, HALO, W), bot_map),                    # x bottom halo
                pl.BlockSpec((1, 1, tile_h, W), main_map),                 # imu tile
                pl.BlockSpec((1, 1, HALO, W), top_map),                    # imu top halo
                pl.BlockSpec((1, 1, HALO, W), bot_map),                    # imu bottom halo
                pl.BlockSpec(memory_space=pltpu.MemorySpace.SMEM),         # conv weights
                pl.BlockSpec(memory_space=pltpu.MemorySpace.SMEM),         # conv bias
            ],
            out_specs=pl.BlockSpec((1, C, tile_h, W), main_map),
            scratch_shapes=[
                pltpu.VMEM((3, tile_h + 2 * PAD, W + 2 * PAD), jnp.float32),
            ],
        ),
        compiler_params=pltpu.CompilerParams(
            dimension_semantics=("parallel", "parallel"),
            vmem_limit_bytes=vmem_bytes),
        # NOTE: no input_output_aliases — halo reads of neighbour rows would
        # race with in-place gated writes of those rows.
    )(x, x, x, imu_mask, imu_mask, imu_mask, w_flat, b)


def _reference_forward(x, imu_mask, conv_w, conv_b):
    """Pure-JAX reference mirroring the PyTorch module."""
    x1 = jnp.mean(x, axis=1, keepdims=True)
    x2 = jnp.max(x, axis=1, keepdims=True)
    w = jnp.concatenate([x1, x2, imu_mask], axis=1)
    w = lax.conv_general_dilated(
        w, conv_w, window_strides=(1, 1),
        padding=((PAD, PAD), (PAD, PAD)),
        dimension_numbers=("NCHW", "OIHW", "NCHW"),
        precision=lax.Precision.HIGHEST) + conv_b.reshape(1, -1, 1, 1)
    return x * (1.0 / (1.0 + jnp.exp(-w)))


if __name__ == "__main__":
    key = jax.random.PRNGKey(0)
    kx, km, kw, kb = jax.random.split(key, 4)

    N, C, H, W = 2, 4, 16, 16
    x = jax.random.normal(kx, (N, C, H, W), jnp.float32)
    imu_mask = jax.random.uniform(km, (N, 1, H, W), jnp.float32)
    conv_w = 0.1 * jax.random.normal(kw, (1, 3, KS, KS), jnp.float32)
    conv_b = 0.1 * jax.random.normal(kb, (1,), jnp.float32)

    ref = jax.block_until_ready(
        _reference_forward(x, imu_mask, conv_w, conv_b))

    # Default tiling (single H tile at this size).
    out = jax.block_until_ready(
        spatial_attention_refinement(x, imu_mask, conv_w, conv_b))
    assert out.shape == (N, C, H, W)
    assert jnp.allclose(out, ref, atol=1e-4, rtol=1e-4), float(
        jnp.max(jnp.abs(out - ref)))

    # Force two H tiles so the halo path (what v7x-sized shapes use) is
    # exercised and checked as well.
    out_t = jax.block_until_ready(
        spatial_attention_refinement(x, imu_mask, conv_w, conv_b, tile_h=8))
    assert jnp.allclose(out_t, ref, atol=1e-4, rtol=1e-4), float(
        jnp.max(jnp.abs(out_t - ref)))

    print("KERNEL_OK")
</pallas_src>

<mosaic_0001>
module attributes {stable_mosaic.version = 11 : i64} {
  func.func @_sarm_kernel(%arg0: i32, %arg1: i32, %arg2: memref<1x4x16x16xf32, #tpu.memory_space<vmem>>, %arg3: memref<1x4x8x16xf32, #tpu.memory_space<vmem>>, %arg4: memref<1x4x8x16xf32, #tpu.memory_space<vmem>>, %arg5: memref<1x1x16x16xf32, #tpu.memory_space<vmem>>, %arg6: memref<1x1x8x16xf32, #tpu.memory_space<vmem>>, %arg7: memref<1x1x8x16xf32, #tpu.memory_space<vmem>>, %arg8: memref<147xf32, #tpu.memory_space<smem>>, %arg9: memref<1xf32, #tpu.memory_space<smem>>, %arg10: memref<1x4x16x16xf32, #tpu.memory_space<vmem>>, %arg11: memref<3x22x22xf32, #tpu.memory_space<vmem>>) attributes {dimension_semantics = [#tpu.dimension_semantics<parallel>, #tpu.dimension_semantics<parallel>], iteration_bounds = array<i64: 2, 1>, scalar_prefetch = 0 : i64, scratch_operands = 1 : i64, tpu.core_type = #tpu.core_type<tc>, window_params = [{transform_indices = @transform_0, window_bounds = array<i64: 1, 4, 16, 16>}, {transform_indices = @transform_1, window_bounds = array<i64: 1, 4, 8, 16>}, {transform_indices = @transform_2, window_bounds = array<i64: 1, 4, 8, 16>}, {transform_indices = @transform_3, window_bounds = array<i64: 1, 1, 16, 16>}, {transform_indices = @transform_4, window_bounds = array<i64: 1, 1, 8, 16>}, {transform_indices = @transform_5, window_bounds = array<i64: 1, 1, 8, 16>}, {transform_indices = @transform_6, window_bounds = array<i64: 147>}, {transform_indices = @transform_7, window_bounds = array<i64: 1>}, {transform_indices = @transform_8, window_bounds = array<i64: 1, 4, 16, 16>}]} {
    %c0_i32 = arith.constant 0 : i32
    %0 = arith.cmpi sgt, %arg1, %c0_i32 : i32
    %cst = arith.constant 1.000000e+00 : f32
    %cst_0 = arith.constant 0.000000e+00 : f32
    %1 = arith.select %0, %cst, %cst_0 : f32
    %c0_i32_1 = arith.constant 0 : i32
    %2 = arith.cmpi slt, %arg1, %c0_i32_1 : i32
    %cst_2 = arith.constant 1.000000e+00 : f32
    %cst_3 = arith.constant 0.000000e+00 : f32
    %3 = arith.select %2, %cst_2, %cst_3 : f32
    %c0 = arith.constant 0 : index
    %c0_4 = arith.constant 0 : index
    %c0_5 = arith.constant 0 : index
    %c0_6 = arith.constant 0 : index
    %4 = vector.load %arg2[%c0, %c0_4, %c0_5, %c0_6] : memref<1x4x16x16xf32, #tpu.memory_space<vmem>>, vector<1x4x16x16xf32>
    %5 = vector.shape_cast %4 : vector<1x4x16x16xf32> to vector<4x16x16xf32>
    %cst_7 = arith.constant dense<0.000000e+00> : vector<16x16xf32>
    %6 = vector.multi_reduction <add>, %5, %cst_7 [0] : vector<4x16x16xf32> to vector<16x16xf32>
    %cst_8 = arith.constant 4.000000e+00 : f32
    %7 = vector.broadcast %cst_8 : f32 to vector<16x16xf32>
    %8 = arith.divf %6, %7 : vector<16x16xf32>
    %cst_9 = arith.constant dense<0xFF800000> : vector<16x16xf32>
    %9 = vector.multi_reduction <maximumf>, %5, %cst_9 [0] : vector<4x16x16xf32> to vector<16x16xf32>
    %c0_10 = arith.constant 0 : index
    %c0_11 = arith.constant 0 : index
    %c0_12 = arith.constant 0 : index
    %c0_13 = arith.constant 0 : index
    %10 = vector.load %arg3[%c0_10, %c0_11, %c0_12, %c0_13] : memref<1x4x8x16xf32, #tpu.memory_space<vmem>>, vector<1x4x8x16xf32>
    %11 = vector.shape_cast %10 : vector<1x4x8x16xf32> to vector<4x8x16xf32>
    %c0_14 = arith.constant 0 : index
    %c0_15 = arith.constant 0 : index
    %c0_16 = arith.constant 0 : index
    %c0_17 = arith.constant 0 : index
    %12 = vector.load %arg4[%c0_14, %c0_15, %c0_16, %c0_17] : memref<1x4x8x16xf32, #tpu.memory_space<vmem>>, vector<1x4x8x16xf32>
    %13 = vector.shape_cast %12 : vector<1x4x8x16xf32> to vector<4x8x16xf32>
    %cst_18 = arith.constant dense<0.000000e+00> : vector<8x16xf32>
    %14 = vector.multi_reduction <add>, %11, %cst_18 [0] : vector<4x8x16xf32> to vector<8x16xf32>
    %cst_19 = arith.constant 4.000000e+00 : f32
    %15 = vector.broadcast %cst_19 : f32 to vector<8x16xf32>
    %16 = arith.divf %14, %15 : vector<8x16xf32>
    %17 = vector.extract_strided_slice %16 {offsets = [5, 0], sizes = [3, 16], strides = [1, 1]} : vector<8x16xf32> to vector<3x16xf32>
    %18 = vector.broadcast %1 : f32 to vector<3x16xf32>
    %19 = arith.mulf %17, %18 : vector<3x16xf32>
    %cst_20 = arith.constant dense<0xFF800000> : vector<8x16xf32>
    %20 = vector.multi_reduction <maximumf>, %11, %cst_20 [0] : vector<4x8x16xf32> to vector<8x16xf32>
    %21 = vector.extract_strided_slice %20 {offsets = [5, 0], sizes = [3, 16], strides = [1, 1]} : vector<8x16xf32> to vector<3x16xf32>
    %22 = vector.broadcast %1 : f32 to vector<3x16xf32>
    %23 = arith.mulf %21, %22 : vector<3x16xf32>
    %cst_21 = arith.constant dense<0.000000e+00> : vector<8x16xf32>
    %24 = vector.multi_reduction <add>, %13, %cst_21 [0] : vector<4x8x16xf32> to vector<8x16xf32>
    %cst_22 = arith.constant 4.000000e+00 : f32
    %25 = vector.broadcast %cst_22 : f32 to vector<8x16xf32>
    %26 = arith.divf %24, %25 : vector<8x16xf32>
    %27 = vector.extract_strided_slice %26 {offsets = [0, 0], sizes = [3, 16], strides = [1, 1]} : vector<8x16xf32> to vector<3x16xf32>
    %28 = vector.broadcast %3 : f32 to vector<3x16xf32>
    %29 = arith.mulf %27, %28 : vector<3x16xf32>
    %cst_23 = arith.constant dense<0xFF800000> : vector<8x16xf32>
    %30 = vector.multi_reduction <maximumf>, %13, %cst_23 [0] : vector<4x8x16xf32> to vector<8x16xf32>
    %31 = vector.extract_strided_slice %30 {offsets = [0, 0], sizes = [3, 16], strides = [1, 1]} : vector<8x16xf32> to vector<3x16xf32>
    %32 = vector.broadcast %3 : f32 to vector<3x16xf32>
    %33 = arith.mulf %31, %32 : vector<3x16xf32>
    %c0_24 = arith.constant 0 : index
    %c0_25 = arith.constant 0 : index
    %c0_26 = arith.constant 0 : index
    %c0_27 = arith.constant 0 : index
    %34 = vector.load %arg5[%c0_24, %c0_25, %c0_26, %c0_27] : memref<1x1x16x16xf32, #tpu.memory_space<vmem>>, vector<1x1x16x16xf32>
    %35 = vector.shape_cast %34 : vector<1x1x16x16xf32> to vector<16x16xf32>
    %c0_28 = arith.constant 0 : index
    %c0_29 = arith.constant 0 : index
    %c0_30 = arith.constant 0 : index
    %c0_31 = arith.constant 0 : index
    %36 = vector.load %arg6[%c0_28, %c0_29, %c0_30, %c0_31] : memref<1x1x8x16xf32, #tpu.memory_space<vmem>>, vector<1x1x8x16xf32>
    %37 = vector.shape_cast %36 : vector<1x1x8x16xf32> to vector<8x16xf32>
    %38 = vector.extract_strided_slice %37 {offsets = [5, 0], sizes = [3, 16], strides = [1, 1]} : vector<8x16xf32> to vector<3x16xf32>
    %39 = vector.broadcast %1 : f32 to vector<3x16xf32>
    %40 = arith.mulf %38, %39 : vector<3x16xf32>
    %c0_32 = arith.constant 0 : index
    %c0_33 = arith.constant 0 : index
    %c0_34 = arith.constant 0 : index
    %c0_35 = arith.constant 0 : index
    %41 = vector.load %arg7[%c0_32, %c0_33, %c0_34, %c0_35] : memref<1x1x8x16xf32, #tpu.memory_space<vmem>>, vector<1x1x8x16xf32>
    %42 = vector.shape_cast %41 : vector<1x1x8x16xf32> to vector<8x16xf32>
    %43 = vector.extract_strided_slice %42 {offsets = [0, 0], sizes = [3, 16], strides = [1, 1]} : vector<8x16xf32> to vector<3x16xf32>
    %44 = vector.broadcast %3 : f32 to vector<3x16xf32>
    %45 = arith.mulf %43, %44 : vector<3x16xf32>
    %cst_36 = arith.constant 0.000000e+00 : f32
    %46 = vector.broadcast %cst_36 : f32 to vector<22x3xf32>
    %c0_37 = arith.constant 0 : index
    %c0_38 = arith.constant 0 : index
    %c0_39 = arith.constant 0 : index
    %47 = vector.load %arg11[%c0_37, %c0_38, %c0_39] : memref<3x22x22xf32, #tpu.memory_space<vmem>>, vector<1x22x3xf32>
    %48 = vector.shape_cast %47 : vector<1x22x3xf32> to vector<22x3xf32>
    %49 = vector.shape_cast %46 : vector<22x3xf32> to vector<1x22x3xf32>
    tpu.vector_store %arg11[%c0_37, %c0_38, %c0_39], %49 {strides = array<i32>} : memref<3x22x22xf32, #tpu.memory_space<vmem>>, vector<1x22x3xf32>,
    %c0_40 = arith.constant 0 : index
    %c0_41 = arith.constant 0 : index
    %c19 = arith.constant 19 : index
    %50 = vector.load %arg11[%c0_40, %c0_41, %c19] : memref<3x22x22xf32, #tpu.memory_space<vmem>>, vector<1x22x3xf32>
    %51 = vector.shape_cast %50 : vector<1x22x3xf32> to vector<22x3xf32>
    %52 = vector.shape_cast %46 : vector<22x3xf32> to vector<1x22x3xf32>
    tpu.vector_store %arg11[%c0_40, %c0_41, %c19], %52 {strides = array<i32>} : memref<3x22x22xf32, #tpu.memory_space<vmem>>, vector<1x22x3xf32>,
    %c1 = arith.constant 1 : index
    %c0_42 = arith.constant 0 : index
    %c0_43 = arith.constant 0 : index
    %53 = vector.load %arg11[%c1, %c0_42, %c0_43] : memref<3x22x22xf32, #tpu.memory_space<vmem>>, vector<1x22x3xf32>
    %54 = vector.shape_cast %53 : vector<1x22x3xf32> to vector<22x3xf32>
    %55 = vector.shape_cast %46 : vector<22x3xf32> to vector<1x22x3xf32>
    tpu.vector_store %arg11[%c1, %c0_42, %c0_43], %55 {strides = array<i32>} : memref<3x22x22xf32, #tpu.memory_space<vmem>>, vector<1x22x3xf32>,
    %c1_44 = arith.constant 1 : index
    %c0_45 = arith.constant 0 : index
    %c19_46 = arith.constant 19 : index
    %56 = vector.load %arg11[%c1_44, %c0_45, %c19_46] : memref<3x22x22xf32, #tpu.memory_space<vmem>>, vector<1x22x3xf32>
    %57 = vector.shape_cast %56 : vector<1x22x3xf32> to vector<22x3xf32>
    %58 = vector.shape_cast %46 : vector<22x3xf32> to vector<1x22x3xf32>
    tpu.vector_store %arg11[%c1_44, %c0_45, %c19_46], %58 {strides = array<i32>} : memref<3x22x22xf32, #tpu.memory_space<vmem>>, vector<1x22x3xf32>,
    %c2 = arith.constant 2 : index
    %c0_47 = arith.constant 0 : index
    %c0_48 = arith.constant 0 : index
    %59 = vector.load %arg11[%c2, %c0_47, %c0_48] : memref<3x22x22xf32, #tpu.memory_space<vmem>>, vector<1x22x3xf32>
    %60 = vector.shape_cast %59 : vector<1x22x3xf32> to vector<22x3xf32>
    %61 = vector.shape_cast %46 : vector<22x3xf32> to vector<1x22x3xf32>
    tpu.vector_store %arg11[%c2, %c0_47, %c0_48], %61 {strides = array<i32>} : memref<3x22x22xf32, #tpu.memory_space<vmem>>, vector<1x22x3xf32>,
    %c2_49 = arith.constant 2 : index
    %c0_50 = arith.constant 0 : index
    %c19_51 = arith.constant 19 : index
    %62 = vector.load %arg11[%c2_49, %c0_50, %c19_51] : memref<3x22x22xf32, #tpu.memory_space<vmem>>, vector<1x22x3xf32>
    %63 = vector.shape_cast %62 : vector<1x22x3xf32> to vector<22x3xf32>
    %64 = vector.shape_cast %46 : vector<22x3xf32> to vector<1x22x3xf32>
    tpu.vector_store %arg11[%c2_49, %c0_50, %c19_51], %64 {strides = array<i32>} : memref<3x22x22xf32, #tpu.memory_space<vmem>>, vector<1x22x3xf32>,
    %c0_52 = arith.constant 0 : index
    %c0_53 = arith.constant 0 : index
    %c3 = arith.constant 3 : index
    %65 = vector.load %arg11[%c0_52, %c0_53, %c3] : memref<3x22x22xf32, #tpu.memory_space<vmem>>, vector<1x3x16xf32>
    %66 = vector.shape_cast %65 : vector<1x3x16xf32> to vector<3x16xf32>
    %67 = vector.shape_cast %19 : vector<3x16xf32> to vector<1x3x16xf32>
    tpu.vector_store %arg11[%c0_52, %c0_53, %c3], %67 {strides = array<i32>} : memref<3x22x22xf32, #tpu.memory_space<vmem>>, vector<1x3x16xf32>,
    %c0_54 = arith.constant 0 : index
    %c3_55 = arith.constant 3 : index
    %c3_56 = arith.constant 3 : index
    %68 = vector.load %arg11[%c0_54, %c3_55, %c3_56] : memref<3x22x22xf32, #tpu.memory_space<vmem>>, vector<1x16x16xf32>
    %69 = vector.shape_cast %68 : vector<1x16x16xf32> to vector<16x16xf32>
    %70 = vector.shape_cast %8 : vector<16x16xf32> to vector<1x16x16xf32>
    tpu.vector_store %arg11[%c0_54, %c3_55, %c3_56], %70 {strides = array<i32>} : memref<3x22x22xf32, #tpu.memory_space<vmem>>, vector<1x16x16xf32>,
    %c0_57 = arith.constant 0 : index
    %c19_58 = arith.constant 19 : index
    %c3_59 = arith.constant 3 : index
    %71 = vector.load %arg11[%c0_57, %c19_58, %c3_59] : memref<3x22x22xf32, #tpu.memory_space<vmem>>, vector<1x3x16xf32>
    %72 = vector.shape_cast %71 : vector<1x3x16xf32> to vector<3x16xf32>
    %73 = vector.shape_cast %29 : vector<3x16xf32> to vector<1x3x16xf32>
    tpu.vector_store %arg11[%c0_57, %c19_58, %c3_59], %73 {strides = array<i32>} : memref<3x22x22xf32, #tpu.memory_space<vmem>>, vector<1x3x16xf32>,
    %c1_60 = arith.constant 1 : index
    %c0_61 = arith.constant 0 : index
    %c3_62 = arith.constant 3 : index
    %74 = vector.load %arg11[%c1_60, %c0_61, %c3_62] : memref<3x22x22xf32, #tpu.memory_space<vmem>>, vector<1x3x16xf32>
    %75 = vector.shape_cast %74 : vector<1x3x16xf32> to vector<3x16xf32>
    %76 = vector.shape_cast %23 : vector<3x16xf32> to vector<1x3x16xf32>
    tpu.vector_store %arg11[%c1_60, %c0_61, %c3_62], %76 {strides = array<i32>} : memref<3x22x22xf32, #tpu.memory_space<vmem>>, vector<1x3x16xf32>,
    %c1_63 = arith.constant 1 : index
    %c3_64 = arith.constant 3 : index
    %c3_65 = arith.constant 3 : index
    %77 = vector.load %arg11[%c1_63, %c3_64, %c3_65] : memref<3x22x22xf32, #tpu.memory_space<vmem>>, vector<1x16x16xf32>
    %78 = vector.shape_cast %77 : vector<1x16x16xf32> to vector<16x16xf32>
    %79 = vector.shape_cast %9 : vector<16x16xf32> to vector<1x16x16xf32>
    tpu.vector_store %arg11[%c1_63, %c3_64, %c3_65], %79 {strides = array<i32>} : memref<3x22x22xf32, #tpu.memory_space<vmem>>, vector<1x16x16xf32>,
    %c1_66 = arith.constant 1 : index
    %c19_67 = arith.constant 19 : index
    %c3_68 = arith.constant 3 : index
    %80 = vector.load %arg11[%c1_66, %c19_67, %c3_68] : memref<3x22x22xf32, #tpu.memory_space<vmem>>, vector<1x3x16xf32>
    %81 = vector.shape_cast %80 : vector<1x3x16xf32> to vector<3x16xf32>
    %82 = vector.shape_cast %33 : vector<3x16xf32> to vector<1x3x16xf32>
    tpu.vector_store %arg11[%c1_66, %c19_67, %c3_68], %82 {strides = array<i32>} : memref<3x22x22xf32, #tpu.memory_space<vmem>>, vector<1x3x16xf32>,
    %c2_69 = arith.constant 2 : index
    %c0_70 = arith.constant 0 : index
    %c3_71 = arith.constant 3 : index
    %83 = vector.load %arg11[%c2_69, %c0_70, %c3_71] : memref<3x22x22xf32, #tpu.memory_space<vmem>>, vector<1x3x16xf32>
    %84 = vector.shape_cast %83 : vector<1x3x16xf32> to vector<3x16xf32>
    %85 = vector.shape_cast %40 : vector<3x16xf32> to vector<1x3x16xf32>
    tpu.vector_store %arg11[%c2_69, %c0_70, %c3_71], %85 {strides = array<i32>} : memref<3x22x22xf32, #tpu.memory_space<vmem>>, vector<1x3x16xf32>,
    %c2_72 = arith.constant 2 : index
    %c3_73 = arith.constant 3 : index
    %c3_74 = arith.constant 3 : index
    %86 = vector.load %arg11[%c2_72, %c3_73, %c3_74] : memref<3x22x22xf32, #tpu.memory_space<vmem>>, vector<1x16x16xf32>
    %87 = vector.shape_cast %86 : vector<1x16x16xf32> to vector<16x16xf32>
    %88 = vector.shape_cast %35 : vector<16x16xf32> to vector<1x16x16xf32>
    tpu.vector_store %arg11[%c2_72, %c3_73, %c3_74], %88 {strides = array<i32>} : memref<3x22x22xf32, #tpu.memory_space<vmem>>, vector<1x16x16xf32>,
    %c2_75 = arith.constant 2 : index
    %c19_76 = arith.constant 19 : index
    %c3_77 = arith.constant 3 : index
    %89 = vector.load %arg11[%c2_75, %c19_76, %c3_77] : memref<3x22x22xf32, #tpu.memory_space<vmem>>, vector<1x3x16xf32>
    %90 = vector.shape_cast %89 : vector<1x3x16xf32> to vector<3x16xf32>
    %91 = vector.shape_cast %45 : vector<3x16xf32> to vector<1x3x16xf32>
    tpu.vector_store %arg11[%c2_75, %c19_76, %c3_77], %91 {strides = array<i32>} : memref<3x22x22xf32, #tpu.memory_space<vmem>>, vector<1x3x16xf32>,
    %cst_78 = arith.constant 0.000000e+00 : f32
    %92 = vector.broadcast %cst_78 : f32 to vector<16x16xf32>
    %cst_79 = arith.constant 0.000000e+00 : f32
    %93 = vector.broadcast %cst_79 : f32 to vector<16x16xf32>
    %cst_80 = arith.constant 0.000000e+00 : f32
    %94 = vector.broadcast %cst_80 : f32 to vector<16x16xf32>
    %c0_81 = arith.constant 0 : index
    %c0_82 = arith.constant 0 : index
    %c0_83 = arith.constant 0 : index
    %95 = vector.load %arg11[%c0_81, %c0_82, %c0_83] : memref<3x22x22xf32, #tpu.memory_space<vmem>>, vector<1x22x22xf32>
    %96 = vector.shape_cast %95 : vector<1x22x22xf32> to vector<22x22xf32>
    %97 = vector.extract_strided_slice %96 {offsets = [0, 0], sizes = [22, 16], strides = [1, 1]} : vector<22x22xf32> to vector<22x16xf32>
    %98 = vector.extract_strided_slice %97 {offsets = [0, 0], sizes = [16, 16], strides = [1, 1]} : vector<22x16xf32> to vector<16x16xf32>
    %c0_84 = arith.constant 0 : index
    %99 = memref.load %arg8[%c0_84] : memref<147xf32, #tpu.memory_space<smem>>
    %100 = vector.broadcast %99 : f32 to vector<16x16xf32>
    %101 = arith.mulf %98, %100 : vector<16x16xf32>
    %102 = arith.addf %92, %101 : vector<16x16xf32>
    %103 = vector.extract_strided_slice %97 {offsets = [1, 0], sizes = [16, 16], strides = [1, 1]} : vector<22x16xf32> to vector<16x16xf32>
    %c7 = arith.constant 7 : index
    %104 = memref.load %arg8[%c7] : memref<147xf32, #tpu.memory_space<smem>>
    %105 = vector.broadcast %104 : f32 to vector<16x16xf32>
    %106 = arith.mulf %103, %105 : vector<16x16xf32>
    %107 = arith.addf %102, %106 : vector<16x16xf32>
    %108 = vector.extract_strided_slice %97 {offsets = [2, 0], sizes = [16, 16], strides = [1, 1]} : vector<22x16xf32> to vector<16x16xf32>
    %c14 = arith.constant 14 : index
    %109 = memref.load %arg8[%c14] : memref<147xf32, #tpu.memory_space<smem>>
    %110 = vector.broadcast %109 : f32 to vector<16x16xf32>
    %111 = arith.mulf %108, %110 : vector<16x16xf32>
    %112 = arith.addf %107, %111 : vector<16x16xf32>
    %113 = vector.extract_strided_slice %97 {offsets = [3, 0], sizes = [16, 16], strides = [1, 1]} : vector<22x16xf32> to vector<16x16xf32>
    %c21 = arith.constant 21 : index
    %114 = memref.load %arg8[%c21] : memref<147xf32, #tpu.memory_space<smem>>
    %115 = vector.broadcast %114 : f32 to vector<16x16xf32>
    %116 = arith.mulf %113, %115 : vector<16x16xf32>
    %117 = arith.addf %112, %116 : vector<16x16xf32>
    %118 = vector.extract_strided_slice %97 {offsets = [4, 0], sizes = [16, 16], strides = [1, 1]} : vector<22x16xf32> to vector<16x16xf32>
    %c28 = arith.constant 28 : index
    %119 = memref.load %arg8[%c28] : memref<147xf32, #tpu.memory_space<smem>>
    %120 = vector.broadcast %119 : f32 to vector<16x16xf32>
    %121 = arith.mulf %118, %120 : vector<16x16xf32>
    %122 = arith.addf %117, %121 : vector<16x16xf32>
    %123 = vector.extract_strided_slice %97 {offsets = [5, 0], sizes = [16, 16], strides = [1, 1]} : vector<22x16xf32> to vector<16x16xf32>
    %c35 = arith.constant 35 : index
    %124 = memref.load %arg8[%c35] : memref<147xf32, #tpu.memory_space<smem>>
    %125 = vector.broadcast %124 : f32 to vector<16x16xf32>
    %126 = arith.mulf %123, %125 : vector<16x16xf32>
    %127 = arith.addf %122, %126 : vector<16x16xf32>
    %128 = vector.extract_strided_slice %97 {offsets = [6, 0], sizes = [16, 16], strides = [1, 1]} : vector<22x16xf32> to vector<16x16xf32>
    %c42 = arith.constant 42 : index
    %129 = memref.load %arg8[%c42] : memref<147xf32, #tpu.memory_space<smem>>
    %130 = vector.broadcast %129 : f32 to vector<16x16xf32>
    %131 = arith.mulf %128, %130 : vector<16x16xf32>
    %132 = arith.addf %127, %131 : vector<16x16xf32>
    %133 = vector.extract_strided_slice %96 {offsets = [0, 1], sizes = [22, 16], strides = [1, 1]} : vector<22x22xf32> to vector<22x16xf32>
    %134 = vector.extract_strided_slice %133 {offsets = [0, 0], sizes = [16, 16], strides = [1, 1]} : vector<22x16xf32> to vector<16x16xf32>
    %c1_85 = arith.constant 1 : index
    %135 = memref.load %arg8[%c1_85] : memref<147xf32, #tpu.memory_space<smem>>
    %136 = vector.broadcast %135 : f32 to vector<16x16xf32>
    %137 = arith.mulf %134, %136 : vector<16x16xf32>
    %138 = arith.addf %132, %137 : vector<16x16xf32>
    %139 = vector.extract_strided_slice %133 {offsets = [1, 0], sizes = [16, 16], strides = [1, 1]} : vector<22x16xf32> to vector<16x16xf32>
    %c8 = arith.constant 8 : index
    %140 = memref.load %arg8[%c8] : memref<147xf32, #tpu.memory_space<smem>>
    %141 = vector.broadcast %140 : f32 to vector<16x16xf32>
    %142 = arith.mulf %139, %141 : vector<16x16xf32>
    %143 = arith.addf %138, %142 : vector<16x16xf32>
    %144 = vector.extract_strided_slice %133 {offsets = [2, 0], sizes = [16, 16], strides = [1, 1]} : vector<22x16xf32> to vector<16x16xf32>
    %c15 = arith.constant 15 : index
    %145 = memref.load %arg8[%c15] : memref<147xf32, #tpu.memory_space<smem>>
    %146 = vector.broadcast %145 : f32 to vector<16x16xf32>
    %147 = arith.mulf %144, %146 : vector<16x16xf32>
    %148 = arith.addf %143, %147 : vector<16x16xf32>
    %149 = vector.extract_strided_slice %133 {offsets = [3, 0], sizes = [16, 16], strides = [1, 1]} : vector<22x16xf32> to vector<16x16xf32>
    %c22 = arith.constant 22 : index
    %150 = memref.load %arg8[%c22] : memref<147xf32, #tpu.memory_space<smem>>
    %151 = vector.broadcast %150 : f32 to vector<16x16xf32>
    %152 = arith.mulf %149, %151 : vector<16x16xf32>
    %153 = arith.addf %148, %152 : vector<16x16xf32>
    %154 = vector.extract_strided_slice %133 {offsets = [4, 0], sizes = [16, 16], strides = [1, 1]} : vector<22x16xf32> to vector<16x16xf32>
    %c29 = arith.constant 29 : index
    %155 = memref.load %arg8[%c29] : memref<147xf32, #tpu.memory_space<smem>>
    %156 = vector.broadcast %155 : f32 to vector<16x16xf32>
    %157 = arith.mulf %154, %156 : vector<16x16xf32>
    %158 = arith.addf %153, %157 : vector<16x16xf32>
    %159 = vector.extract_strided_slice %133 {offsets = [5, 0], sizes = [16, 16], strides = [1, 1]} : vector<22x16xf32> to vector<16x16xf32>
    %c36 = arith.constant 36 : index
    %160 = memref.load %arg8[%c36] : memref<147xf32, #tpu.memory_space<smem>>
    %161 = vector.broadcast %160 : f32 to vector<16x16xf32>
    %162 = arith.mulf %159, %161 : vector<16x16xf32>
    %163 = arith.addf %158, %162 : vector<16x16xf32>
    %164 = vector.extract_strided_slice %133 {offsets = [6, 0], sizes = [16, 16], strides = [1, 1]} : vector<22x16xf32> to vector<16x16xf32>
    %c43 = arith.constant 43 : index
    %165 = memref.load %arg8[%c43] : memref<147xf32, #tpu.memory_space<smem>>
    %166 = vector.broadcast %165 : f32 to vector<16x16xf32>
    %167 = arith.mulf %164, %166 : vector<16x16xf32>
    %168 = arith.addf %163, %167 : vector<16x16xf32>
    %169 = vector.extract_strided_slice %96 {offsets = [0, 2], sizes = [22, 16], strides = [1, 1]} : vector<22x22xf32> to vector<22x16xf32>
    %170 = vector.extract_strided_slice %169 {offsets = [0, 0], sizes = [16, 16], strides = [1, 1]} : vector<22x16xf32> to vector<16x16xf32>
    %c2_86 = arith.constant 2 : index
    %171 = memref.load %arg8[%c2_86] : memref<147xf32, #tpu.memory_space<smem>>
    %172 = vector.broadcast %171 : f32 to vector<16x16xf32>
    %173 = arith.mulf %170, %172 : vector<16x16xf32>
    %174 = arith.addf %168, %173 : vector<16x16xf32>
    %175 = vector.extract_strided_slice %169 {offsets = [1, 0], sizes = [16, 16], strides = [1, 1]} : vector<22x16xf32> to vector<16x16xf32>
    %c9 = arith.constant 9 : index
    %176 = memref.load %arg8[%c9] : memref<147xf32, #tpu.memory_space<smem>>
    %177 = vector.broadcast %176 : f32 to vector<16x16xf32>
    %178 = arith.mulf %175, %177 : vector<16x16xf32>
    %179 = arith.addf %174, %178 : vector<16x16xf32>
    %180 = vector.extract_strided_slice %169 {offsets = [2, 0], sizes = [16, 16], strides = [1, 1]} : vector<22x16xf32> to vector<16x16xf32>
    %c16 = arith.constant 16 : index
    %181 = memref.load %arg8[%c16] : memref<147xf32, #tpu.memory_space<smem>>
    %182 = vector.broadcast %181 : f32 to vector<16x16xf32>
    %183 = arith.mulf %180, %182 : vector<16x16xf32>
    %184 = arith.addf %179, %183 : vector<16x16xf32>
    %185 = vector.extract_strided_slice %169 {offsets = [3, 0], sizes = [16, 16], strides = [1, 1]} : vector<22x16xf32> to vector<16x16xf32>
    %c23 = arith.constant 23 : index
    %186 = memref.load %arg8[%c23] : memref<147xf32, #tpu.memory_space<smem>>
    %187 = vector.broadcast %186 : f32 to vector<16x16xf32>
    %188 = arith.mulf %185, %187 : vector<16x16xf32>
    %189 = arith.addf %184, %188 : vector<16x16xf32>
    %190 = vector.extract_strided_slice %169 {offsets = [4, 0], sizes = [16, 16], strides = [1, 1]} : vector<22x16xf32> to vector<16x16xf32>
    %c30 = arith.constant 30 : index
    %191 = memref.load %arg8[%c30] : memref<147xf32, #tpu.memory_space<smem>>
    %192 = vector.broadcast %191 : f32 to vector<16x16xf32>
    %193 = arith.mulf %190, %192 : vector<16x16xf32>
    %194 = arith.addf %189, %193 : vector<16x16xf32>
    %195 = vector.extract_strided_slice %169 {offsets = [5, 0], sizes = [16, 16], strides = [1, 1]} : vector<22x16xf32> to vector<16x16xf32>
    %c37 = arith.constant 37 : index
    %196 = memref.load %arg8[%c37] : memref<147xf32, #tpu.memory_space<smem>>
    %197 = vector.broadcast %196 : f32 to vector<16x16xf32>
    %198 = arith.mulf %195, %197 : vector<16x16xf32>
    %199 = arith.addf %194, %198 : vector<16x16xf32>
    %200 = vector.extract_strided_slice %169 {offsets = [6, 0], sizes = [16, 16], strides = [1, 1]} : vector<22x16xf32> to vector<16x16xf32>
    %c44 = arith.constant 44 : index
    %201 = memref.load %arg8[%c44] : memref<147xf32, #tpu.memory_space<smem>>
    %202 = vector.broadcast %201 : f32 to vector<16x16xf32>
    %203 = arith.mulf %200, %202 : vector<16x16xf32>
    %204 = arith.addf %199, %203 : vector<16x16xf32>
    %205 = vector.extract_strided_slice %96 {offsets = [0, 3], sizes = [22, 16], strides = [1, 1]} : vector<22x22xf32> to vector<22x16xf32>
    %206 = vector.extract_strided_slice %205 {offsets = [0, 0], sizes = [16, 16], strides = [1, 1]} : vector<22x16xf32> to vector<16x16xf32>
    %c3_87 = arith.constant 3 : index
    %207 = memref.load %arg8[%c3_87] : memref<147xf32, #tpu.memory_space<smem>>
    %208 = vector.broadcast %207 : f32 to vector<16x16xf32>
    %209 = arith.mulf %206, %208 : vector<16x16xf32>
    %210 = arith.addf %204, %209 : vector<16x16xf32>
    %211 = vector.extract_strided_slice %205 {offsets = [1, 0], sizes = [16, 16], strides = [1, 1]} : vector<22x16xf32> to vector<16x16xf32>
    %c10 = arith.constant 10 : index
    %212 = memref.load %arg8[%c10] : memref<147xf32, #tpu.memory_space<smem>>
    %213 = vector.broadcast %212 : f32 to vector<16x16xf32>
    %214 = arith.mulf %211, %213 : vector<16x16xf32>
    %215 = arith.addf %210, %214 : vector<16x16xf32>
    %216 = vector.extract_strided_slice %205 {offsets = [2, 0], sizes = [16, 16], strides = [1, 1]} : vector<22x16xf32> to vector<16x16xf32>
    %c17 = arith.constant 17 : index
    %217 = memref.load %arg8[%c17] : memref<147xf32, #tpu.memory_space<smem>>
    %218 = vector.broadcast %217 : f32 to vector<16x16xf32>
    %219 = arith.mulf %216, %218 : vector<16x16xf32>
    %220 = arith.addf %215, %219 : vector<16x16xf32>
    %221 = vector.extract_strided_slice %205 {offsets = [3, 0], sizes = [16, 16], strides = [1, 1]} : vector<22x16xf32> to vector<16x16xf32>
    %c24 = arith.constant 24 : index
    %222 = memref.load %arg8[%c24] : memref<147xf32, #tpu.memory_space<smem>>
    %223 = vector.broadcast %222 : f32 to vector<16x16xf32>
    %224 = arith.mulf %221, %223 : vector<16x16xf32>
    %225 = arith.addf %220, %224 : vector<16x16xf32>
    %226 = vector.extract_strided_slice %205 {offsets = [4, 0], sizes = [16, 16], strides = [1, 1]} : vector<22x16xf32> to vector<16x16xf32>
    %c31 = arith.constant 31 : index
    %227 = memref.load %arg8[%c31] : memref<147xf32, #tpu.memory_space<smem>>
    %228 = vector.broadcast %227 : f32 to vector<16x16xf32>
    %229 = arith.mulf %226, %228 : vector<16x16xf32>
    %230 = arith.addf %225, %229 : vector<16x16xf32>
    %231 = vector.extract_strided_slice %205 {offsets = [5, 0], sizes = [16, 16], strides = [1, 1]} : vector<22x16xf32> to vector<16x16xf32>
    %c38 = arith.constant 38 : index
    %232 = memref.load %arg8[%c38] : memref<147xf32, #tpu.memory_space<smem>>
    %233 = vector.broadcast %232 : f32 to vector<16x16xf32>
    %234 = arith.mulf %231, %233 : vector<16x16xf32>
    %235 = arith.addf %230, %234 : vector<16x16xf32>
    %236 = vector.extract_strided_slice %205 {offsets = [6, 0], sizes = [16, 16], strides = [1, 1]} : vector<22x16xf32> to vector<16x16xf32>
    %c45 = arith.constant 45 : index
    %237 = memref.load %arg8[%c45] : memref<147xf32, #tpu.memory_space<smem>>
    %238 = vector.broadcast %237 : f32 to vector<16x16xf32>
    %239 = arith.mulf %236, %238 : vector<16x16xf32>
    %240 = arith.addf %235, %239 : vector<16x16xf32>
    %241 = vector.extract_strided_slice %96 {offsets = [0, 4], sizes = [22, 16], strides = [1, 1]} : vector<22x22xf32> to vector<22x16xf32>
    %242 = vector.extract_strided_slice %241 {offsets = [0, 0], sizes = [16, 16], strides = [1, 1]} : vector<22x16xf32> to vector<16x16xf32>
    %c4 = arith.constant 4 : index
    %243 = memref.load %arg8[%c4] : memref<147xf32, #tpu.memory_space<smem>>
    %244 = vector.broadcast %243 : f32 to vector<16x16xf32>
    %245 = arith.mulf %242, %244 : vector<16x16xf32>
    %246 = arith.addf %240, %245 : vector<16x16xf32>
    %247 = vector.extract_strided_slice %241 {offsets = [1, 0], sizes = [16, 16], strides = [1, 1]} : vector<22x16xf32> to vector<16x16xf32>
    %c11 = arith.constant 11 : index
    %248 = memref.load %arg8[%c11] : memref<147xf32, #tpu.memory_space<smem>>
    %249 = vector.broadcast %248 : f32 to vector<16x16xf32>
    %250 = arith.mulf %247, %249 : vector<16x16xf32>
    %251 = arith.addf %246, %250 : vector<16x16xf32>
    %252 = vector.extract_strided_slice %241 {offsets = [2, 0], sizes = [16, 16], strides = [1, 1]} : vector<22x16xf32> to vector<16x16xf32>
    %c18 = arith.constant 18 : index
    %253 = memref.load %arg8[%c18] : memref<147xf32, #tpu.memory_space<smem>>
    %254 = vector.broadcast %253 : f32 to vector<16x16xf32>
    %255 = arith.mulf %252, %254 : vector<16x16xf32>
    %256 = arith.addf %251, %255 : vector<16x16xf32>
    %257 = vector.extract_strided_slice %241 {offsets = [3, 0], sizes = [16, 16], strides = [1, 1]} : vector<22x16xf32> to vector<16x16xf32>
    %c25 = arith.constant 25 : index
    %258 = memref.load %arg8[%c25] : memref<147xf32, #tpu.memory_space<smem>>
    %259 = vector.broadcast %258 : f32 to vector<16x16xf32>
    %260 = arith.mulf %257, %259 : vector<16x16xf32>
    %261 = arith.addf %256, %260 : vector<16x16xf32>
    %262 = vector.extract_strided_slice %241 {offsets = [4, 0], sizes = [16, 16], strides = [1, 1]} : vector<22x16xf32> to vector<16x16xf32>
    %c32 = arith.constant 32 : index
    %263 = memref.load %arg8[%c32] : memref<147xf32, #tpu.memory_space<smem>>
    %264 = vector.broadcast %263 : f32 to vector<16x16xf32>
    %265 = arith.mulf %262, %264 : vector<16x16xf32>
    %266 = arith.addf %261, %265 : vector<16x16xf32>
    %267 = vector.extract_strided_slice %241 {offsets = [5, 0], sizes = [16, 16], strides = [1, 1]} : vector<22x16xf32> to vector<16x16xf32>
    %c39 = arith.constant 39 : index
    %268 = memref.load %arg8[%c39] : memref<147xf32, #tpu.memory_space<smem>>
    %269 = vector.broadcast %268 : f32 to vector<16x16xf32>
    %270 = arith.mulf %267, %269 : vector<16x16xf32>
    %271 = arith.addf %266, %270 : vector<16x16xf32>
    %272 = vector.extract_strided_slice %241 {offsets = [6, 0], sizes = [16, 16], strides = [1, 1]} : vector<22x16xf32> to vector<16x16xf32>
    %c46 = arith.constant 46 : index
    %273 = memref.load %arg8[%c46] : memref<147xf32, #tpu.memory_space<smem>>
    %274 = vector.broadcast %273 : f32 to vector<16x16xf32>
    %275 = arith.mulf %272, %274 : vector<16x16xf32>
    %276 = arith.addf %271, %275 : vector<16x16xf32>
    %277 = vector.extract_strided_slice %96 {offsets = [0, 5], sizes = [22, 16], strides = [1, 1]} : vector<22x22xf32> to vector<22x16xf32>
    %278 = vector.extract_strided_slice %277 {offsets = [0, 0], sizes = [16, 16], strides = [1, 1]} : vector<22x16xf32> to vector<16x16xf32>
    %c5 = arith.constant 5 : index
    %279 = memref.load %arg8[%c5] : memref<147xf32, #tpu.memory_space<smem>>
    %280 = vector.broadcast %279 : f32 to vector<16x16xf32>
    %281 = arith.mulf %278, %280 : vector<16x16xf32>
    %282 = arith.addf %276, %281 : vector<16x16xf32>
    %283 = vector.extract_strided_slice %277 {offsets = [1, 0], sizes = [16, 16], strides = [1, 1]} : vector<22x16xf32> to vector<16x16xf32>
    %c12 = arith.constant 12 : index
    %284 = memref.load %arg8[%c12] : memref<147xf32, #tpu.memory_space<smem>>
    %285 = vector.broadcast %284 : f32 to vector<16x16xf32>
    %286 = arith.mulf %283, %285 : vector<16x16xf32>
    %287 = arith.addf %282, %286 : vector<16x16xf32>
    %288 = vector.extract_strided_slice %277 {offsets = [2, 0], sizes = [16, 16], strides = [1, 1]} : vector<22x16xf32> to vector<16x16xf32>
    %c19_88 = arith.constant 19 : index
    %289 = memref.load %arg8[%c19_88] : memref<147xf32, #tpu.memory_space<smem>>
    %290 = vector.broadcast %289 : f32 to vector<16x16xf32>
    %291 = arith.mulf %288, %290 : vector<16x16xf32>
    %292 = arith.addf %287, %291 : vector<16x16xf32>
    %293 = vector.extract_strided_slice %277 {offsets = [3, 0], sizes = [16, 16], strides = [1, 1]} : vector<22x16xf32> to vector<16x16xf32>
    %c26 = arith.constant 26 : index
    %294 = memref.load %arg8[%c26] : memref<147xf32, #tpu.memory_space<smem>>
    %295 = vector.broadcast %294 : f32 to vector<16x16xf32>
    %296 = arith.mulf %293, %295 : vector<16x16xf32>
    %297 = arith.addf %292, %296 : vector<16x16xf32>
    %298 = vector.extract_strided_slice %277 {offsets = [4, 0], sizes = [16, 16], strides = [1, 1]} : vector<22x16xf32> to vector<16x16xf32>
    %c33 = arith.constant 33 : index
    %299 = memref.load %arg8[%c33] : memref<147xf32, #tpu.memory_space<smem>>
    %300 = vector.broadcast %299 : f32 to vector<16x16xf32>
    %301 = arith.mulf %298, %300 : vector<16x16xf32>
    %302 = arith.addf %297, %301 : vector<16x16xf32>
    %303 = vector.extract_strided_slice %277 {offsets = [5, 0], sizes = [16, 16], strides = [1, 1]} : vector<22x16xf32> to vector<16x16xf32>
    %c40 = arith.constant 40 : index
    %304 = memref.load %arg8[%c40] : memref<147xf32, #tpu.memory_space<smem>>
    %305 = vector.broadcast %304 : f32 to vector<16x16xf32>
    %306 = arith.mulf %303, %305 : vector<16x16xf32>
    %307 = arith.addf %302, %306 : vector<16x16xf32>
    %308 = vector.extract_strided_slice %277 {offsets = [6, 0], sizes = [16, 16], strides = [1, 1]} : vector<22x16xf32> to vector<16x16xf32>
    %c47 = arith.constant 47 : index
    %309 = memref.load %arg8[%c47] : memref<147xf32, #tpu.memory_space<smem>>
    %310 = vector.broadcast %309 : f32 to vector<16x16xf32>
    %311 = arith.mulf %308, %310 : vector<16x16xf32>
    %312 = arith.addf %307, %311 : vector<16x16xf32>
    %313 = vector.extract_strided_slice %96 {offsets = [0, 6], sizes = [22, 16], strides = [1, 1]} : vector<22x22xf32> to vector<22x16xf32>
    %314 = vector.extract_strided_slice %313 {offsets = [0, 0], sizes = [16, 16], strides = [1, 1]} : vector<22x16xf32> to vector<16x16xf32>
    %c6 = arith.constant 6 : index
    %315 = memref.load %arg8[%c6] : memref<147xf32, #tpu.memory_space<smem>>
    %316 = vector.broadcast %315 : f32 to vector<16x16xf32>
    %317 = arith.mulf %314, %316 : vector<16x16xf32>
    %318 = arith.addf %312, %317 : vector<16x16xf32>
    %319 = vector.extract_strided_slice %313 {offsets = [1, 0], sizes = [16, 16], strides = [1, 1]} : vector<22x16xf32> to vector<16x16xf32>
    %c13 = arith.constant 13 : index
    %320 = memref.load %arg8[%c13] : memref<147xf32, #tpu.memory_space<smem>>
    %321 = vector.broadcast %320 : f32 to vector<16x16xf32>
    %322 = arith.mulf %319, %321 : vector<16x16xf32>
    %323 = arith.addf %318, %322 : vector<16x16xf32>
    %324 = vector.extract_strided_slice %313 {offsets = [2, 0], sizes = [16, 16], strides = [1, 1]} : vector<22x16xf32> to vector<16x16xf32>
    %c20 = arith.constant 20 : index
    %325 = memref.load %arg8[%c20] : memref<147xf32, #tpu.memory_space<smem>>
    %326 = vector.broadcast %325 : f32 to vector<16x16xf32>
    %327 = arith.mulf %324, %326 : vector<16x16xf32>
    %328 = arith.addf %323, %327 : vector<16x16xf32>
    %329 = vector.extract_strided_slice %313 {offsets = [3, 0], sizes = [16, 16], strides = [1, 1]} : vector<22x16xf32> to vector<16x16xf32>
    %c27 = arith.constant 27 : index
    %330 = memref.load %arg8[%c27] : memref<147xf32, #tpu.memory_space<smem>>
    %331 = vector.broadcast %330 : f32 to vector<16x16xf32>
    %332 = arith.mulf %329, %331 : vector<16x16xf32>
    %333 = arith.addf %328, %332 : vector<16x16xf32>
    %334 = vector.extract_strided_slice %313 {offsets = [4, 0], sizes = [16, 16], strides = [1, 1]} : vector<22x16xf32> to vector<16x16xf32>
    %c34 = arith.constant 34 : index
    %335 = memref.load %arg8[%c34] : memref<147xf32, #tpu.memory_space<smem>>
    %336 = vector.broadcast %335 : f32 to vector<16x16xf32>
    %337 = arith.mulf %334, %336 : vector<16x16xf32>
    %338 = arith.addf %333, %337 : vector<16x16xf32>
    %339 = vector.extract_strided_slice %313 {offsets = [5, 0], sizes = [16, 16], strides = [1, 1]} : vector<22x16xf32> to vector<16x16xf32>
    %c41 = arith.constant 41 : index
    %340 = memref.load %arg8[%c41] : memref<147xf32, #tpu.memory_space<smem>>
    %341 = vector.broadcast %340 : f32 to vector<16x16xf32>
    %342 = arith.mulf %339, %341 : vector<16x16xf32>
    %343 = arith.addf %338, %342 : vector<16x16xf32>
    %344 = vector.extract_strided_slice %313 {offsets = [6, 0], sizes = [16, 16], strides = [1, 1]} : vector<22x16xf32> to vector<16x16xf32>
    %c48 = arith.constant 48 : index
    %345 = memref.load %arg8[%c48] : memref<147xf32, #tpu.memory_space<smem>>
    %346 = vector.broadcast %345 : f32 to vector<16x16xf32>
    %347 = arith.mulf %344, %346 : vector<16x16xf32>
    %348 = arith.addf %343, %347 : vector<16x16xf32>
    %c1_89 = arith.constant 1 : index
    %c0_90 = arith.constant 0 : index
    %c0_91 = arith.constant 0 : index
    %349 = vector.load %arg11[%c1_89, %c0_90, %c0_91] : memref<3x22x22xf32, #tpu.memory_space<vmem>>, vector<1x22x22xf32>
    %350 = vector.shape_cast %349 : vector<1x22x22xf32> to vector<22x22xf32>
    %351 = vector.extract_strided_slice %350 {offsets = [0, 0], sizes = [22, 16], strides = [1, 1]} : vector<22x22xf32> to vector<22x16xf32>
    %352 = vector.extract_strided_slice %351 {offsets = [0, 0], sizes = [16, 16], strides = [1, 1]} : vector<22x16xf32> to vector<16x16xf32>
    %c49 = arith.constant 49 : index
    %353 = memref.load %arg8[%c49] : memref<147xf32, #tpu.memory_space<smem>>
    %354 = vector.broadcast %353 : f32 to vector<16x16xf32>
    %355 = arith.mulf %352, %354 : vector<16x16xf32>
    %356 = arith.addf %93, %355 : vector<16x16xf32>
    %357 = vector.extract_strided_slice %351 {offsets = [1, 0], sizes = [16, 16], strides = [1, 1]} : vector<22x16xf32> to vector<16x16xf32>
    %c56 = arith.constant 56 : index
    %358 = memref.load %arg8[%c56] : memref<147xf32, #tpu.memory_space<smem>>
    %359 = vector.broadcast %358 : f32 to vector<16x16xf32>
    %360 = arith.mulf %357, %359 : vector<16x16xf32>
    %361 = arith.addf %356, %360 : vector<16x16xf32>
    %362 = vector.extract_strided_slice %351 {offsets = [2, 0], sizes = [16, 16], strides = [1, 1]} : vector<22x16xf32> to vector<16x16xf32>
    %c63 = arith.constant 63 : index
    %363 = memref.load %arg8[%c63] : memref<147xf32, #tpu.memory_space<smem>>
    %364 = vector.broadcast %363 : f32 to vector<16x16xf32>
    %365 = arith.mulf %362, %364 : vector<16x16xf32>
    %366 = arith.addf %361, %365 : vector<16x16xf32>
    %367 = vector.extract_strided_slice %351 {offsets = [3, 0], sizes = [16, 16], strides = [1, 1]} : vector<22x16xf32> to vector<16x16xf32>
    %c70 = arith.constant 70 : index
    %368 = memref.load %arg8[%c70] : memref<147xf32, #tpu.memory_space<smem>>
    %369 = vector.broadcast %368 : f32 to vector<16x16xf32>
    %370 = arith.mulf %367, %369 : vector<16x16xf32>
    %371 = arith.addf %366, %370 : vector<16x16xf32>
    %372 = vector.extract_strided_slice %351 {offsets = [4, 0], sizes = [16, 16], strides = [1, 1]} : vector<22x16xf32> to vector<16x16xf32>
    %c77 = arith.constant 77 : index
    %373 = memref.load %arg8[%c77] : memref<147xf32, #tpu.memory_space<smem>>
    %374 = vector.broadcast %373 : f32 to vector<16x16xf32>
    %375 = arith.mulf %372, %374 : vector<16x16xf32>
    %376 = arith.addf %371, %375 : vector<16x16xf32>
    %377 = vector.extract_strided_slice %351 {offsets = [5, 0], sizes = [16, 16], strides = [1, 1]} : vector<22x16xf32> to vector<16x16xf32>
    %c84 = arith.constant 84 : index
    %378 = memref.load %arg8[%c84] : memref<147xf32, #tpu.memory_space<smem>>
    %379 = vector.broadcast %378 : f32 to vector<16x16xf32>
    %380 = arith.mulf %377, %379 : vector<16x16xf32>
    %381 = arith.addf %376, %380 : vector<16x16xf32>
    %382 = vector.extract_strided_slice %351 {offsets = [6, 0], sizes = [16, 16], strides = [1, 1]} : vector<22x16xf32> to vector<16x16xf32>
    %c91 = arith.constant 91 : index
    %383 = memref.load %arg8[%c91] : memref<147xf32, #tpu.memory_space<smem>>
    %384 = vector.broadcast %383 : f32 to vector<16x16xf32>
    %385 = arith.mulf %382, %384 : vector<16x16xf32>
    %386 = arith.addf %381, %385 : vector<16x16xf32>
    %387 = vector.extract_strided_slice %350 {offsets = [0, 1], sizes = [22, 16], strides = [1, 1]} : vector<22x22xf32> to vector<22x16xf32>
    %388 = vector.extract_strided_slice %387 {offsets = [0, 0], sizes = [16, 16], strides = [1, 1]} : vector<22x16xf32> to vector<16x16xf32>
    %c50 = arith.constant 50 : index
    %389 = memref.load %arg8[%c50] : memref<147xf32, #tpu.memory_space<smem>>
    %390 = vector.broadcast %389 : f32 to vector<16x16xf32>
    %391 = arith.mulf %388, %390 : vector<16x16xf32>
    %392 = arith.addf %386, %391 : vector<16x16xf32>
    %393 = vector.extract_strided_slice %387 {offsets = [1, 0], sizes = [16, 16], strides = [1, 1]} : vector<22x16xf32> to vector<16x16xf32>
    %c57 = arith.constant 57 : index
    %394 = memref.load %arg8[%c57] : memref<147xf32, #tpu.memory_space<smem>>
    %395 = vector.broadcast %394 : f32 to vector<16x16xf32>
    %396 = arith.mulf %393, %395 : vector<16x16xf32>
    %397 = arith.addf %392, %396 : vector<16x16xf32>
    %398 = vector.extract_strided_slice %387 {offsets = [2, 0], sizes = [16, 16], strides = [1, 1]} : vector<22x16xf32> to vector<16x16xf32>
    %c64 = arith.constant 64 : index
    %399 = memref.load %arg8[%c64] : memref<147xf32, #tpu.memory_space<smem>>
    %400 = vector.broadcast %399 : f32 to vector<16x16xf32>
    %401 = arith.mulf %398, %400 : vector<16x16xf32>
    %402 = arith.addf %397, %401 : vector<16x16xf32>
    %403 = vector.extract_strided_slice %387 {offsets = [3, 0], sizes = [16, 16], strides = [1, 1]} : vector<22x16xf32> to vector<16x16xf32>
    %c71 = arith.constant 71 : index
    %404 = memref.load %arg8[%c71] : memref<147xf32, #tpu.memory_space<smem>>
    %405 = vector.broadcast %404 : f32 to vector<16x16xf32>
    %406 = arith.mulf %403, %405 : vector<16x16xf32>
    %407 = arith.addf %402, %406 : vector<16x16xf32>
    %408 = vector.extract_strided_slice %387 {offsets = [4, 0], sizes = [16, 16], strides = [1, 1]} : vector<22x16xf32> to vector<16x16xf32>
    %c78 = arith.constant 78 : index
    %409 = memref.load %arg8[%c78] : memref<147xf32, #tpu.memory_space<smem>>
    %410 = vector.broadcast %409 : f32 to vector<16x16xf32>
    %411 = arith.mulf %408, %410 : vector<16x16xf32>
    %412 = arith.addf %407, %411 : vector<16x16xf32>
    %413 = vector.extract_strided_slice %387 {offsets = [5, 0], sizes = [16, 16], strides = [1, 1]} : vector<22x16xf32> to vector<16x16xf32>
    %c85 = arith.constant 85 : index
    %414 = memref.load %arg8[%c85] : memref<147xf32, #tpu.memory_space<smem>>
    %415 = vector.broadcast %414 : f32 to vector<16x16xf32>
    %416 = arith.mulf %413, %415 : vector<16x16xf32>
    %417 = arith.addf %412, %416 : vector<16x16xf32>
    %418 = vector.extract_strided_slice %387 {offsets = [6, 0], sizes = [16, 16], strides = [1, 1]} : vector<22x16xf32> to vector<16x16xf32>
    %c92 = arith.constant 92 : index
    %419 = memref.load %arg8[%c92] : memref<147xf32, #tpu.memory_space<smem>>
    %420 = vector.broadcast %419 : f32 to vector<16x16xf32>
    %421 = arith.mulf %418, %420 : vector<16x16xf32>
    %422 = arith.addf %417, %421 : vector<16x16xf32>
    %423 = vector.extract_strided_slice %350 {offsets = [0, 2], sizes = [22, 16], strides = [1, 1]} : vector<22x22xf32> to vector<22x16xf32>
    %424 = vector.extract_strided_slice %423 {offsets = [0, 0], sizes = [16, 16], strides = [1, 1]} : vector<22x16xf32> to vector<16x16xf32>
    %c51 = arith.constant 51 : index
    %425 = memref.load %arg8[%c51] : memref<147xf32, #tpu.memory_space<smem>>
    %426 = vector.broadcast %425 : f32 to vector<16x16xf32>
    %427 = arith.mulf %424, %426 : vector<16x16xf32>
    %428 = arith.addf %422, %427 : vector<16x16xf32>
    %429 = vector.extract_strided_slice %423 {offsets = [1, 0], sizes = [16, 16], strides = [1, 1]} : vector<22x16xf32> to vector<16x16xf32>
    %c58 = arith.constant 58 : index
    %430 = memref.load %arg8[%c58] : memref<147xf32, #tpu.memory_space<smem>>
    %431 = vector.broadcast %430 : f32 to vector<16x16xf32>
    %432 = arith.mulf %429, %431 : vector<16x16xf32>
    %433 = arith.addf %428, %432 : vector<16x16xf32>
    %434 = vector.extract_strided_slice %423 {offsets = [2, 0], sizes = [16, 16], strides = [1, 1]} : vector<22x16xf32> to vector<16x16xf32>
    %c65 = arith.constant 65 : index
    %435 = memref.load %arg8[%c65] : memref<147xf32, #tpu.memory_space<smem>>
    %436 = vector.broadcast %435 : f32 to vector<16x16xf32>
    %437 = arith.mulf %434, %436 : vector<16x16xf32>
    %438 = arith.addf %433, %437 : vector<16x16xf32>
    %439 = vector.extract_strided_slice %423 {offsets = [3, 0], sizes = [16, 16], strides = [1, 1]} : vector<22x16xf32> to vector<16x16xf32>
    %c72 = arith.constant 72 : index
    %440 = memref.load %arg8[%c72] : memref<147xf32, #tpu.memory_space<smem>>
    %441 = vector.broadcast %440 : f32 to vector<16x16xf32>
    %442 = arith.mulf %439, %441 : vector<16x16xf32>
    %443 = arith.addf %438, %442 : vector<16x16xf32>
    %444 = vector.extract_strided_slice %423 {offsets = [4, 0], sizes = [16, 16], strides = [1, 1]} : vector<22x16xf32> to vector<16x16xf32>
    %c79 = arith.constant 79 : index
    %445 = memref.load %arg8[%c79] : memref<147xf32, #tpu.memory_space<smem>>
    %446 = vector.broadcast %445 : f32 to vector<16x16xf32>
    %447 = arith.mulf %444, %446 : vector<16x16xf32>
    %448 = arith.addf %443, %447 : vector<16x16xf32>
    %449 = vector.extract_strided_slice %423 {offsets = [5, 0], sizes = [16, 16], strides = [1, 1]} : vector<22x16xf32> to vector<16x16xf32>
    %c86 = arith.constant 86 : index
    %450 = memref.load %arg8[%c86] : memref<147xf32, #tpu.memory_space<smem>>
    %451 = vector.broadcast %450 : f32 to vector<16x16xf32>
    %452 = arith.mulf %449, %451 : vector<16x16xf32>
    %453 = arith.addf %448, %452 : vector<16x16xf32>
    %454 = vector.extract_strided_slice %423 {offsets = [6, 0], sizes = [16, 16], strides = [1, 1]} : vector<22x16xf32> to vector<16x16xf32>
    %c93 = arith.constant 93 : index
    %455 = memref.load %arg8[%c93] : memref<147xf32, #tpu.memory_space<smem>>
    %456 = vector.broadcast %455 : f32 to vector<16x16xf32>
    %457 = arith.mulf %454, %456 : vector<16x16xf32>
    %458 = arith.addf %453, %457 : vector<16x16xf32>
    %459 = vector.extract_strided_slice %350 {offsets = [0, 3], sizes = [22, 16], strides = [1, 1]} : vector<22x22xf32> to vector<22x16xf32>
    %460 = vector.extract_strided_slice %459 {offsets = [0, 0], sizes = [16, 16], strides = [1, 1]} : vector<22x16xf32> to vector<16x16xf32>
    %c52 = arith.constant 52 : index
    %461 = memref.load %arg8[%c52] : memref<147xf32, #tpu.memory_space<smem>>
    %462 = vector.broadcast %461 : f32 to vector<16x16xf32>
    %463 = arith.mulf %460, %462 : vector<16x16xf32>
    %464 = arith.addf %458, %463 : vector<16x16xf32>
    %465 = vector.extract_strided_slice %459 {offsets = [1, 0], sizes = [16, 16], strides = [1, 1]} : vector<22x16xf32> to vector<16x16xf32>
    %c59 = arith.constant 59 : index
    %466 = memref.load %arg8[%c59] : memref<147xf32, #tpu.memory_space<smem>>
    %467 = vector.broadcast %466 : f32 to vector<16x16xf32>
    %468 = arith.mulf %465, %467 : vector<16x16xf32>
    %469 = arith.addf %464, %468 : vector<16x16xf32>
    %470 = vector.extract_strided_slice %459 {offsets = [2, 0], sizes = [16, 16], strides = [1, 1]} : vector<22x16xf32> to vector<16x16xf32>
    %c66 = arith.constant 66 : index
    %471 = memref.load %arg8[%c66] : memref<147xf32, #tpu.memory_space<smem>>
    %472 = vector.broadcast %471 : f32 to vector<16x16xf32>
    %473 = arith.mulf %470, %472 : vector<16x16xf32>
    %474 = arith.addf %469, %473 : vector<16x16xf32>
    %475 = vector.extract_strided_slice %459 {offsets = [3, 0], sizes = [16, 16], strides = [1, 1]} : vector<22x16xf32> to vector<16x16xf32>
    %c73 = arith.constant 73 : index
    %476 = memref.load %arg8[%c73] : memref<147xf32, #tpu.memory_space<smem>>
    %477 = vector.broadcast %476 : f32 to vector<16x16xf32>
    %478 = arith.mulf %475, %477 : vector<16x16xf32>
    %479 = arith.addf %474, %478 : vector<16x16xf32>
    %480 = vector.extract_strided_slice %459 {offsets = [4, 0], sizes = [16, 16], strides = [1, 1]} : vector<22x16xf32> to vector<16x16xf32>
    %c80 = arith.constant 80 : index
    %481 = memref.load %arg8[%c80] : memref<147xf32, #tpu.memory_space<smem>>
    %482 = vector.broadcast %481 : f32 to vector<16x16xf32>
    %483 = arith.mulf %480, %482 : vector<16x16xf32>
    %484 = arith.addf %479, %483 : vector<16x16xf32>
    %485 = vector.extract_strided_slice %459 {offsets = [5, 0], sizes = [16, 16], strides = [1, 1]} : vector<22x16xf32> to vector<16x16xf32>
    %c87 = arith.constant 87 : index
    %486 = memref.load %arg8[%c87] : memref<147xf32, #tpu.memory_space<smem>>
    %487 = vector.broadcast %486 : f32 to vector<16x16xf32>
    %488 = arith.mulf %485, %487 : vector<16x16xf32>
    %489 = arith.addf %484, %488 : vector<16x16xf32>
    %490 = vector.extract_strided_slice %459 {offsets = [6, 0], sizes = [16, 16], strides = [1, 1]} : vector<22x16xf32> to vector<16x16xf32>
    %c94 = arith.constant 94 : index
    %491 = memref.load %arg8[%c94] : memref<147xf32, #tpu.memory_space<smem>>
    %492 = vector.broadcast %491 : f32 to vector<16x16xf32>
    %493 = arith.mulf %490, %492 : vector<16x16xf32>
    %494 = arith.addf %489, %493 : vector<16x16xf32>
    %495 = vector.extract_strided_slice %350 {offsets = [0, 4], sizes = [22, 16], strides = [1, 1]} : vector<22x22xf32> to vector<22x16xf32>
    %496 = vector.extract_strided_slice %495 {offsets = [0, 0], sizes = [16, 16], strides = [1, 1]} : vector<22x16xf32> to vector<16x16xf32>
    %c53 = arith.constant 53 : index
    %497 = memref.load %arg8[%c53] : memref<147xf32, #tpu.memory_space<smem>>
    %498 = vector.broadcast %497 : f32 to vector<16x16xf32>
    %499 = arith.mulf %496, %498 : vector<16x16xf32>
    %500 = arith.addf %494, %499 : vector<16x16xf32>
    %501 = vector.extract_strided_slice %495 {offsets = [1, 0], sizes = [16, 16], strides = [1, 1]} : vector<22x16xf32> to vector<16x16xf32>
    %c60 = arith.constant 60 : index
    %502 = memref.load %arg8[%c60] : memref<147xf32, #tpu.memory_space<smem>>
    %503 = vector.broadcast %502 : f32 to vector<16x16xf32>
    %504 = arith.mulf %501, %503 : vector<16x16xf32>
    %505 = arith.addf %500, %504 : vector<16x16xf32>
    %506 = vector.extract_strided_slice %495 {offsets = [2, 0], sizes = [16, 16], strides = [1, 1]} : vector<22x16xf32> to vector<16x16xf32>
    %c67 = arith.constant 67 : index
    %507 = memref.load %arg8[%c67] : memref<147xf32, #tpu.memory_space<smem>>
    %508 = vector.broadcast %507 : f32 to vector<16x16xf32>
    %509 = arith.mulf %506, %508 : vector<16x16xf32>
    %510 = arith.addf %505, %509 : vector<16x16xf32>
    %511 = vector.extract_strided_slice %495 {offsets = [3, 0], sizes = [16, 16], strides = [1, 1]} : vector<22x16xf32> to vector<16x16xf32>
    %c74 = arith.constant 74 : index
    %512 = memref.load %arg8[%c74] : memref<147xf32, #tpu.memory_space<smem>>
    %513 = vector.broadcast %512 : f32 to vector<16x16xf32>
    %514 = arith.mulf %511, %513 : vector<16x16xf32>
    %515 = arith.addf %510, %514 : vector<16x16xf32>
    %516 = vector.extract_strided_slice %495 {offsets = [4, 0], sizes = [16, 16], strides = [1, 1]} : vector<22x16xf32> to vector<16x16xf32>
    %c81 = arith.constant 81 : index
    %517 = memref.load %arg8[%c81] : memref<147xf32, #tpu.memory_space<smem>>
    %518 = vector.broadcast %517 : f32 to vector<16x16xf32>
    %519 = arith.mulf %516, %518 : vector<16x16xf32>
    %520 = arith.addf %515, %519 : vector<16x16xf32>
    %521 = vector.extract_strided_slice %495 {offsets = [5, 0], sizes = [16, 16], strides = [1, 1]} : vector<22x16xf32> to vector<16x16xf32>
    %c88 = arith.constant 88 : index
    %522 = memref.load %arg8[%c88] : memref<147xf32, #tpu.memory_space<smem>>
    %523 = vector.broadcast %522 : f32 to vector<16x16xf32>
    %524 = arith.mulf %521, %523 : vector<16x16xf32>
    %525 = arith.addf %520, %524 : vector<16x16xf32>
    %526 = vector.extract_strided_slice %495 {offsets = [6, 0], sizes = [16, 16], strides = [1, 1]} : vector<22x16xf32> to vector<16x16xf32>
    %c95 = arith.constant 95 : index
    %527 = memref.load %arg8[%c95] : memref<147xf32, #tpu.memory_space<smem>>
    %528 = vector.broadcast %527 : f32 to vector<16x16xf32>
    %529 = arith.mulf %526, %528 : vector<16x16xf32>
    %530 = arith.addf %525, %529 : vector<16x16xf32>
    %531 = vector.extract_strided_slice %350 {offsets = [0, 5], sizes = [22, 16], strides = [1, 1]} : vector<22x22xf32> to vector<22x16xf32>
    %532 = vector.extract_strided_slice %531 {offsets = [0, 0], sizes = [16, 16], strides = [1, 1]} : vector<22x16xf32> to vector<16x16xf32>
    %c54 = arith.constant 54 : index
    %533 = memref.load %arg8[%c54] : memref<147xf32, #tpu.memory_space<smem>>
    %534 = vector.broadcast %533 : f32 to vector<16x16xf32>
    %535 = arith.mulf %532, %534 : vector<16x16xf32>
    %536 = arith.addf %530, %535 : vector<16x16xf32>
    %537 = vector.extract_strided_slice %531 {offsets = [1, 0], sizes = [16, 16], strides = [1, 1]} : vector<22x16xf32> to vector<16x16xf32>
    %c61 = arith.constant 61 : index
    %538 = memref.load %arg8[%c61] : memref<147xf32, #tpu.memory_space<smem>>
    %539 = vector.broadcast %538 : f32 to vector<16x16xf32>
    %540 = arith.mulf %537, %539 : vector<16x16xf32>
    %541 = arith.addf %536, %540 : vector<16x16xf32>
    %542 = vector.extract_strided_slice %531 {offsets = [2, 0], sizes = [16, 16], strides = [1, 1]} : vector<22x16xf32> to vector<16x16xf32>
    %c68 = arith.constant 68 : index
    %543 = memref.load %arg8[%c68] : memref<147xf32, #tpu.memory_space<smem>>
    %544 = vector.broadcast %543 : f32 to vector<16x16xf32>
    %545 = arith.mulf %542, %544 : vector<16x16xf32>
    %546 = arith.addf %541, %545 : vector<16x16xf32>
    %547 = vector.extract_strided_slice %531 {offsets = [3, 0], sizes = [16, 16], strides = [1, 1]} : vector<22x16xf32> to vector<16x16xf32>
    %c75 = arith.constant 75 : index
    %548 = memref.load %arg8[%c75] : memref<147xf32, #tpu.memory_space<smem>>
    %549 = vector.broadcast %548 : f32 to vector<16x16xf32>
    %550 = arith.mulf %547, %549 : vector<16x16xf32>
    %551 = arith.addf %546, %550 : vector<16x16xf32>
    %552 = vector.extract_strided_slice %531 {offsets = [4, 0], sizes = [16, 16], strides = [1, 1]} : vector<22x16xf32> to vector<16x16xf32>
    %c82 = arith.constant 82 : index
    %553 = memref.load %arg8[%c82] : memref<147xf32, #tpu.memory_space<smem>>
    %554 = vector.broadcast %553 : f32 to vector<16x16xf32>
    %555 = arith.mulf %552, %554 : vector<16x16xf32>
    %556 = arith.addf %551, %555 : vector<16x16xf32>
    %557 = vector.extract_strided_slice %531 {offsets = [5, 0], sizes = [16, 16], strides = [1, 1]} : vector<22x16xf32> to vector<16x16xf32>
    %c89 = arith.constant 89 : index
    %558 = memref.load %arg8[%c89] : memref<147xf32, #tpu.memory_space<smem>>
    %559 = vector.broadcast %558 : f32 to vector<16x16xf32>
    %560 = arith.mulf %557, %559 : vector<16x16xf32>
    %561 = arith.addf %556, %560 : vector<16x16xf32>
    %562 = vector.extract_strided_slice %531 {offsets = [6, 0], sizes = [16, 16], strides = [1, 1]} : vector<22x16xf32> to vector<16x16xf32>
    %c96 = arith.constant 96 : index
    %563 = memref.load %arg8[%c96] : memref<147xf32, #tpu.memory_space<smem>>
    %564 = vector.broadcast %563 : f32 to vector<16x16xf32>
    %565 = arith.mulf %562, %564 : vector<16x16xf32>
    %566 = arith.addf %561, %565 : vector<16x16xf32>
    %567 = vector.extract_strided_slice %350 {offsets = [0, 6], sizes = [22, 16], strides = [1, 1]} : vector<22x22xf32> to vector<22x16xf32>
    %568 = vector.extract_strided_slice %567 {offsets = [0, 0], sizes = [16, 16], strides = [1, 1]} : vector<22x16xf32> to vector<16x16xf32>
    %c55 = arith.constant 55 : index
    %569 = memref.load %arg8[%c55] : memref<147xf32, #tpu.memory_space<smem>>
    %570 = vector.broadcast %569 : f32 to vector<16x16xf32>
    %571 = arith.mulf %568, %570 : vector<16x16xf32>
    %572 = arith.addf %566, %571 : vector<16x16xf32>
    %573 = vector.extract_strided_slice %567 {offsets = [1, 0], sizes = [16, 16], strides = [1, 1]} : vector<22x16xf32> to vector<16x16xf32>
    %c62 = arith.constant 62 : index
    %574 = memref.load %arg8[%c62] : memref<147xf32, #tpu.memory_space<smem>>
    %575 = vector.broadcast %574 : f32 to vector<16x16xf32>
    %576 = arith.mulf %573, %575 : vector<16x16xf32>
    %577 = arith.addf %572, %576 : vector<16x16xf32>
    %578 = vector.extract_strided_slice %567 {offsets = [2, 0], sizes = [16, 16], strides = [1, 1]} : vector<22x16xf32> to vector<16x16xf32>
    %c69 = arith.constant 69 : index
    %579 = memref.load %arg8[%c69] : memref<147xf32, #tpu.memory_space<smem>>
    %580 = vector.broadcast %579 : f32 to vector<16x16xf32>
    %581 = arith.mulf %578, %580 : vector<16x16xf32>
    %582 = arith.addf %577, %581 : vector<16x16xf32>
    %583 = vector.extract_strided_slice %567 {offsets = [3, 0], sizes = [16, 16], strides = [1, 1]} : vector<22x16xf32> to vector<16x16xf32>
    %c76 = arith.constant 76 : index
    %584 = memref.load %arg8[%c76] : memref<147xf32, #tpu.memory_space<smem>>
    %585 = vector.broadcast %584 : f32 to vector<16x16xf32>
    %586 = arith.mulf %583, %585 : vector<16x16xf32>
    %587 = arith.addf %582, %586 : vector<16x16xf32>
    %588 = vector.extract_strided_slice %567 {offsets = [4, 0], sizes = [16, 16], strides = [1, 1]} : vector<22x16xf32> to vector<16x16xf32>
    %c83 = arith.constant 83 : index
    %589 = memref.load %arg8[%c83] : memref<147xf32, #tpu.memory_space<smem>>
    %590 = vector.broadcast %589 : f32 to vector<16x16xf32>
    %591 = arith.mulf %588, %590 : vector<16x16xf32>
    %592 = arith.addf %587, %591 : vector<16x16xf32>
    %593 = vector.extract_strided_slice %567 {offsets = [5, 0], sizes = [16, 16], strides = [1, 1]} : vector<22x16xf32> to vector<16x16xf32>
    %c90 = arith.constant 90 : index
    %594 = memref.load %arg8[%c90] : memref<147xf32, #tpu.memory_space<smem>>
    %595 = vector.broadcast %594 : f32 to vector<16x16xf32>
    %596 = arith.mulf %593, %595 : vector<16x16xf32>
    %597 = arith.addf %592, %596 : vector<16x16xf32>
    %598 = vector.extract_strided_slice %567 {offsets = [6, 0], sizes = [16, 16], strides = [1, 1]} : vector<22x16xf32> to vector<16x16xf32>
    %c97 = arith.constant 97 : index
    %599 = memref.load %arg8[%c97] : memref<147xf32, #tpu.memory_space<smem>>
    %600 = vector.broadcast %599 : f32 to vector<16x16xf32>
    %601 = arith.mulf %598, %600 : vector<16x16xf32>
    %602 = arith.addf %597, %601 : vector<16x16xf32>
    %c2_92 = arith.constant 2 : index
    %c0_93 = arith.constant 0 : index
    %c0_94 = arith.constant 0 : index
    %603 = vector.load %arg11[%c2_92, %c0_93, %c0_94] : memref<3x22x22xf32, #tpu.memory_space<vmem>>, vector<1x22x22xf32>
    %604 = vector.shape_cast %603 : vector<1x22x22xf32> to vector<22x22xf32>
    %605 = vector.extract_strided_slice %604 {offsets = [0, 0], sizes = [22, 16], strides = [1, 1]} : vector<22x22xf32> to vector<22x16xf32>
    %606 = vector.extract_strided_slice %605 {offsets = [0, 0], sizes = [16, 16], strides = [1, 1]} : vector<22x16xf32> to vector<16x16xf32>
    %c98 = arith.constant 98 : index
    %607 = memref.load %arg8[%c98] : memref<147xf32, #tpu.memory_space<smem>>
    %608 = vector.broadcast %607 : f32 to vector<16x16xf32>
    %609 = arith.mulf %606, %608 : vector<16x16xf32>
    %610 = arith.addf %94, %609 : vector<16x16xf32>
    %611 = vector.extract_strided_slice %605 {offsets = [1, 0], sizes = [16, 16], strides = [1, 1]} : vector<22x16xf32> to vector<16x16xf32>
    %c105 = arith.constant 105 : index
    %612 = memref.load %arg8[%c105] : memref<147xf32, #tpu.memory_space<smem>>
    %613 = vector.broadcast %612 : f32 to vector<16x16xf32>
    %614 = arith.mulf %611, %613 : vector<16x16xf32>
    %615 = arith.addf %610, %614 : vector<16x16xf32>
    %616 = vector.extract_strided_slice %605 {offsets = [2, 0], sizes = [16, 16], strides = [1, 1]} : vector<22x16xf32> to vector<16x16xf32>
    %c112 = arith.constant 112 : index
    %617 = memref.load %arg8[%c112] : memref<147xf32, #tpu.memory_space<smem>>
    %618 = vector.broadcast %617 : f32 to vector<16x16xf32>
    %619 = arith.mulf %616, %618 : vector<16x16xf32>
    %620 = arith.addf %615, %619 : vector<16x16xf32>
    %621 = vector.extract_strided_slice %605 {offsets = [3, 0], sizes = [16, 16], strides = [1, 1]} : vector<22x16xf32> to vector<16x16xf32>
    %c119 = arith.constant 119 : index
    %622 = memref.load %arg8[%c119] : memref<147xf32, #tpu.memory_space<smem>>
    %623 = vector.broadcast %622 : f32 to vector<16x16xf32>
    %624 = arith.mulf %621, %623 : vector<16x16xf32>
    %625 = arith.addf %620, %624 : vector<16x16xf32>
    %626 = vector.extract_strided_slice %605 {offsets = [4, 0], sizes = [16, 16], strides = [1, 1]} : vector<22x16xf32> to vector<16x16xf32>
    %c126 = arith.constant 126 : index
    %627 = memref.load %arg8[%c126] : memref<147xf32, #tpu.memory_space<smem>>
    %628 = vector.broadcast %627 : f32 to vector<16x16xf32>
    %629 = arith.mulf %626, %628 : vector<16x16xf32>
    %630 = arith.addf %625, %629 : vector<16x16xf32>
    %631 = vector.extract_strided_slice %605 {offsets = [5, 0], sizes = [16, 16], strides = [1, 1]} : vector<22x16xf32> to vector<16x16xf32>
    %c133 = arith.constant 133 : index
    %632 = memref.load %arg8[%c133] : memref<147xf32, #tpu.memory_space<smem>>
    %633 = vector.broadcast %632 : f32 to vector<16x16xf32>
    %634 = arith.mulf %631, %633 : vector<16x16xf32>
    %635 = arith.addf %630, %634 : vector<16x16xf32>
    %636 = vector.extract_strided_slice %605 {offsets = [6, 0], sizes = [16, 16], strides = [1, 1]} : vector<22x16xf32> to vector<16x16xf32>
    %c140 = arith.constant 140 : index
    %637 = memref.load %arg8[%c140] : memref<147xf32, #tpu.memory_space<smem>>
    %638 = vector.broadcast %637 : f32 to vector<16x16xf32>
    %639 = arith.mulf %636, %638 : vector<16x16xf32>
    %640 = arith.addf %635, %639 : vector<16x16xf32>
    %641 = vector.extract_strided_slice %604 {offsets = [0, 1], sizes = [22, 16], strides = [1, 1]} : vector<22x22xf32> to vector<22x16xf32>
    %642 = vector.extract_strided_slice %641 {offsets = [0, 0], sizes = [16, 16], strides = [1, 1]} : vector<22x16xf32> to vector<16x16xf32>
    %c99 = arith.constant 99 : index
    %643 = memref.load %arg8[%c99] : memref<147xf32, #tpu.memory_space<smem>>
    %644 = vector.broadcast %643 : f32 to vector<16x16xf32>
    %645 = arith.mulf %642, %644 : vector<16x16xf32>
    %646 = arith.addf %640, %645 : vector<16x16xf32>
    %647 = vector.extract_strided_slice %641 {offsets = [1, 0], sizes = [16, 16], strides = [1, 1]} : vector<22x16xf32> to vector<16x16xf32>
    %c106 = arith.constant 106 : index
    %648 = memref.load %arg8[%c106] : memref<147xf32, #tpu.memory_space<smem>>
    %649 = vector.broadcast %648 : f32 to vector<16x16xf32>
    %650 = arith.mulf %647, %649 : vector<16x16xf32>
    %651 = arith.addf %646, %650 : vector<16x16xf32>
    %652 = vector.extract_strided_slice %641 {offsets = [2, 0], sizes = [16, 16], strides = [1, 1]} : vector<22x16xf32> to vector<16x16xf32>
    %c113 = arith.constant 113 : index
    %653 = memref.load %arg8[%c113] : memref<147xf32, #tpu.memory_space<smem>>
    %654 = vector.broadcast %653 : f32 to vector<16x16xf32>
    %655 = arith.mulf %652, %654 : vector<16x16xf32>
    %656 = arith.addf %651, %655 : vector<16x16xf32>
    %657 = vector.extract_strided_slice %641 {offsets = [3, 0], sizes = [16, 16], strides = [1, 1]} : vector<22x16xf32> to vector<16x16xf32>
    %c120 = arith.constant 120 : index
    %658 = memref.load %arg8[%c120] : memref<147xf32, #tpu.memory_space<smem>>
    %659 = vector.broadcast %658 : f32 to vector<16x16xf32>
    %660 = arith.mulf %657, %659 : vector<16x16xf32>
    %661 = arith.addf %656, %660 : vector<16x16xf32>
    %662 = vector.extract_strided_slice %641 {offsets = [4, 0], sizes = [16, 16], strides = [1, 1]} : vector<22x16xf32> to vector<16x16xf32>
    %c127 = arith.constant 127 : index
    %663 = memref.load %arg8[%c127] : memref<147xf32, #tpu.memory_space<smem>>
    %664 = vector.broadcast %663 : f32 to vector<16x16xf32>
    %665 = arith.mulf %662, %664 : vector<16x16xf32>
    %666 = arith.addf %661, %665 : vector<16x16xf32>
    %667 = vector.extract_strided_slice %641 {offsets = [5, 0], sizes = [16, 16], strides = [1, 1]} : vector<22x16xf32> to vector<16x16xf32>
    %c134 = arith.constant 134 : index
    %668 = memref.load %arg8[%c134] : memref<147xf32, #tpu.memory_space<smem>>
    %669 = vector.broadcast %668 : f32 to vector<16x16xf32>
    %670 = arith.mulf %667, %669 : vector<16x16xf32>
    %671 = arith.addf %666, %670 : vector<16x16xf32>
    %672 = vector.extract_strided_slice %641 {offsets = [6, 0], sizes = [16, 16], strides = [1, 1]} : vector<22x16xf32> to vector<16x16xf32>
    %c141 = arith.constant 141 : index
    %673 = memref.load %arg8[%c141] : memref<147xf32, #tpu.memory_space<smem>>
    %674 = vector.broadcast %673 : f32 to vector<16x16xf32>
    %675 = arith.mulf %672, %674 : vector<16x16xf32>
    %676 = arith.addf %671, %675 : vector<16x16xf32>
    %677 = vector.extract_strided_slice %604 {offsets = [0, 2], sizes = [22, 16], strides = [1, 1]} : vector<22x22xf32> to vector<22x16xf32>
    %678 = vector.extract_strided_slice %677 {offsets = [0, 0], sizes = [16, 16], strides = [1, 1]} : vector<22x16xf32> to vector<16x16xf32>
    %c100 = arith.constant 100 : index
    %679 = memref.load %arg8[%c100] : memref<147xf32, #tpu.memory_space<smem>>
    %680 = vector.broadcast %679 : f32 to vector<16x16xf32>
    %681 = arith.mulf %678, %680 : vector<16x16xf32>
    %682 = arith.addf %676, %681 : vector<16x16xf32>
    %683 = vector.extract_strided_slice %677 {offsets = [1, 0], sizes = [16, 16], strides = [1, 1]} : vector<22x16xf32> to vector<16x16xf32>
    %c107 = arith.constant 107 : index
    %684 = memref.load %arg8[%c107] : memref<147xf32, #tpu.memory_space<smem>>
    %685 = vector.broadcast %684 : f32 to vector<16x16xf32>
    %686 = arith.mulf %683, %685 : vector<16x16xf32>
    %687 = arith.addf %682, %686 : vector<16x16xf32>
    %688 = vector.extract_strided_slice %677 {offsets = [2, 0], sizes = [16, 16], strides = [1, 1]} : vector<22x16xf32> to vector<16x16xf32>
    %c114 = arith.constant 114 : index
    %689 = memref.load %arg8[%c114] : memref<147xf32, #tpu.memory_space<smem>>
    %690 = vector.broadcast %689 : f32 to vector<16x16xf32>
    %691 = arith.mulf %688, %690 : vector<16x16xf32>
    %692 = arith.addf %687, %691 : vector<16x16xf32>
    %693 = vector.extract_strided_slice %677 {offsets = [3, 0], sizes = [16, 16], strides = [1, 1]} : vector<22x16xf32> to vector<16x16xf32>
    %c121 = arith.constant 121 : index
    %694 = memref.load %arg8[%c121] : memref<147xf32, #tpu.memory_space<smem>>
    %695 = vector.broadcast %694 : f32 to vector<16x16xf32>
    %696 = arith.mulf %693, %695 : vector<16x16xf32>
    %697 = arith.addf %692, %696 : vector<16x16xf32>
    %698 = vector.extract_strided_slice %677 {offsets = [4, 0], sizes = [16, 16], strides = [1, 1]} : vector<22x16xf32> to vector<16x16xf32>
    %c128 = arith.constant 128 : index
    %699 = memref.load %arg8[%c128] : memref<147xf32, #tpu.memory_space<smem>>
    %700 = vector.broadcast %699 : f32 to vector<16x16xf32>
    %701 = arith.mulf %698, %700 : vector<16x16xf32>
    %702 = arith.addf %697, %701 : vector<16x16xf32>
    %703 = vector.extract_strided_slice %677 {offsets = [5, 0], sizes = [16, 16], strides = [1, 1]} : vector<22x16xf32> to vector<16x16xf32>
    %c135 = arith.constant 135 : index
    %704 = memref.load %arg8[%c135] : memref<147xf32, #tpu.memory_space<smem>>
    %705 = vector.broadcast %704 : f32 to vector<16x16xf32>
    %706 = arith.mulf %703, %705 : vector<16x16xf32>
    %707 = arith.addf %702, %706 : vector<16x16xf32>
    %708 = vector.extract_strided_slice %677 {offsets = [6, 0], sizes = [16, 16], strides = [1, 1]} : vector<22x16xf32> to vector<16x16xf32>
    %c142 = arith.constant 142 : index
    %709 = memref.load %arg8[%c142] : memref<147xf32, #tpu.memory_space<smem>>
    %710 = vector.broadcast %709 : f32 to vector<16x16xf32>
    %711 = arith.mulf %708, %710 : vector<16x16xf32>
    %712 = arith.addf %707, %711 : vector<16x16xf32>
    %713 = vector.extract_strided_slice %604 {offsets = [0, 3], sizes = [22, 16], strides = [1, 1]} : vector<22x22xf32> to vector<22x16xf32>
    %714 = vector.extract_strided_slice %713 {offsets = [0, 0], sizes = [16, 16], strides = [1, 1]} : vector<22x16xf32> to vector<16x16xf32>
    %c101 = arith.constant 101 : index
    %715 = memref.load %arg8[%c101] : memref<147xf32, #tpu.memory_space<smem>>
    %716 = vector.broadcast %715 : f32 to vector<16x16xf32>
    %717 = arith.mulf %714, %716 : vector<16x16xf32>
    %718 = arith.addf %712, %717 : vector<16x16xf32>
    %719 = vector.extract_strided_slice %713 {offsets = [1, 0], sizes = [16, 16], strides = [1, 1]} : vector<22x16xf32> to vector<16x16xf32>
    %c108 = arith.constant 108 : index
    %720 = memref.load %arg8[%c108] : memref<147xf32, #tpu.memory_space<smem>>
    %721 = vector.broadcast %720 : f32 to vector<16x16xf32>
    %722 = arith.mulf %719, %721 : vector<16x16xf32>
    %723 = arith.addf %718, %722 : vector<16x16xf32>
    %724 = vector.extract_strided_slice %713 {offsets = [2, 0], sizes = [16, 16], strides = [1, 1]} : vector<22x16xf32> to vector<16x16xf32>
    %c115 = arith.constant 115 : index
    %725 = memref.load %arg8[%c115] : memref<147xf32, #tpu.memory_space<smem>>
    %726 = vector.broadcast %725 : f32 to vector<16x16xf32>
    %727 = arith.mulf %724, %726 : vector<16x16xf32>
    %728 = arith.addf %723, %727 : vector<16x16xf32>
    %729 = vector.extract_strided_slice %713 {offsets = [3, 0], sizes = [16, 16], strides = [1, 1]} : vector<22x16xf32> to vector<16x16xf32>
    %c122 = arith.constant 122 : index
    %730 = memref.load %arg8[%c122] : memref<147xf32, #tpu.memory_space<smem>>
    %731 = vector.broadcast %730 : f32 to vector<16x16xf32>
    %732 = arith.mulf %729, %731 : vector<16x16xf32>
    %733 = arith.addf %728, %732 : vector<16x16xf32>
    %734 = vector.extract_strided_slice %713 {offsets = [4, 0], sizes = [16, 16], strides = [1, 1]} : vector<22x16xf32> to vector<16x16xf32>
    %c129 = arith.constant 129 : index
    %735 = memref.load %arg8[%c129] : memref<147xf32, #tpu.memory_space<smem>>
    %736 = vector.broadcast %735 : f32 to vector<16x16xf32>
    %737 = arith.mulf %734, %736 : vector<16x16xf32>
    %738 = arith.addf %733, %737 : vector<16x16xf32>
    %739 = vector.extract_strided_slice %713 {offsets = [5, 0], sizes = [16, 16], strides = [1, 1]} : vector<22x16xf32> to vector<16x16xf32>
    %c136 = arith.constant 136 : index
    %740 = memref.load %arg8[%c136] : memref<147xf32, #tpu.memory_space<smem>>
    %741 = vector.broadcast %740 : f32 to vector<16x16xf32>
    %742 = arith.mulf %739, %741 : vector<16x16xf32>
    %743 = arith.addf %738, %742 : vector<16x16xf32>
    %744 = vector.extract_strided_slice %713 {offsets = [6, 0], sizes = [16, 16], strides = [1, 1]} : vector<22x16xf32> to vector<16x16xf32>
    %c143 = arith.constant 143 : index
    %745 = memref.load %arg8[%c143] : memref<147xf32, #tpu.memory_space<smem>>
    %746 = vector.broadcast %745 : f32 to vector<16x16xf32>
    %747 = arith.mulf %744, %746 : vector<16x16xf32>
    %748 = arith.addf %743, %747 : vector<16x16xf32>
    %749 = vector.extract_strided_slice %604 {offsets = [0, 4], sizes = [22, 16], strides = [1, 1]} : vector<22x22xf32> to vector<22x16xf32>
    %750 = vector.extract_strided_slice %749 {offsets = [0, 0], sizes = [16, 16], strides = [1, 1]} : vector<22x16xf32> to vector<16x16xf32>
    %c102 = arith.constant 102 : index
    %751 = memref.load %arg8[%c102] : memref<147xf32, #tpu.memory_space<smem>>
    %752 = vector.broadcast %751 : f32 to vector<16x16xf32>
    %753 = arith.mulf %750, %752 : vector<16x16xf32>
    %754 = arith.addf %748, %753 : vector<16x16xf32>
    %755 = vector.extract_strided_slice %749 {offsets = [1, 0], sizes = [16, 16], strides = [1, 1]} : vector<22x16xf32> to vector<16x16xf32>
    %c109 = arith.constant 109 : index
    %756 = memref.load %arg8[%c109] : memref<147xf32, #tpu.memory_space<smem>>
    %757 = vector.broadcast %756 : f32 to vector<16x16xf32>
    %758 = arith.mulf %755, %757 : vector<16x16xf32>
    %759 = arith.addf %754, %758 : vector<16x16xf32>
    %760 = vector.extract_strided_slice %749 {offsets = [2, 0], sizes = [16, 16], strides = [1, 1]} : vector<22x16xf32> to vector<16x16xf32>
    %c116 = arith.constant 116 : index
    %761 = memref.load %arg8[%c116] : memref<147xf32, #tpu.memory_space<smem>>
    %762 = vector.broadcast %761 : f32 to vector<16x16xf32>
    %763 = arith.mulf %760, %762 : vector<16x16xf32>
    %764 = arith.addf %759, %763 : vector<16x16xf32>
    %765 = vector.extract_strided_slice %749 {offsets = [3, 0], sizes = [16, 16], strides = [1, 1]} : vector<22x16xf32> to vector<16x16xf32>
    %c123 = arith.constant 123 : index
    %766 = memref.load %arg8[%c123] : memref<147xf32, #tpu.memory_space<smem>>
    %767 = vector.broadcast %766 : f32 to vector<16x16xf32>
    %768 = arith.mulf %765, %767 : vector<16x16xf32>
    %769 = arith.addf %764, %768 : vector<16x16xf32>
    %770 = vector.extract_strided_slice %749 {offsets = [4, 0], sizes = [16, 16], strides = [1, 1]} : vector<22x16xf32> to vector<16x16xf32>
    %c130 = arith.constant 130 : index
    %771 = memref.load %arg8[%c130] : memref<147xf32, #tpu.memory_space<smem>>
    %772 = vector.broadcast %771 : f32 to vector<16x16xf32>
    %773 = arith.mulf %770, %772 : vector<16x16xf32>
    %774 = arith.addf %769, %773 : vector<16x16xf32>
    %775 = vector.extract_strided_slice %749 {offsets = [5, 0], sizes = [16, 16], strides = [1, 1]} : vector<22x16xf32> to vector<16x16xf32>
    %c137 = arith.constant 137 : index
    %776 = memref.load %arg8[%c137] : memref<147xf32, #tpu.memory_space<smem>>
    %777 = vector.broadcast %776 : f32 to vector<16x16xf32>
    %778 = arith.mulf %775, %777 : vector<16x16xf32>
    %779 = arith.addf %774, %778 : vector<16x16xf32>
    %780 = vector.extract_strided_slice %749 {offsets = [6, 0], sizes = [16, 16], strides = [1, 1]} : vector<22x16xf32> to vector<16x16xf32>
    %c144 = arith.constant 144 : index
    %781 = memref.load %arg8[%c144] : memref<147xf32, #tpu.memory_space<smem>>
    %782 = vector.broadcast %781 : f32 to vector<16x16xf32>
    %783 = arith.mulf %780, %782 : vector<16x16xf32>
    %784 = arith.addf %779, %783 : vector<16x16xf32>
    %785 = vector.extract_strided_slice %604 {offsets = [0, 5], sizes = [22, 16], strides = [1, 1]} : vector<22x22xf32> to vector<22x16xf32>
    %786 = vector.extract_strided_slice %785 {offsets = [0, 0], sizes = [16, 16], strides = [1, 1]} : vector<22x16xf32> to vector<16x16xf32>
    %c103 = arith.constant 103 : index
    %787 = memref.load %arg8[%c103] : memref<147xf32, #tpu.memory_space<smem>>
    %788 = vector.broadcast %787 : f32 to vector<16x16xf32>
    %789 = arith.mulf %786, %788 : vector<16x16xf32>
    %790 = arith.addf %784, %789 : vector<16x16xf32>
    %791 = vector.extract_strided_slice %785 {offsets = [1, 0], sizes = [16, 16], strides = [1, 1]} : vector<22x16xf32> to vector<16x16xf32>
    %c110 = arith.constant 110 : index
    %792 = memref.load %arg8[%c110] : memref<147xf32, #tpu.memory_space<smem>>
    %793 = vector.broadcast %792 : f32 to vector<16x16xf32>
    %794 = arith.mulf %791, %793 : vector<16x16xf32>
    %795 = arith.addf %790, %794 : vector<16x16xf32>
    %796 = vector.extract_strided_slice %785 {offsets = [2, 0], sizes = [16, 16], strides = [1, 1]} : vector<22x16xf32> to vector<16x16xf32>
    %c117 = arith.constant 117 : index
    %797 = memref.load %arg8[%c117] : memref<147xf32, #tpu.memory_space<smem>>
    %798 = vector.broadcast %797 : f32 to vector<16x16xf32>
    %799 = arith.mulf %796, %798 : vector<16x16xf32>
    %800 = arith.addf %795, %799 : vector<16x16xf32>
    %801 = vector.extract_strided_slice %785 {offsets = [3, 0], sizes = [16, 16], strides = [1, 1]} : vector<22x16xf32> to vector<16x16xf32>
    %c124 = arith.constant 124 : index
    %802 = memref.load %arg8[%c124] : memref<147xf32, #tpu.memory_space<smem>>
    %803 = vector.broadcast %802 : f32 to vector<16x16xf32>
    %804 = arith.mulf %801, %803 : vector<16x16xf32>
    %805 = arith.addf %800, %804 : vector<16x16xf32>
    %806 = vector.extract_strided_slice %785 {offsets = [4, 0], sizes = [16, 16], strides = [1, 1]} : vector<22x16xf32> to vector<16x16xf32>
    %c131 = arith.constant 131 : index
    %807 = memref.load %arg8[%c131] : memref<147xf32, #tpu.memory_space<smem>>
    %808 = vector.broadcast %807 : f32 to vector<16x16xf32>
    %809 = arith.mulf %806, %808 : vector<16x16xf32>
    %810 = arith.addf %805, %809 : vector<16x16xf32>
    %811 = vector.extract_strided_slice %785 {offsets = [5, 0], sizes = [16, 16], strides = [1, 1]} : vector<22x16xf32> to vector<16x16xf32>
    %c138 = arith.constant 138 : index
    %812 = memref.load %arg8[%c138] : memref<147xf32, #tpu.memory_space<smem>>
    %813 = vector.broadcast %812 : f32 to vector<16x16xf32>
    %814 = arith.mulf %811, %813 : vector<16x16xf32>
    %815 = arith.addf %810, %814 : vector<16x16xf32>
    %816 = vector.extract_strided_slice %785 {offsets = [6, 0], sizes = [16, 16], strides = [1, 1]} : vector<22x16xf32> to vector<16x16xf32>
    %c145 = arith.constant 145 : index
    %817 = memref.load %arg8[%c145] : memref<147xf32, #tpu.memory_space<smem>>
    %818 = vector.broadcast %817 : f32 to vector<16x16xf32>
    %819 = arith.mulf %816, %818 : vector<16x16xf32>
    %820 = arith.addf %815, %819 : vector<16x16xf32>
    %821 = vector.extract_strided_slice %604 {offsets = [0, 6], sizes = [22, 16], strides = [1, 1]} : vector<22x22xf32> to vector<22x16xf32>
    %822 = vector.extract_strided_slice %821 {offsets = [0, 0], sizes = [16, 16], strides = [1, 1]} : vector<22x16xf32> to vector<16x16xf32>
    %c104 = arith.constant 104 : index
    %823 = memref.load %arg8[%c104] : memref<147xf32, #tpu.memory_space<smem>>
    %824 = vector.broadcast %823 : f32 to vector<16x16xf32>
    %825 = arith.mulf %822, %824 : vector<16x16xf32>
    %826 = arith.addf %820, %825 : vector<16x16xf32>
    %827 = vector.extract_strided_slice %821 {offsets = [1, 0], sizes = [16, 16], strides = [1, 1]} : vector<22x16xf32> to vector<16x16xf32>
    %c111 = arith.constant 111 : index
    %828 = memref.load %arg8[%c111] : memref<147xf32, #tpu.memory_space<smem>>
    %829 = vector.broadcast %828 : f32 to vector<16x16xf32>
    %830 = arith.mulf %827, %829 : vector<16x16xf32>
    %831 = arith.addf %826, %830 : vector<16x16xf32>
    %832 = vector.extract_strided_slice %821 {offsets = [2, 0], sizes = [16, 16], strides = [1, 1]} : vector<22x16xf32> to vector<16x16xf32>
    %c118 = arith.constant 118 : index
    %833 = memref.load %arg8[%c118] : memref<147xf32, #tpu.memory_space<smem>>
    %834 = vector.broadcast %833 : f32 to vector<16x16xf32>
    %835 = arith.mulf %832, %834 : vector<16x16xf32>
    %836 = arith.addf %831, %835 : vector<16x16xf32>
    %837 = vector.extract_strided_slice %821 {offsets = [3, 0], sizes = [16, 16], strides = [1, 1]} : vector<22x16xf32> to vector<16x16xf32>
    %c125 = arith.constant 125 : index
    %838 = memref.load %arg8[%c125] : memref<147xf32, #tpu.memory_space<smem>>
    %839 = vector.broadcast %838 : f32 to vector<16x16xf32>
    %840 = arith.mulf %837, %839 : vector<16x16xf32>
    %841 = arith.addf %836, %840 : vector<16x16xf32>
    %842 = vector.extract_strided_slice %821 {offsets = [4, 0], sizes = [16, 16], strides = [1, 1]} : vector<22x16xf32> to vector<16x16xf32>
    %c132 = arith.constant 132 : index
    %843 = memref.load %arg8[%c132] : memref<147xf32, #tpu.memory_space<smem>>
    %844 = vector.broadcast %843 : f32 to vector<16x16xf32>
    %845 = arith.mulf %842, %844 : vector<16x16xf32>
    %846 = arith.addf %841, %845 : vector<16x16xf32>
    %847 = vector.extract_strided_slice %821 {offsets = [5, 0], sizes = [16, 16], strides = [1, 1]} : vector<22x16xf32> to vector<16x16xf32>
    %c139 = arith.constant 139 : index
    %848 = memref.load %arg8[%c139] : memref<147xf32, #tpu.memory_space<smem>>
    %849 = vector.broadcast %848 : f32 to vector<16x16xf32>
    %850 = arith.mulf %847, %849 : vector<16x16xf32>
    %851 = arith.addf %846, %850 : vector<16x16xf32>
    %852 = vector.extract_strided_slice %821 {offsets = [6, 0], sizes = [16, 16], strides = [1, 1]} : vector<22x16xf32> to vector<16x16xf32>
    %c146 = arith.constant 146 : index
    %853 = memref.load %arg8[%c146] : memref<147xf32, #tpu.memory_space<smem>>
    %854 = vector.broadcast %853 : f32 to vector<16x16xf32>
    %855 = arith.mulf %852, %854 : vector<16x16xf32>
    %856 = arith.addf %851, %855 : vector<16x16xf32>
    %857 = arith.addf %348, %602 : vector<16x16xf32>
    %c0_95 = arith.constant 0 : index
    %858 = memref.load %arg9[%c0_95] : memref<1xf32, #tpu.memory_space<smem>>
    %859 = vector.broadcast %858 : f32 to vector<16x16xf32>
    %860 = arith.addf %856, %859 : vector<16x16xf32>
    %861 = arith.addf %857, %860 : vector<16x16xf32>
    %cst_96 = arith.constant 0.000000e+00 : f32
    %862 = vector.broadcast %cst_96 : f32 to vector<16x16xf32>
    %863 = arith.subf %862, %861 : vector<16x16xf32>
    %864 = math.exp %863 : vector<16x16xf32>
    %cst_97 = arith.constant 1.000000e+00 : f32
    %865 = vector.broadcast %cst_97 : f32 to vector<16x16xf32>
    %866 = arith.addf %865, %864 : vector<16x16xf32>
    %cst_98 = arith.constant 1.000000e+00 : f32
    %867 = vector.broadcast %cst_98 : f32 to vector<16x16xf32>
    %868 = arith.divf %867, %866 : vector<16x16xf32>
    %869 = vector.shape_cast %868 : vector<16x16xf32> to vector<1x16x16xf32>
    %870 = vector.broadcast %869 : vector<1x16x16xf32> to vector<4x16x16xf32>
    %871 = arith.mulf %5, %870 : vector<4x16x16xf32>
    %c0_99 = arith.constant 0 : index
    %c0_100 = arith.constant 0 : index
    %c0_101 = arith.constant 0 : index
    %c0_102 = arith.constant 0 : index
    %872 = vector.load %arg10[%c0_99, %c0_100, %c0_101, %c0_102] : memref<1x4x16x16xf32, #tpu.memory_space<vmem>>, vector<1x4x16x16xf32>
    %873 = vector.shape_cast %872 : vector<1x4x16x16xf32> to vector<4x16x16xf32>
    %874 = vector.shape_cast %871 : vector<4x16x16xf32> to vector<1x4x16x16xf32>
    tpu.vector_store %arg10[%c0_99, %c0_100, %c0_101, %c0_102], %874 {strides = array<i32>} : memref<1x4x16x16xf32, #tpu.memory_space<vmem>>, vector<1x4x16x16xf32>,
    return
  }
  func.func @transform_0(%arg0: i32, %arg1: i32) -> (i32, i32, i32, i32) {
    %c0_i32 = arith.constant 0 : i32
    %c0_i32_0 = arith.constant 0 : i32
    %c0_i32_1 = arith.constant 0 : i32
    return %arg0, %c0_i32, %arg1, %c0_i32_0 : i32, i32, i32, i32
  }
  func.func @transform_1(%arg0: i32, %arg1: i32) -> (i32, i32, i32, i32) {
    %c2_i32 = arith.constant 2 : i32
    %0 = arith.muli %arg1, %c2_i32 : i32
    %c1_i32 = arith.constant 1 : i32
    %1 = arith.subi %0, %c1_i32 : i32
    %c0_i32 = arith.constant 0 : i32
    %2 = arith.maxsi %1, %c0_i32 : i32
    %c0_i32_0 = arith.constant 0 : i32
    %c0_i32_1 = arith.constant 0 : i32
    %c0_i32_2 = arith.constant 0 : i32
    return %arg0, %c0_i32_0, %2, %c0_i32_1 : i32, i32, i32, i32
  }
  func.func @transform_2(%arg0: i32, %arg1: i32) -> (i32, i32, i32, i32) {
    %c1_i32 = arith.constant 1 : i32
    %0 = arith.addi %arg1, %c1_i32 : i32
    %c2_i32 = arith.constant 2 : i32
    %1 = arith.muli %0, %c2_i32 : i32
    %c1_i32_0 = arith.constant 1 : i32
    %2 = arith.minsi %1, %c1_i32_0 : i32
    %c0_i32 = arith.constant 0 : i32
    %c0_i32_1 = arith.constant 0 : i32
    %c0_i32_2 = arith.constant 0 : i32
    return %arg0, %c0_i32, %2, %c0_i32_1 : i32, i32, i32, i32
  }
  func.func @transform_3(%arg0: i32, %arg1: i32) -> (i32, i32, i32, i32) {
    %c0_i32 = arith.constant 0 : i32
    %c0_i32_0 = arith.constant 0 : i32
    %c0_i32_1 = arith.constant 0 : i32
    return %arg0, %c0_i32, %arg1, %c0_i32_0 : i32, i32, i32, i32
  }
  func.func @transform_4(%arg0: i32, %arg1: i32) -> (i32, i32, i32, i32) {
    %c2_i32 = arith.constant 2 : i32
    %0 = arith.muli %arg1, %c2_i32 : i32
    %c1_i32 = arith.constant 1 : i32
    %1 = arith.subi %0, %c1_i32 : i32
    %c0_i32 = arith.constant 0 : i32
    %2 = arith.maxsi %1, %c0_i32 : i32
    %c0_i32_0 = arith.constant 0 : i32
    %c0_i32_1 = arith.constant 0 : i32
    %c0_i32_2 = arith.constant 0 : i32
    return %arg0, %c0_i32_0, %2, %c0_i32_1 : i32, i32, i32, i32
  }
  func.func @transform_5(%arg0: i32, %arg1: i32) -> (i32, i32, i32, i32) {
    %c1_i32 = arith.constant 1 : i32
    %0 = arith.addi %arg1, %c1_i32 : i32
    %c2_i32 = arith.constant 2 : i32
    %1 = arith.muli %0, %c2_i32 : i32
    %c1_i32_0 = arith.constant 1 : i32
    %2 = arith.minsi %1, %c1_i32_0 : i32
    %c0_i32 = arith.constant 0 : i32
    %c0_i32_1 = arith.constant 0 : i32
    %c0_i32_2 = arith.constant 0 : i32
    return %arg0, %c0_i32, %2, %c0_i32_1 : i32, i32, i32, i32
  }
  func.func @transform_6(%arg0: i32, %arg1: i32) -> i32 {
    %c0_i32 = arith.constant 0 : i32
    %c0_i32_0 = arith.constant 0 : i32
    return %c0_i32 : i32
  }
  func.func @transform_7(%arg0: i32, %arg1: i32) -> i32 {
    %c0_i32 = arith.constant 0 : i32
    %c0_i32_0 = arith.constant 0 : i32
    return %c0_i32 : i32
  }
  func.func @transform_8(%arg0: i32, %arg1: i32) -> (i32, i32, i32, i32) {
    %c0_i32 = arith.constant 0 : i32
    %c0_i32_0 = arith.constant 0 : i32
    %c0_i32_1 = arith.constant 0 : i32
    return %arg0, %c0_i32, %arg1, %c0_i32_0 : i32, i32, i32, i32
  }
}

</mosaic_0001>

<bundles_post_ra>
// kernel: tpu_custom_call.1
= control target key start
LH: loop header
LB: loop body
LE: loop exit
PB: predicated region body
PF: predicated region fallthrough
CT: control target
= control target key end

     0   :  { %s7158_s0 = inlined_call_operand.hbm [shape: f32[2,4,16,16], index: 0, kind: input, shape index: {}]   ;;  %s7159_s1 = inlined_call_operand.hbm [shape: f32[2,4,16,16], index: 1, kind: input, shape index: {}]   ;;  %s7160_s2 = inlined_call_operand.hbm [shape: f32[2,4,16,16], index: 2, kind: input, shape index: {}]   ;;  %s7161_s3 = inlined_call_operand.hbm [shape: f32[2,1,16,16], index: 3, kind: input, shape index: {}]   ;;  %s7162_s4 = inlined_call_operand.hbm [shape: f32[2,1,16,16], index: 4, kind: input, shape index: {}]   ;;  %s7163_s5 = inlined_call_operand.hbm [shape: f32[2,1,16,16], index: 5, kind: input, shape index: {}]   ;;  %s7164_s6 = inlined_call_operand.vmem [shape: f32[147], index: 6, kind: input, shape index: {}]   ;;  %s7165_s7 = inlined_call_operand.<no memory space> [shape: f32[1], index: 7, kind: input, shape index: {}]   ;;  %s7166_s8 = inlined_call_operand.hbm [shape: f32[2,4,16,16], index: 8, kind: output, shape index: {}]  }
   0x1   :  { %7187 = sst [smem:[#allocation120_spill]] %s7159_s1 }
   0x2   :  { %7188 = sst [smem:[#allocation121_spill]] %s7161_s3 }
   0x3   :  { %7189 = sst [smem:[#allocation122_spill]] %s7164_s6 }
   0x4   :  { %7190 = sst [smem:[#allocation123_spill]] %s7166_s8 }
   0x5   :  { %13 = sst [smem:[#allocation3]] %s7165_s7 }
   0x6   :  { %14 = vsyncpa [#allocation5], 0 }
   0x7   :  { %16 = vsyncpa [#allocation5 + $0x1], 0 }
   0x8   :  { %17 = vsyncpa [#allocation9], 0 }
   0x9   :  { %19 = vsyncpa [#allocation9 + $0x1], 0 }
   0xa   :  { %20 = vsyncpa [#allocation12], 0 }
   0xb   :  { %22 = vsyncpa [#allocation12 + $0x1], 0 }
   0xc   :  { %23 = vsyncpa [#allocation15], 0 }
   0xd   :  { %25 = vsyncpa [#allocation15 + $0x1], 0 }
   0xe   :  { %26 = vsyncpa [#allocation7], 0 }
   0xf   :  { %27 = vsyncpa [#allocation6], 0 }
  0x10   :  { %29 = vsyncpa [#allocation6 + $0x1], 0  ;;  %s4638_s29 = smov 0   ;;  %s4640_s30 = smov 0  }
  0x11   :  { %s4642_s9 = smov 0   ;;  %s4644_s10 = smov 0  }
  0x12   :  { %s4646_s7 = smov 0   ;;  %s4648_s11 = smov 0  }
  0x13 LB: > { %7191 = sst [smem:[#allocation24_spill]] %s4555_s9  ;;  %s47_s12 = sadd.s32 1, %s4563_s7  ;;  %s4567_s11 = sphi %s4648_s11, %s35_s11   ;;  %s4563_s7 = sphi %s4646_s7, %s7417_s7   ;;  %s4559_s10 = sphi %s4644_s10, %s7416_s10   ;;  %s4555_s9 = sphi %s4642_s9, %s7415_s9   ;;  %s4551_s30 = sphi %s4640_s30, %s7419_s30   ;;  %s4547_s29 = sphi %s4638_s29, %s7418_s29  }
  0x14   : > { %7192 = sst [smem:[#allocation25_spill]] %s4559_s10  ;;  %s56_s13 = sadd.s32 1, %s4555_s9 }
  0x15   : > { %7193 = sst [smem:[#allocation26_spill]] %s4563_s7  ;;  %p49_p0 = scmp.ge.s32.totalorder %s47_s12, 2 }
  0x16   : > { %7194 = sst [smem:[#allocation27_spill]] %s4567_s11  ;;  %p7168_p1 = scmp.ne.s32.totalorder %s4555_s9, %s4551_s30 }
  0x17   : > { %p64_p2 = scmp.eq.s32.totalorder %s4567_s11, 0  ;;  %s7421_s12 = smov (%p49_p0, %s47_s12), 0 }
  0x18   : > { %7195 = sst [smem:[#allocation28_spill]] %s7421_s12  ;;  %p4181_p5 = scmp.lt.s32.totalorder %s4567_s11, 2 }
  0x19   : > { %p65_p4 = por %p64_p2, %p7168_p1  ;;  %s51_s14 = ssub.s32 %s4563_s7, %s7421_s12 }
  0x1a   : > { %s4683_s15 = sand.u32 1, %s4555_s9   ;;  %p54_p6 = scmp.eq.s32.totalorder %s51_s14, 0 }
  0x1b   : > { %s4686_s16 = sshll.u32 %s4563_s7, 10  ;;  %p4688_p7 = pnand %p4181_p5, %p65_p4 }
  0x1c   : > { %s4693_s18 = scalar_select %p54_p6, %s4555_s9, %s56_s13  }
  0x1d   : > { %s7196_s17 = scalar_select %p4688_p7, 1, 0 }
  0x1e   : > { %7197 = sst [smem:[#allocation29_spill]] %s4693_s18  ;;  %s7167_s19 = sand.u32 1, %s4567_s11  }
  0x1f   : > { %s3949_s20 = sshll.u32 %s4683_s15, 5  ;;  %s7198_s1 = sld [smem:[#allocation120_spill]] }
  0x20   : > { %s376_s24 = scalar_lea.vmem [#allocation8], %s3949_s20  ;;  %s4709_s26 = scalar_lea.sflag [#allocation9], %s7167_s19 }
  0x21   : > { %s388_s25 = sshll.u32 %s376_s24, 4  ;;  %p4715_p9 = pneg %p4688_p7  ;;  %s4705_s25 = int_to_ptr.vmem [resolvable:$true] %s388_s25 }
  0x25   : > { %s4701_s23 = scalar_lea.hbm %s7198_s1, %s4686_s16  ;;  %s4279_s21 = scalar_lea.hbm %s7198_s1, 2048 }
  0x26   : > { %s4274_s27 = scalar_lea.hbm %s4701_s23, 512  ;;  %p4280_p12 = scmp.lt.u32.totalorder %s4701_s23, %s7198_s1 }
  0x27   : > { %p4275_p8 = scmp.ne.s32.totalorder %s4701_s23, %s4274_s27  ;;  %p4281_p13 = scmp.lt.u32.totalorder %s4279_s21, %s4274_s27 }
  0x28   : > { %p4283_p2 = scmp.lt.u32.totalorder %s4274_s27, %s4701_s23 }
  0x29   : > { %p4277_p10 = pnand %p4715_p9, %p4275_p8  ;;  %p4282_p0 = por %p4281_p13, %p4280_p12 }
  0x2b   : > { %p4278_p11 = pneg %p4277_p10  ;;  %p4284_p4 = por %p4283_p2, %p4282_p0 }
  0x2d   : > { %p4285_p5 = pnand %p4284_p4, %p4278_p11 }
  0x2f   : > { %4288 = shalt.err (!%p4285_p5)
}
  0x30   : > { %s4289_s19 = scalar_lea.vmem %s4705_s25, 512  ;;  %s4569_s13 = smov [#allocation8]  }
  0x31   : > { %p4290_p6 = scmp.ne.s32.totalorder %s4705_s25, %s4289_s19  ;;  %s4294_s14 = sshll.u32 %s4569_s13, 4  ;;  %s4295_s14 = int_to_ptr.vmem [resolvable:$false] %s4294_s14 }
  0x32   : > { %s4296_s22 = scalar_lea.vmem %s4295_s14, 1024  ;;  %p4297_p3 = scmp.lt.s32.totalorder %s4705_s25, %s4295_s14 }
  0x33   : > { %p4292_p8 = pnand %p4290_p6, %p4715_p9  ;;  %p4298_p1 = scmp.lt.s32.totalorder %s4296_s22, %s4289_s19 }
  0x35   : > { %p4293_p10 = pneg %p4292_p8  ;;  %p4299_p12 = por %p4298_p1, %p4297_p3 }
  0x37   : > { %p4300_p13 = pnand %p4299_p12, %p4293_p10 }
  0x39   : > { %4303 = shalt.err (!%p4300_p13)
}
  0x3a   : > { %s7171_s27 = smov 256   ;;  %s7172_s21 = smov 128  }
  0x3b   : > { %s7174_s24 = smov 8   ;;  %s402_s19 = scalar_lea.vmem [#allocation10], %s3949_s20 }
  0x3c   : > { %4163 = dma.hbm_to_vmem [thread:$0]  (!%p4688_p7), %s4701_s23, 512, %s4705_s25, %s4709_s26, %s7171_s27, %s7172_s21, %s7174_s24  }
  0x3d   : > { %s414_s13 = sshll.u32 %s402_s19, 4  ;;  %s3955_s14 = sshll.u32 %s4683_s15, 4  ;;  %s4745_s13 = int_to_ptr.vmem [resolvable:$true] %s414_s13 }
  0x3e   : > { %s4748_s22 = sshll.u32 %s4563_s7, 8  ;;  %s428_s1 = scalar_lea.vmem [#allocation11], %s3955_s14 }
  0x3f   : > { %s437_s12 = sshll.u32 %s428_s1, 4  ;;  %s7200_s3 = sld [smem:[#allocation121_spill]]  ;;  %s4756_s12 = int_to_ptr.vmem [resolvable:$true] %s437_s12 }
  0x40   : > { %s7201_s20 = sand.u32 1, %s4567_s11  }
  0x41   : > { %s4760_s23 = scalar_lea.sflag [#allocation12], %s7201_s20 }
  0x45   : > { %s4754_s10 = scalar_lea.hbm %s7200_s3, %s4748_s22  ;;  %s4309_s8 = scalar_lea.hbm %s7200_s3, 512 }
  0x46   : > { %s4304_s25 = scalar_lea.hbm %s4754_s10, 256  ;;  %p4310_p0 = scmp.lt.u32.totalorder %s4754_s10, %s7200_s3 }
  0x47   : > { %p4305_p1 = scmp.ne.s32.totalorder %s4754_s10, %s4304_s25  ;;  %p4311_p2 = scmp.lt.u32.totalorder %s4309_s8, %s4304_s25 }
  0x48   : > { %p4313_p5 = scmp.lt.u32.totalorder %s4304_s25, %s4754_s10 }
  0x49   : > { %p4307_p3 = pnand %p4305_p1, %p4715_p9  ;;  %p4312_p4 = por %p4311_p2, %p4310_p0 }
  0x4b   : > { %p4308_p11 = pneg %p4307_p3  ;;  %p4314_p6 = por %p4313_p5, %p4312_p4 }
  0x4d   : > { %p4315_p8 = pnand %p4314_p6, %p4308_p11 }
  0x4f   : > { %4318 = shalt.err (!%p4315_p8)
}
  0x50   : > { %s4319_s20 = scalar_lea.vmem %s4756_s12, 256  ;;  %s4573_s1 = smov [#allocation11]  }
  0x51   : > { %p4320_p10 = scmp.ne.s32.totalorder %s4756_s12, %s4319_s20  ;;  %s4324_s19 = sshll.u32 %s4573_s1, 4  ;;  %s4325_s19 = int_to_ptr.vmem [resolvable:$false] %s4324_s19 }
  0x52   : > { %s4326_s18 = scalar_lea.vmem %s4325_s19, 512  ;;  %p4327_p1 = scmp.lt.s32.totalorder %s4756_s12, %s4325_s19 }
  0x53   : > { %p4322_p12 = pnand %p4320_p10, %p4715_p9  ;;  %p4328_p3 = scmp.lt.s32.totalorder %s4326_s18, %s4319_s20 }
  0x55   : > { %p4323_p13 = pneg %p4322_p12  ;;  %p4329_p0 = por %p4328_p3, %p4327_p1 }
  0x57   : > { %p4330_p2 = pnand %p4329_p0, %p4323_p13 }
  0x59   : > { %4333 = shalt.err (!%p4330_p2)
}
  0x5a   : > { %4169 = dma.hbm_to_vmem [thread:$0]  (!%p4688_p7), %s4754_s10, 256, %s4756_s12, %s4760_s23, %s7172_s21, %s7172_s21, %s7174_s24  }
  0x5b   : > { %s4788_s25 = sadd.s32 4294967295, %s4567_s11   ;;  %s3942_s8 = sadd.s32 4294967294, %s4567_s11  }
  0x5c   : > { %p69_p11 = scmp.ne.s32.totalorder %s4551_s30, %s4547_s29  ;;  %p7180_p4 = scmp.eq.s32.totalorder %s4788_s25, 0 }
  0x5d   : > { %p309_p5 = scmp.eq.s32.totalorder %s4788_s25, 1  ;;  %p315_p6 = scmp.eq.s32.totalorder %s3942_s8, 1 }
  0x5e   : > { %p4797_p8 = por %p7180_p4, %p69_p11  ;;  %p3943_p10 = scmp.ge.s32.totalorder %s4567_s11, 1 }
  0x5f   : > { %p7203_p12 = scmp.ne.s32.totalorder %s4555_s9, %s4551_s30  ;;  %p4809_p1 = por %p315_p6, %p69_p11 }
  0x60   : > { %s7202_s14 = scalar_select %p4797_p8, 1, 0 }
  0x61   : > { %p4805_p13 = por %p309_p5, %p7203_p12  ;;  %p322_p3 = scmp.lt.s32.totalorder %s4567_s11, 3 }
  0x62   : > { %s7205_s12 = scalar_select %p4809_p1, 1, 0 }
  0x63   : > { %s7204_s10 = scalar_select %p4805_p13, 1, 0 }
  0x64   : > { %s7206_s6 = sld [smem:[#allocation122_spill]]  ;;  %p4817_p0 = pnand %p3943_p10, %p322_p3 }
  0x65   : > { %s3946_s8 = sshll.u32 %s4683_s15, 6  ;;  %s4830_s24 = scalar_lea.hbm %s7158_s0, %s4686_s16 }
  0x66   : > { %s7207_s18 = scalar_select %p4817_p0, 1, 0 }
  0x67   : > { %p4153_p2 = pneg %p4817_p0  ;;  %s353_s20 = scalar_lea.vmem [#allocation4], %s3946_s8 }
  0x68   : > { %s362_s1 = sshll.u32 %s353_s20, 4  ;;  %s4334_s7 = scalar_lea.hbm %s4830_s24, 1024  ;;  %s4838_s1 = int_to_ptr.vmem [resolvable:$true] %s362_s1 }
  0x69   : > { %p4834_p11 = pnand %p4153_p2, %p7180_p4  ;;  %p4335_p5 = scmp.ne.s32.totalorder %s4830_s24, %s4334_s7 }
  0x6a   : > { %s335_s19 = sshll.u32 %s7206_s6, 4  ;;  %s350_s6 = scalar_lea.sflag [#allocation5], %s4683_s15  ;;  %s4821_s19 = int_to_ptr.vmem [resolvable:$true] %s335_s19 }
  0x6b   : > { %s7208_s3 = scalar_select %p4834_p11, 1, 0 }
  0x6c   : > { %p4337_p6 = pnand %p4335_p5, %p4715_p9  ;;  %s4339_s9 = scalar_lea.hbm %s7158_s0, 2048 }
  0x6d   : > { %p4340_p12 = scmp.lt.u32.totalorder %s4830_s24, %s7158_s0  ;;  %p4341_p3 = scmp.lt.u32.totalorder %s4339_s9, %s4334_s7 }
  0x6e   : > { %p4338_p10 = pneg %p4337_p6  ;;  %p4343_p4 = scmp.lt.u32.totalorder %s4334_s7, %s4830_s24 }
  0x6f   : > { %p4342_p2 = por %p4341_p3, %p4340_p12 }
  0x71   : > { %p4344_p1 = por %p4343_p4, %p4342_p2 }
  0x73   : > { %p4345_p13 = pnand %p4344_p1, %p4338_p10 }
  0x75   : > { %4348 = shalt.err (!%p4345_p13)
}
  0x76   : > { %s4349_s20 = scalar_lea.vmem %s4838_s1, 1024  ;;  %s4574_s27 = smov [#allocation4]  }
  0x77   : > { %p4350_p5 = scmp.ne.s32.totalorder %s4838_s1, %s4349_s20  ;;  %s4354_s21 = sshll.u32 %s4574_s27, 4  ;;  %s4355_s21 = int_to_ptr.vmem [resolvable:$false] %s4354_s21 }
  0x78   : > { %s4356_s11 = scalar_lea.vmem %s4355_s21, 2048  ;;  %p4357_p0 = scmp.lt.s32.totalorder %s4838_s1, %s4355_s21 }
  0x79   : > { %p4352_p6 = pnand %p4350_p5, %p4715_p9  ;;  %p4358_p11 = scmp.lt.s32.totalorder %s4356_s11, %s4349_s20 }
  0x7b   : > { %p4353_p8 = pneg %p4352_p6  ;;  %p4359_p12 = por %p4358_p11, %p4357_p0 }
  0x7d   : > { %p4360_p3 = pnand %p4359_p12, %p4353_p8 }
  0x7f   : > { %4363 = shalt.err (!%p4360_p3)
}
  0x80   : > { %s7209_s9 = smov 8   ;;  %s7210_s7 = smov 128  }
  0x81   : > { %4160 = dma.hbm_to_vmem [thread:$0]  (!%p4688_p7), %s4830_s24, 1024, %s4838_s1, %s350_s6, %s7210_s7, %s7210_s7, %s7209_s9  }
  0x82   : > { %s4127_s8 = sadd.s32 128, %s4686_s16  ;;  %s4364_s20 = scalar_lea.vmem %s4821_s19, 32 }
  0x83   : > { %p4365_p4 = scmp.ne.s32.totalorder %s4821_s19, %s4364_s20  ;;  %p7211_p8 = scmp.ne.s32.totalorder %s7208_s3, 0 }
  0x84   : > { %p4372_p11 = scmp.lt.s32.totalorder %s4821_s19, %s4821_s19  ;;  %p4373_p10 = scmp.lt.s32.totalorder %s4364_s20, %s4364_s20 }
  0x85   : > { %p4366_p13 = pneg %p7211_p8 }
  0x86   : > { %p4374_p2 = por %p4373_p10, %p4372_p11 }
  0x87   : > { %p4367_p1 = pnand %p4366_p13, %p4365_p4 }
  0x89   : > { %p4368_p0 = pneg %p4367_p1 }
  0x8b   : > { %p4375_p5 = pnand %p4374_p2, %p4368_p0 }
  0x8d   : > { %4378 = shalt.err (!%p4375_p5)
}
  0x8e   : > { %s4575_s27 = smov [#allocation16]   ;;  %s4880_s24 = scalar_lea.hbm %s7160_s2, %s4127_s8 }
  0x8f   : > { %4156 = dma.vmem_to_smem (!%p7211_p8), %s4821_s19, 32, %s4575_s27, [#allocation7]  }
  0x90   : > { %s3958_s1 = sshll.u32 %s4683_s15, 3  ;;  %s4379_s21 = scalar_lea.hbm %s4880_s24, 512 }
  0x91   : > { %p4380_p6 = scmp.ne.s32.totalorder %s4880_s24, %s4379_s21  ;;  %s4384_s20 = scalar_lea.hbm %s7160_s2, 2048 }
  0x92   : > { %p4385_p4 = scmp.lt.u32.totalorder %s4880_s24, %s7160_s2  ;;  %p4386_p8 = scmp.lt.u32.totalorder %s4384_s20, %s4379_s21 }
  0x93   : > { %p4382_p12 = pnand %p4380_p6, %p4715_p9  ;;  %p4388_p1 = scmp.lt.u32.totalorder %s4379_s21, %s4880_s24 }
  0x94   : > { %p4387_p13 = por %p4386_p8, %p4385_p4 }
  0x95   : > { %p4383_p3 = pneg %p4382_p12 }
  0x96   : > { %p4389_p0 = por %p4388_p1, %p4387_p13 }
  0x98   : > { %p4390_p11 = pnand %p4389_p0, %p4383_p3 }
  0x9a   : > { %4393 = shalt.err (!%p4390_p11)
}
  0x9b   : > { %s4394_s8 = scalar_lea.vmem %s4745_s13, 512  ;;  %s4576_s6 = smov [#allocation10]  }
  0x9c   : > { %p4395_p10 = scmp.ne.s32.totalorder %s4745_s13, %s4394_s8  ;;  %s4399_s16 = sshll.u32 %s4576_s6, 4  ;;  %s4400_s16 = int_to_ptr.vmem [resolvable:$false] %s4399_s16 }
  0x9d   : > { %s4401_s3 = scalar_lea.vmem %s4400_s16, 1024  ;;  %p4402_p6 = scmp.lt.s32.totalorder %s4745_s13, %s4400_s16 }
  0x9e   : > { %p4397_p2 = pnand %p4395_p10, %p4715_p9  ;;  %p4403_p12 = scmp.lt.s32.totalorder %s4401_s3, %s4394_s8 }
  0xa0   : > { %p4398_p5 = pneg %p4397_p2  ;;  %p4404_p4 = por %p4403_p12, %p4402_p6 }
  0xa2   : > { %p4405_p8 = pnand %p4404_p4, %p4398_p5 }
  0xa4   : > { %4408 = shalt.err (!%p4405_p8)
}
  0xa5   : > { %s7212_s21 = smov 256   ;;  %s4912_s19 = scalar_lea.hbm %s7162_s4, %s4748_s22 }
  0xa6   : > { %4166 = dma.hbm_to_vmem [thread:$0]  (!%p4688_p7), %s4880_s24, 512, %s4745_s13, %s4709_s26, %s7212_s21, %s7210_s7, %s7209_s9  }
  0xa7   : > { %s451_s27 = scalar_lea.vmem [#allocation13], %s3958_s1  ;;  %s4409_s6 = scalar_lea.hbm %s4912_s19, 128 }
  0xa8   : > { %s464_s8 = sshll.u32 %s451_s27, 4  ;;  %p4410_p3 = scmp.ne.s32.totalorder %s4912_s19, %s4409_s6  ;;  %s465_s8 = int_to_ptr.vmem [resolvable:$true] %s464_s8 }
  0xa9   : > { %s4414_s13 = scalar_lea.hbm %s7162_s4, 512  ;;  %p4415_p0 = scmp.lt.u32.totalorder %s4912_s19, %s7162_s4 }
  0xaa   : > { %p4412_p13 = pnand %p4410_p3, %p4715_p9  ;;  %p4416_p11 = scmp.lt.u32.totalorder %s4414_s13, %s4409_s6 }
  0xab   : > { %p4418_p2 = scmp.lt.u32.totalorder %s4409_s6, %s4912_s19 }
  0xac   : > { %p4413_p1 = pneg %p4412_p13  ;;  %p4417_p10 = por %p4416_p11, %p4415_p0 }
  0xae   : > { %p4419_p5 = por %p4418_p2, %p4417_p10 }
  0xb0   : > { %p4420_p6 = pnand %p4419_p5, %p4413_p1 }
  0xb2   : > { %4423 = shalt.err (!%p4420_p6)
}
  0xb3   : > { %s4424_s24 = scalar_lea.vmem %s465_s8, 128  ;;  %s4577_s3 = smov [#allocation13]  }
  0xb4   : > { %p4425_p12 = scmp.ne.s32.totalorder %s465_s8, %s4424_s24  ;;  %s4429_s21 = sshll.u32 %s4577_s3, 4  ;;  %s4430_s21 = int_to_ptr.vmem [resolvable:$false] %s4429_s21 }
  0xb5   : > { %s4431_s11 = scalar_lea.vmem %s4430_s21, 256  ;;  %p4432_p3 = scmp.lt.s32.totalorder %s465_s8, %s4430_s21 }
  0xb6   : > { %p4427_p4 = pnand %p4425_p12, %p4715_p9  ;;  %p4433_p13 = scmp.lt.s32.totalorder %s4431_s11, %s4424_s24 }
  0xb8   : > { %p4428_p8 = pneg %p4427_p4  ;;  %p4434_p7 = por %p4433_p13, %p4432_p3 }
  0xba   : > { %p4435_p0 = pnand %p4434_p7, %p4428_p8 }
  0xbc   : > { %4438 = shalt.err (!%p4435_p0)
}
  0xbd   : > { %p7213_p11 = scmp.ne.s32.totalorder %s7196_s17, 0  ;;  %s4131_s20 = sadd.s32 128, %s4748_s22 }
  0xbe   : > { %s475_s27 = scalar_lea.vmem [#allocation14], %s3958_s1  ;;  %s4940_s13 = scalar_lea.hbm %s7163_s5, %s4131_s20 }
  0xbf   : > { %4172 = dma.hbm_to_vmem [thread:$0]  (!%p7213_p11), %s4912_s19, 128, %s465_s8, %s4760_s23  }
  0xc0   : > { %s488_s6 = sshll.u32 %s475_s27, 4  ;;  %s472_s9 = scalar_lea.sflag [#allocation15], %s4683_s15  ;;  %s489_s6 = int_to_ptr.vmem [resolvable:$true] %s488_s6 }
  0xc1   : > { %s4439_s7 = scalar_lea.hbm %s4940_s13, 128  ;;  %s4444_s1 = scalar_lea.hbm %s7163_s5, 512 }
  0xc2   : > { %p4440_p7 = scmp.ne.s32.totalorder %s4940_s13, %s4439_s7  ;;  %p4445_p2 = scmp.lt.u32.totalorder %s4940_s13, %s7163_s5 }
  0xc3   : > { %p4446_p5 = scmp.lt.u32.totalorder %s4444_s1, %s4439_s7  ;;  %p4448_p12 = scmp.lt.u32.totalorder %s4439_s7, %s4940_s13 }
  0xc4   : > { %p4442_p1 = pnand %p4440_p7, %p4715_p9 }
  0xc5   : > { %p4447_p6 = por %p4446_p5, %p4445_p2 }
  0xc6   : > { %p4443_p10 = pneg %p4442_p1 }
  0xc7   : > { %p4449_p4 = por %p4448_p12, %p4447_p6 }
  0xc9   : > { %p4450_p8 = pnand %p4449_p4, %p4443_p10 }
  0xcb   : > { %4453 = shalt.err (!%p4450_p8)
}
  0xcc   : > { %s4454_s15 = scalar_lea.vmem %s489_s6, 128  ;;  %s4578_s24 = smov [#allocation14]  }
  0xcd   : > { %p4455_p3 = scmp.ne.s32.totalorder %s489_s6, %s4454_s15  ;;  %s4459_s3 = sshll.u32 %s4578_s24, 4  ;;  %s4460_s3 = int_to_ptr.vmem [resolvable:$false] %s4459_s3 }
  0xce   : > { %s4461_s21 = scalar_lea.vmem %s4460_s3, 256  ;;  %p4462_p7 = scmp.lt.s32.totalorder %s489_s6, %s4460_s3 }
  0xcf   : > { %p4457_p13 = pnand %p4455_p3, %p4715_p9  ;;  %p4463_p1 = scmp.lt.s32.totalorder %s4461_s21, %s4454_s15 }
  0xd1   : > { %p4458_p0 = pneg %p4457_p13  ;;  %p4464_p11 = por %p4463_p1, %p4462_p7 }
  0xd3   : > { %p4465_p2 = pnand %p4464_p11, %p4458_p0 }
  0xd5   : > { %4468 = shalt.err (!%p4465_p2)
}
  0xd6   : > { %p7214_p5 = scmp.ne.s32.totalorder %s7196_s17, 0  ;;  %p7215_p10 = scmp.ne.s32.totalorder %s7207_s18, 0 }
  0xd8   : > { %4175 = dma.hbm_to_vmem [thread:$0]  (!%p7214_p5), %s4940_s13, 128, %s489_s6, %s472_s9  }
  0xd9   : > { %497 = sbr.rel (%p7215_p10) target bundleno = 1059 (0x423), region = 52 }
  0xe0   : > { %s4963_s28 = sand.u32 1, %s4551_s30   ;;  %p7216_p9 = scmp.ne.s32.totalorder %s7202_s14, 0 }
  0xe1   : > { %s3965_s11 = sshll.u32 %s4963_s28, 6  ;;  %s500_s20 = scalar_lea.sflag [#allocation5], %s4963_s28 }
  0xe2   : > { %s4969_s27 = scalar_lea.vmem [#allocation4], %s3965_s11 }
  0xe3   : > { %4522 = dma.done.wait (%p7216_p9), %s500_s20, 1024  }
  0xe4   : > { %4524 = vsyncadd (%p7216_p9), %s500_s20, 4294966272  ;;  %s508_s17 = sand.u32 1, %s4788_s25   ;;  %s3966_s18 = sshll.u32 %s4963_s28, 5 }
  0xe5   : > { %s509_s6 = scalar_lea.sflag [#allocation9], %s508_s17  ;;  %s4977_s16 = scalar_lea.vmem [#allocation8], %s3966_s18 }
  0xe6   : > { %4526 = dma.done.wait (%p7216_p9), %s509_s6, 1024  }
  0xe7   : > { %4528 = vsyncadd (%p7216_p9), %s509_s6, 4294966272  ;;  %s3968_s26 = sshll.u32 %s4963_s28, 4  ;;  %s4984_s13 = scalar_lea.vmem [#allocation10], %s3966_s18 }
  0xe8   : > { %s527_s9 = scalar_lea.sflag [#allocation12], %s508_s17  ;;  %s4986_s7 = scalar_lea.vmem [#allocation11], %s3968_s26 }
  0xe9   : > { %4530 = dma.done.wait (%p7216_p9), %s527_s9, 384  }
  0xea   : > { %4532 = vsyncadd (%p7216_p9), %s527_s9, 4294966912  ;;  %s3969_s22 = sshll.u32 %s4963_s28, 3  ;;  %s545_s1 = scalar_lea.sflag [#allocation15], %s4963_s28 }
  0xeb   : > { %s4993_s23 = scalar_lea.vmem [#allocation13], %s3969_s22  ;;  %s4996_s19 = scalar_lea.vmem [#allocation14], %s3969_s22 }
  0xec   : > { %4534 = dma.done.wait (%p7216_p9), %s545_s1, 128  }
  0xed   : > { %4536 = vsyncadd (%p7216_p9), %s545_s1, 4294967168  ;;  %p7217_p11 = scmp.eq.s32.totalorder %s4788_s25, 0 }
  0xef   : > { %4538 = dma.done.wait (%p7217_p11), [#allocation7], 32   ;;  %p7218_p6 = pmov %p7217_p11 }
  0xf1   : > { %4540 = vsyncadd (%p7218_p6), [#allocation7], 4294967264 }
  0xf2   : > { %557 = sfence }
  0xf3   : > { %v634_v0 = vld [vmem:[%s4969_s27] sm:$0xff]  ;;  %v636_v1 = vld [vmem:[%s4969_s27 + $0x10] sm:$0xff]  ;;  %vm642_vm0 = vcmask 130048   ;;  %v675_v12 = vld [vmem:[%s4977_s16 + $0x8] sm:$0xff]  ;;  %s4579_s25 = smov 3   ;;  %vm724_vm1 = vcmask 23552  }
  0xf4   : > { %v638_v2 = vld [vmem:[%s4969_s27 + $0x20] sm:$0xff]  ;;  %v640_v3 = vld [vmem:[%s4969_s27 + $0x30] sm:$0xff]  ;;  %v644_v4 = vsel %vm642_vm0, %v636_v1, 0.0  ;;  %v660_v5 = vsel %vm642_vm0, %v634_v0, -inf  ;;  %v661_v6 = vsel %vm642_vm0, %v636_v1, -inf  ;;  %v643_v11 = vsel %vm642_vm0, %v634_v0, 0.0 }
  0xf5   : > { %v662_v7 = vsel %vm642_vm0, %v638_v2, -inf  ;;  %v674_v8 = vld [vmem:[%s4977_s16] sm:$0xff]  ;;  %v664_v10 = vsel %vm642_vm0, %v640_v3, -inf  ;;  %v676_v13 = vld [vmem:[%s4977_s16 + $0x10] sm:$0xff]  ;;  %v677_v14 = vld [vmem:[%s4977_s16 + $0x18] sm:$0xff]  ;;  %v693_v17 = vsel %vm642_vm0, %v675_v12, -inf  ;;  %v645_v42 = vadd.f32 %v644_v4, %v643_v11 }
  0xf6   : > { %v663_v9 = vmax.f32 %v660_v5, %v662_v7  ;;  %v692_v15 = vsel %vm642_vm0, %v674_v8, -inf  ;;  %v665_v16 = vmax.f32 %v661_v6, %v664_v10  ;;  %v694_v18 = vsel %vm642_vm0, %v676_v13, -inf  ;;  %v678_v20 = vld [vmem:[%s4984_s13] sm:$0xff]  ;;  %v679_v21 = vld [vmem:[%s4984_s13 + $0x8] sm:$0xff]  ;;  %v680_v26 = vld [vmem:[%s4984_s13 + $0x10] sm:$0xff]  ;;  %s3979_s14 = sld [smem:[#allocation16 + $0x1]] }
  0xf7   : > { %v695_v19 = vsel %vm642_vm0, %v677_v14, -inf  ;;  %v696_v22 = vmax.f32 %v692_v15, %v693_v17  ;;  %v682_v24 = vsel %vm642_vm0, %v674_v8, 0.0  ;;  %v683_v25 = vsel %vm642_vm0, %v675_v12, 0.0  ;;  %v681_v27 = vld [vmem:[%s4984_s13 + $0x18] sm:$0xff]  ;;  %v635_v36 = vld [vmem:[%s4969_s27 + $0x8] sm:$0xff]  ;;  %s5088_s8 = sld [smem:[#allocation16 + $0x2]] }
  0xf8   : > { %v697_v23 = vmax.f32 %v694_v18, %v695_v19  ;;  %v666_v28 = vmax.f32 %v663_v9, %v665_v16  ;;  %v684_v29 = vadd.f32 %v683_v25, %v682_v24  ;;  %v685_v30 = vsel %vm642_vm0, %v676_v13, 0.0  ;;  %v637_v37 = vld [vmem:[%s4969_s27 + $0x18] sm:$0xff]  ;;  %v639_v38 = vld [vmem:[%s4969_s27 + $0x28] sm:$0xff]  ;;  %v718_v19 = vld [vmem:[%s4986_s7] sm:$0xff]  ;;  %s5092_s15 = sld [smem:[#allocation16 + $0x3]]  ;;  %s5098_s24 = sld [smem:[#allocation16 + $0x4]] }
  0xf9   : > { %v700_v31 = vsel %vm642_vm0, %v678_v20, 0.0  ;;  %v701_v33 = vsel %vm642_vm0, %v679_v21, 0.0  ;;  %v710_v34 = vsel %vm642_vm0, %v678_v20, -inf  ;;  %v711_v35 = vsel %vm642_vm0, %v679_v21, -inf  ;;  %v641_v43 = vld [vmem:[%s4969_s27 + $0x38] sm:$0xff]  ;;  %v720_v16 = vld [vmem:[%s4993_s23] sm:$0xff] }
  0xfa   : > { %v698_v32 = vmax.f32 %v696_v22, %v697_v23  ;;  %778 = vrot.lane.b32.xlu1 %v666_v28, %s4579_s25  ;;  %v712_v39 = vsel %vm642_vm0, %v680_v26, -inf  ;;  %v713_v40 = vsel %vm642_vm0, %v681_v27, -inf  ;;  %v714_v41 = vmax.f32 %v710_v34, %v711_v35  ;;  %v722_v20 = vld [vmem:[%s4996_s19] sm:$0xff]  ;;  %s4581_s3 = smov 127   ;;  %s3980_s21 = sld [smem:[#allocation16 + $0x8]] }
  0xfb   : > { %v715_v45 = vmax.f32 %v712_v39, %v713_v40  ;;  %v646_v46 = vsel %vm642_vm0, %v638_v2, 0.0  ;;  %v648_v47 = vsel %vm642_vm0, %v640_v3, 0.0  ;;  %v650_v49 = vsel %vm642_vm0, %v635_v36, 0.0  ;;  %v719_v22 = vld [vmem:[%s4986_s7 + $0x8] sm:$0xff]  ;;  %s5108_s20 = sld [smem:[#allocation16 + $0x5]]  ;;  %s4582_s17 = smov 126  }
  0xfc   : > { %v699_v44 = vmul.f32 0.0, %v698_v32  ;;  %v647_v48 = vadd.f32 %v646_v46, %v645_v42  ;;  %v651_v50 = vsel %vm642_vm0, %v637_v37, 0.0  ;;  %v653_v51 = vsel %vm642_vm0, %v639_v38, 0.0  ;;  %s3981_s18 = sld [smem:[#allocation16 + $0xf]]  ;;  %s4583_s6 = smov 125  }
  0xfd   : > { %v716_v52 = vmax.f32 %v714_v41, %v715_v45  ;;  %v652_v53 = vadd.f32 %v651_v50, %v650_v49  ;;  %v655_v54 = vsel %vm642_vm0, %v641_v43, 0.0  ;;  %v667_v55 = vsel %vm642_vm0, %v635_v36, -inf  ;;  %s3982_s16 = sld [smem:[#allocation16 + $0x16]]  ;;  %s4584_s26 = smov 124  }
  0xfe   : > { %772 = vrot.lane.b32.xlu0 %v699_v44, %s4579_s25  ;;  %v649_v56 = vadd.f32 %v648_v47, %v647_v48  ;;  %v668_v57 = vsel %vm642_vm0, %v637_v37, -inf  ;;  %v669_v58 = vsel %vm642_vm0, %v639_v38, -inf  ;;  %v671_v59 = vsel %vm642_vm0, %v641_v43, -inf  ;;  %s3983_s13 = sld [smem:[#allocation16 + $0x1d]]  ;;  %s4585_s9 = smov 123  }
  0xff   : > { %v717_v60 = vmul.f32 0.0, %v716_v52  ;;  %v654_v61 = vadd.f32 %v653_v51, %v652_v53  ;;  %v670_v62 = vmax.f32 %v667_v55, %v669_v58  ;;  %v672_v63 = vmax.f32 %v668_v57, %v671_v59  ;;  %s3984_s7 = sld [smem:[#allocation16 + $0x24]]  ;;  %s3985_s22 = sld [smem:[#allocation16 + $0x2b]] }
 0x100   : > { %v658_v0 = vmul.f32 0.25, %v649_v56  ;;  %v702_v1 = vadd.f32 %v701_v33, %v700_v31  ;;  %v703_v2 = vsel %vm642_vm0, %v680_v26, 0.0  ;;  %v705_v4 = vsel %vm642_vm0, %v681_v27, 0.0  ;;  %s3987_s23 = sld [smem:[#allocation16 + $0x9]]  ;;  %s3988_s1 = sld [smem:[#allocation16 + $0x10]] }
 0x101   : > { %787 = vrot.lane.b32.xlu1 %v717_v60, %s4579_s25  ;;  %v656_v3 = vadd.f32 %v655_v54, %v654_v61  ;;  %v686_v5 = vadd.f32 %v685_v30, %v684_v29  ;;  %v687_v6 = vsel %vm642_vm0, %v677_v14, 0.0  ;;  %v673_v7 = vmax.f32 %v670_v62, %v672_v63  ;;  %s3989_s19 = sld [smem:[#allocation16 + $0x17]]  ;;  %p7410_p4 = scmp.ne.s32.totalorder %s7204_s10, 0 }
 0x102   : > { %756 = vrot.lane.b32.xlu0 %v658_v0, %s4579_s25  ;;  %v704_v8 = vadd.f32 %v703_v2, %v702_v1  ;;  %vm729_vm2 = vcmask 179352   ;;  %v4580_v11 = vmov 0.0   ;;  %vm727_vm3 = vcmask 21504  }
 0x103   : > { %v659_v9 = vmul.f32 0.25, %v656_v3  ;;  %v688_v10 = vadd.f32 %v687_v6, %v686_v5  ;;  %735 = vst.msk [vmem:[#allocation2 + $0x18] sm:$0xff] %vm724_vm1, %v4580_v11  ;;  %736 = vst.msk [vmem:[#allocation2 + $0x20] sm:$0xff] %vm724_vm1, %v4580_v11  ;;  %vm732_vm4 = vcmask 177304   ;;  %v721_v18 = vmul.f32 0.0, %v720_v16 }
 0x104   : > { %725 = vst.msk [vmem:[#allocation2] sm:$0xff] %vm724_vm1, %v4580_v11  ;;  %726 = vst.msk [vmem:[#allocation2 + $0x8] sm:$0xff] %vm724_vm1, %v4580_v11  ;;  %v706_v12 = vadd.f32 %v705_v4, %v704_v8  ;;  %v723_v21 = vmul.f32 0.0, %v722_v20  ;;  %vm762_vm5 = vcmask 154648   ;;  %vm752_vm6 = vcmask 154653  }
 0x105   : > { %742 = vst.msk [vmem:[#allocation2 + $0x30] sm:$0xff] %vm724_vm1, %v4580_v11  ;;  %743 = vst.msk [vmem:[#allocation2 + $0x38] sm:$0xff] %vm724_vm1, %v4580_v11  ;;  %758 = vrot.lane.b32.xlu1 %v659_v9, %s4579_s25  ;;  %v689_v13 = vmul.f32 0.25, %v688_v10  ;;  %vm769_vm7 = vcmask 149528   ;;  %v929_v31 = vstv %s3979_s14  ;;  %v1069_v36 = vstv %s5088_s8  ;;  %s3991_s14 = sld [smem:[#allocation16 + $0x25]]  ;;  %s3992_s8 = sld [smem:[#allocation16 + $0x2c]] }
 0x106   : > { %738 = vst.msk [vmem:[#allocation2 + $0x18] sm:$0xff] %vm729_vm2, %v4580_v11  ;;  %739 = vst.msk [vmem:[#allocation2 + $0x20] sm:$0xff] %vm729_vm2, %v4580_v11  ;;  %780 = vrot.lane.b32.xlu0 %v673_v7, %s4579_s25  ;;  %v707_v14 = vmul.f32 0.25, %v706_v12  ;;  %v1209_v42 = vstv %s5092_s15  ;;  %v1349_v45 = vstv %s5098_s24  ;;  %v943_v48 = vstv %s3980_s21  ;;  %s3994_s15 = sld [smem:[#allocation16 + $0xa]]  ;;  %s3995_s24 = sld [smem:[#allocation16 + $0x11]] }
 0x107   : > { %730 = vst.msk [vmem:[#allocation2] sm:$0xff] %vm729_vm2, %v4580_v11  ;;  %731 = vst.msk [vmem:[#allocation2 + $0x8] sm:$0xff] %vm729_vm2, %v4580_v11  ;;  %v691_v15 = vmul.f32 0.0, %v689_v13  ;;  %v1489_v50 = vstv %s5108_s20  ;;  %v964_v54 = vstv %s3981_s18  ;;  %vm828_vm8 = vcmask 1046528   ;;  %s3996_s21 = sld [smem:[#allocation16 + $0x18]]  ;;  %s3997_s20 = sld [smem:[#allocation16 + $0x1f]] }
 0x108   : > { %745 = vst.msk [vmem:[#allocation2 + $0x30] sm:$0xff] %vm729_vm2, %v4580_v11  ;;  %746 = vst.msk [vmem:[#allocation2 + $0x38] sm:$0xff] %vm729_vm2, %v4580_v11  ;;  %v709_v17 = vmul.f32 0.0, %v707_v14  ;;  %v985_v61 = vstv %s3982_s16  ;;  %vm846_vm9 = vcmask 1045504   ;;  %v1006_v6 = vstv %s3983_s13  ;;  %s3998_s18 = sld [smem:[#allocation16 + $0x26]]  ;;  %s3999_s16 = sld [smem:[#allocation16 + $0x2d]] }
 0x109   : > { %737 = vst.msk [vmem:[#allocation2 + $0x28] sm:$0x3f] %vm727_vm3, %v4580_v11  ;;  %728 = vst.msk [vmem:[#allocation2 + $0x10] sm:$0x3f] %vm727_vm3, %v4580_v11  ;;  %vm864_vm10 = vcmask 1044480   ;;  %vm882_vm11 = vcmask 1043456  }
 0x10a   : > { %744 = vst.msk [vmem:[#allocation2 + $0x40] sm:$0x3f] %vm727_vm3, %v4580_v11  ;;  %766 = vrot.lane.b32.xlu1 %v709_v17, %s4579_s25  ;;  %749 = vrot.lane.b32.xlu0 %v691_v15, %s4579_s25  ;;  %v1027_v15 = vstv %s3984_s7  ;;  %vm900_vm12 = vcmask 1042432   ;;  %vm918_vm13 = vcmask 1041408   ;;  %s4001_s13 = sld [smem:[#allocation16 + $0xb]]  ;;  %s4002_s7 = sld [smem:[#allocation16 + $0x12]] }
 0x10b   : > { %740 = vst.msk [vmem:[#allocation2 + $0x28] sm:$0x3f] %vm732_vm4, %v4580_v11  ;;  %733 = vst.msk [vmem:[#allocation2 + $0x10] sm:$0x3f] %vm732_vm4, %v4580_v11 }
 0x10c   : > { %747 = vst.msk [vmem:[#allocation2 + $0x40] sm:$0x3f] %vm732_vm4, %v4580_v11 }
 0x10e   : > { %798 = vrot.lane.b32.xlu1 %v718_v19, %s4579_s25  ;;  %792 = vrot.lane.b32.xlu0 %v721_v18, %s4579_s25 }
 0x112   : > { %807 = vrot.lane.b32.xlu1 %v723_v21, %s4579_s25  ;;  %800 = vrot.lane.b32.xlu0 %v719_v22, %s4579_s25  ;;  %s3990_s25 = sld [smem:[#allocation16 + $0x1e]] }
 0x16c   : > { %v779_v23 = vpop.permute.xlu1 %778 }
 0x16d   : > { %784 = vst.msk [vmem:[#allocation2 + $0x1b] sm:$0xff] %vm762_vm5, %v779_v23 }
 0x170   : > { %v773_v24 = vpop.permute.xlu0 %772 }
 0x171   : > { %775 = vst.msk [vmem:[#allocation2 + $0x13] sm:$0xe0] %vm752_vm6, %v773_v24  ;;  %v1048_v24 = vstv %s3985_s22  ;;  %s4003_s22 = sld [smem:[#allocation16 + $0x19]] }
 0x173   : > { %v788_v25 = vpop.permute.xlu1 %787 }
 0x174   : > { %790 = vst.msk [vmem:[#allocation2 + $0x2b] sm:$0x7] %vm769_vm7, %v788_v25  ;;  %v757_v26 = vpop.permute.xlu0 %756 }
 0x175   : > { %763 = vst.msk [vmem:[#allocation2 + $0x3] sm:$0xff] %vm762_vm5, %v757_v26 }
 0x177   : > { %v759_v27 = vpop.permute.xlu1 %758 }
 0x178   : > { %764 = vst.msk [vmem:[#allocation2 + $0xb] sm:$0xff] %vm762_vm5, %v759_v27  ;;  %v781_v28 = vpop.permute.xlu0 %780 }
 0x179   : > { %785 = vst.msk [vmem:[#allocation2 + $0x23] sm:$0xff] %vm762_vm5, %v781_v28 }
 0x17c   : > { %v767_v29 = vpop.permute.xlu1 %766  ;;  %v750_v30 = vpop.permute.xlu0 %749 }
 0x17d   : > { %770 = vst.msk [vmem:[#allocation2 + $0x13] sm:$0x7] %vm769_vm7, %v767_v29 }
 0x17e   : > { %753 = vst.msk [vmem:[#allocation2 - $0x5] sm:$0xe0] %vm752_vm6, %v750_v30 }
 0x17f   : > { %v5094_v32 = vld [vmem:[#allocation2 + $0x8] sm:$0xff] }
 0x180   : > { %v931_v33 = vmul.f32 %v929_v31, %v5094_v32  ;;  %v799_v34 = vpop.permute.xlu1 %798  ;;  %v793_v35 = vpop.permute.xlu0 %792  ;;  %v1071_v38 = vmul.f32 %v1069_v36, %v5094_v32  ;;  %v1211_v43 = vmul.f32 %v1209_v42, %v5094_v32  ;;  %v1351_v47 = vmul.f32 %v1349_v45, %v5094_v32 }
 0x181   : > { %804 = vst.msk [vmem:[#allocation2 + $0x33] sm:$0xff] %vm762_vm5, %v799_v34  ;;  %v945_v52 = vmul.f32 %v943_v48, %v5094_v32  ;;  %v1491_v53 = vmul.f32 %v1489_v50, %v5094_v32  ;;  %v966_v60 = vmul.f32 %v964_v54, %v5094_v32  ;;  %v987_v5 = vmul.f32 %v985_v61, %v5094_v32 }
 0x182   : > { %795 = vst.msk [vmem:[#allocation2 + $0x2b] sm:$0xe0] %vm752_vm6, %v793_v35  ;;  %936 = vrot.lane.b32.xlu1 %v931_v33, %s4581_s3  ;;  %v1008_v14 = vmul.f32 %v1006_v6, %v5094_v32  ;;  %v1029_v23 = vmul.f32 %v1027_v15, %v5094_v32  ;;  %v1050_v33 = vmul.f32 %v1048_v24, %v5094_v32  ;;  %v1083_v34 = vstv %s3987_s23  ;;  %s4004_s23 = sld [smem:[#allocation16 + $0x20]] }
 0x183   : > { %v951_v59 = vrot.slane %v945_v52, 1  ;;  %v972_v4 = vrot.slane %v966_v60, 2  ;;  %v993_v13 = vrot.slane %v987_v5, 3 }
 0x184   : > { %v808_v39 = vpop.permute.xlu1 %807  ;;  %v801_v40 = vpop.permute.xlu0 %800  ;;  %v5117_v46 = vld [vmem:[#allocation2 + $0x10] sm:$0x3f]  ;;  %v1014_v22 = vrot.slane %v1008_v14, 4 }
 0x185   : > { %v5103_v37 = vld [vmem:[#allocation2] sm:$0xff]  ;;  %810 = vst.msk [vmem:[#allocation2 + $0x43] sm:$0x7] %vm769_vm7, %v808_v39  ;;  %v946_v51 = vmul.f32 %v943_v48, %v5117_v46  ;;  %v967_v57 = vmul.f32 %v964_v54, %v5117_v46  ;;  %v988_v1 = vmul.f32 %v985_v61, %v5117_v46  ;;  %v1009_v9 = vmul.f32 %v1006_v6, %v5117_v46 }
 0x186   : > { %v930_v41 = vmul.f32 %v929_v31, %v5103_v37  ;;  %805 = vst.msk [vmem:[#allocation2 + $0x3b] sm:$0xff] %vm762_vm5, %v801_v40  ;;  %1076 = vrot.lane.b32.xlu1 %v1071_v38, %s4582_s17  ;;  %v1070_v44 = vmul.f32 %v1069_v36, %v5103_v37  ;;  %v1210_v49 = vmul.f32 %v1209_v42, %v5103_v37  ;;  %v1035_v31 = vrot.slane %v1029_v23, 5 }
 0x187   : > { %v1350_v55 = vmul.f32 %v1349_v45, %v5103_v37  ;;  %v953_v56 = vrot.slane %v946_v51, 1  ;;  %v944_v58 = vmul.f32 %v943_v48, %v5103_v37  ;;  %v1490_v63 = vmul.f32 %v1489_v50, %v5103_v37 }
 0x188   : > { %934 = vrot.lane.b32.xlu0 %v930_v41, %s4581_s3  ;;  %v974_v0 = vrot.slane %v967_v57, 2  ;;  %v965_v3 = vmul.f32 %v964_v54, %v5103_v37  ;;  %v995_v8 = vrot.slane %v988_v1, 3  ;;  %v986_v12 = vmul.f32 %v985_v61, %v5103_v37 }
 0x189   : > { %v954_v62 = vsel %vm828_vm8, %v951_v59, %v953_v56  ;;  %v950_v2 = vrot.slane %v944_v58, 1  ;;  %v1016_v17 = vrot.slane %v1009_v9, 4  ;;  %v1030_v18 = vmul.f32 %v1027_v15, %v5117_v46 }
 0x18a   : > { %1216 = vrot.lane.b32.xlu1 %v1211_v43, %s4583_s6  ;;  %v975_v7 = vsel %vm846_vm9, %v972_v4, %v974_v0  ;;  %v971_v11 = vrot.slane %v965_v3, 2  ;;  %v996_v16 = vsel %vm864_vm10, %v993_v13, %v995_v8  ;;  %v992_v20 = vrot.slane %v986_v12, 3 }
 0x18b   : > { %v952_v10 = vsel %vm828_vm8, %v950_v2, %v951_v59  ;;  %v1007_v21 = vmul.f32 %v1006_v6, %v5103_v37  ;;  %v1017_v25 = vsel %vm882_vm11, %v1014_v22, %v1016_v17  ;;  %v1037_v26 = vrot.slane %v1030_v18, 5 }
 0x18c   : > { %1074 = vrot.lane.b32.xlu0 %v1070_v44, %s4582_s17  ;;  %v973_v19 = vsel %vm846_vm9, %v971_v11, %v972_v4  ;;  %v1051_v27 = vmul.f32 %v1048_v24, %v5117_v46  ;;  %v994_v28 = vsel %vm864_vm10, %v992_v20, %v993_v13  ;;  %v1028_v30 = vmul.f32 %v1027_v15, %v5103_v37 }
 0x18d   : > { %v1013_v29 = vrot.slane %v1007_v21, 4  ;;  %v1038_v35 = vsel %vm900_vm12, %v1035_v31, %v1037_v26  ;;  %v1086_v38 = vmul.f32 %v1083_v34, %v5117_v46  ;;  %v1049_v41 = vmul.f32 %v1048_v24, %v5103_v37 }
 0x18e   : > { %1356 = vrot.lane.b32.xlu1 %v1351_v47, %s4584_s26  ;;  %v1058_v36 = vrot.slane %v1051_v27, 6  ;;  %v1034_v40 = vrot.slane %v1028_v30, 5  ;;  %v1056_v42 = vrot.slane %v1050_v33, 6  ;;  %v1085_v43 = vmul.f32 %v1083_v34, %v5094_v32 }
 0x18f   : > { %v1015_v39 = vsel %vm882_vm11, %v1013_v29, %v1014_v22  ;;  %v1104_v44 = vstv %s3988_s1  ;;  %v1093_v47 = vrot.slane %v1086_v38, 1  ;;  %v1055_v50 = vrot.slane %v1049_v41, 6  ;;  %s4005_s1 = sld [smem:[#allocation16 + $0x27]] }
 0x190   : > { %1214 = vrot.lane.b32.xlu0 %v1210_v49, %s4583_s6  ;;  %v1059_v45 = vsel %vm918_vm13, %v1056_v42, %v1058_v36  ;;  %v1107_v48 = vmul.f32 %v1104_v44, %v5117_v46  ;;  %v1036_v49 = vsel %vm900_vm12, %v1034_v40, %v1035_v31  ;;  %v1084_v51 = vmul.f32 %v1083_v34, %v5103_v37 }
 0x191   : > { %v1091_v52 = vrot.slane %v1085_v43, 1  ;;  %v1125_v54 = vstv %s3989_s19  ;;  %v1057_v58 = vsel %vm918_vm13, %v1055_v50, %v1056_v42  ;;  %v1105_v60 = vmul.f32 %v1104_v44, %v5103_v37  ;;  %s4006_s19 = sld [smem:[#allocation16 + $0x2e]] }
 0x192   : > { %1496 = vrot.lane.b32.xlu1 %v1491_v53, %s4585_s9  ;;  %v1106_v53 = vmul.f32 %v1104_v44, %v5094_v32  ;;  %v1114_v56 = vrot.slane %v1107_v48, 2  ;;  %v1128_v57 = vmul.f32 %v1125_v54, %v5117_v46  ;;  %v1090_v59 = vrot.slane %v1084_v51, 1 }
 0x193   : > { %v1111_v4 = vrot.slane %v1105_v60, 2  ;;  %v1126_v5 = vmul.f32 %v1125_v54, %v5103_v37  ;;  %v1167_v8 = vstv %s3991_s14  ;;  %v1188_v17 = vstv %s3992_s8  ;;  %s4009_s14 = sld [smem:[#allocation16 + $0x13]]  ;;  %s4010_s8 = sld [smem:[#allocation16 + $0x1a]] }
 0x194   : > { %1354 = vrot.lane.b32.xlu0 %v1350_v55, %s4584_s26  ;;  %v1094_v55 = vsel %vm828_vm8, %v1091_v52, %v1093_v47  ;;  %v1112_v61 = vrot.slane %v1106_v53, 2  ;;  %v1135_v1 = vrot.slane %v1128_v57, 3  ;;  %v1092_v3 = vsel %vm828_vm8, %v1090_v59, %v1091_v52 }
 0x195   : > { %v1170_v11 = vmul.f32 %v1167_v8, %v5117_v46  ;;  %v1132_v13 = vrot.slane %v1126_v5, 3  ;;  %v1191_v20 = vmul.f32 %v1188_v17, %v5117_v46  ;;  %v1168_v23 = vmul.f32 %v1167_v8, %v5103_v37 }
 0x196   : > { %957 = vrot.lane.b32.xlu1 %v954_v62, %s4581_s3  ;;  %v1127_v62 = vmul.f32 %v1125_v54, %v5094_v32  ;;  %v1115_v0 = vsel %vm846_vm9, %v1112_v61, %v1114_v56  ;;  %v1113_v12 = vsel %vm846_vm9, %v1111_v4, %v1112_v61  ;;  %v1223_v26 = vstv %s3994_s15  ;;  %s4011_s15 = sld [smem:[#allocation16 + $0x21]] }
 0x197   : > { %v1226_v29 = vmul.f32 %v1223_v26, %v5117_v46  ;;  %v1174_v31 = vrot.slane %v1168_v23, 5  ;;  %v1189_v33 = vmul.f32 %v1188_v17, %v5103_v37  ;;  %v1244_v36 = vstv %s3995_s24  ;;  %s4012_s24 = sld [smem:[#allocation16 + $0x28]] }
 0x198   : > { %1494 = vrot.lane.b32.xlu0 %v1490_v63, %s4585_s9  ;;  %v1146_v63 = vstv %s3990_s25  ;;  %v1133_v6 = vrot.slane %v1127_v62, 3  ;;  %v1247_v40 = vmul.f32 %v1244_v36, %v5117_v46  ;;  %v1224_v43 = vmul.f32 %v1223_v26, %v5103_v37  ;;  %s4008_s25 = sld [smem:[#allocation16 + $0xc]] }
 0x199   : > { %v1149_v2 = vmul.f32 %v1146_v63, %v5117_v46  ;;  %v1147_v14 = vmul.f32 %v1146_v63, %v5103_v37  ;;  %v1195_v42 = vrot.slane %v1189_v33, 6  ;;  %v1265_v47 = vstv %s3996_s21  ;;  %s4013_s21 = sld [smem:[#allocation16 + $0x2f]] }
 0x19a   : > { %978 = vrot.lane.b32.xlu1 %v975_v7, %s4581_s3  ;;  %v1148_v7 = vmul.f32 %v1146_v63, %v5094_v32  ;;  %v1136_v9 = vsel %vm864_vm10, %v1133_v6, %v1135_v1  ;;  %v1134_v21 = vsel %vm864_vm10, %v1132_v13, %v1133_v6  ;;  %v1268_v50 = vmul.f32 %v1265_v47, %v5117_v46 }
 0x19b   : > { %v1153_v22 = vrot.slane %v1147_v14, 4  ;;  %v1230_v52 = vrot.slane %v1224_v43, 1  ;;  %v1245_v53 = vmul.f32 %v1244_v36, %v5103_v37  ;;  %v1286_v56 = vstv %s3997_s20  ;;  %s4015_s20 = sld [smem:[#allocation16 + $0xd]] }
 0x19c   : > { %955 = vrot.lane.b32.xlu0 %v952_v10, %s4581_s3  ;;  %v1156_v10 = vrot.slane %v1149_v2, 4  ;;  %v1154_v15 = vrot.slane %v1148_v7, 4  ;;  %v1289_v59 = vmul.f32 %v1286_v56, %v5117_v46  ;;  %v1266_v62 = vmul.f32 %v1265_v47, %v5103_v37 }
 0x19d   : > { %v1251_v61 = vrot.slane %v1245_v53, 2  ;;  %v1307_v1 = vstv %s3998_s18  ;;  %v1287_v7 = vmul.f32 %v1286_v56, %v5103_v37  ;;  %s5340_s18 = sld [smem:[#allocation16 + $0x6]] }
 0x19e   : > { %999 = vrot.lane.b32.xlu1 %v996_v16, %s4581_s3  ;;  %v1169_v16 = vmul.f32 %v1167_v8, %v5094_v32  ;;  %v1157_v18 = vsel %vm882_vm11, %v1154_v15, %v1156_v10  ;;  %v1155_v30 = vsel %vm882_vm11, %v1153_v22, %v1154_v15  ;;  %v1310_v4 = vmul.f32 %v1307_v1, %v5117_v46 }
 0x19f   : > { %v1272_v6 = vrot.slane %v1266_v62, 3  ;;  %v1328_v10 = vstv %s3999_s16  ;;  %v1293_v15 = vrot.slane %v1287_v7, 4  ;;  %s4016_s16 = sld [smem:[#allocation16 + $0x14]] }
 0x1a0   : > { %976 = vrot.lane.b32.xlu0 %v973_v19, %s4581_s3  ;;  %v1177_v19 = vrot.slane %v1170_v11, 5  ;;  %v1175_v24 = vrot.slane %v1169_v16, 5  ;;  %v1331_v13 = vmul.f32 %v1328_v10, %v5117_v46  ;;  %v1308_v16 = vmul.f32 %v1307_v1, %v5103_v37 }
 0x1a2   : > { %1020 = vrot.lane.b32.xlu1 %v1017_v25, %s4581_s3  ;;  %v1190_v25 = vmul.f32 %v1188_v17, %v5094_v32  ;;  %v1178_v27 = vsel %vm900_vm12, %v1175_v24, %v1177_v19  ;;  %v1176_v41 = vsel %vm900_vm12, %v1174_v31, %v1175_v24  ;;  %v1363_v19 = vstv %s4001_s13  ;;  %s4017_s13 = sld [smem:[#allocation16 + $0x1b]] }
 0x1a3   : > { %v1366_v22 = vmul.f32 %v1363_v19, %v5117_v46  ;;  %v1314_v24 = vrot.slane %v1308_v16, 5 }
 0x1a4   : > { %997 = vrot.lane.b32.xlu0 %v994_v28, %s4581_s3  ;;  %v1198_v28 = vrot.slane %v1191_v20, 6  ;;  %v1196_v34 = vrot.slane %v1190_v25, 6  ;;  %v1329_v25 = vmul.f32 %v1328_v10, %v5103_v37 }
 0x1a6   : > { %1041 = vrot.lane.b32.xlu1 %v1038_v35, %s4581_s3  ;;  %v1225_v35 = vmul.f32 %v1223_v26, %v5094_v32  ;;  %v1199_v38 = vsel %vm918_vm13, %v1196_v34, %v1198_v28  ;;  %v1197_v51 = vsel %vm918_vm13, %v1195_v42, %v1196_v34  ;;  %v1384_v28 = vstv %s4002_s7  ;;  %s4018_s7 = sld [smem:[#allocation16 + $0x22]] }
 0x1a7   : > { %v1387_v31 = vmul.f32 %v1384_v28, %v5117_v46  ;;  %v1335_v34 = vrot.slane %v1329_v25, 6 }
 0x1a8   : > { %1018 = vrot.lane.b32.xlu0 %v1015_v39, %s4581_s3  ;;  %v1233_v39 = vrot.slane %v1226_v29, 1  ;;  %v1231_v44 = vrot.slane %v1225_v35, 1  ;;  %v1364_v35 = vmul.f32 %v1363_v19, %v5103_v37 }
 0x1aa   : > { %1062 = vrot.lane.b32.xlu1 %v1059_v45, %s4581_s3  ;;  %v1246_v45 = vmul.f32 %v1244_v36, %v5094_v32  ;;  %v1234_v48 = vsel %vm828_vm8, %v1231_v44, %v1233_v39  ;;  %v1232_v60 = vsel %vm828_vm8, %v1230_v52, %v1231_v44  ;;  %v1405_v39 = vstv %s4003_s22  ;;  %s4586_s22 = smov 122  }
 0x1ab   : > { %v1408_v42 = vmul.f32 %v1405_v39, %v5117_v46  ;;  %v1370_v44 = vrot.slane %v1364_v35, 1 }
 0x1ac   : > { %1039 = vrot.lane.b32.xlu0 %v1036_v49, %s4581_s3  ;;  %v1254_v49 = vrot.slane %v1247_v40, 2  ;;  %v1252_v54 = vrot.slane %v1246_v45, 2  ;;  %v1385_v45 = vmul.f32 %v1384_v28, %v5103_v37 }
 0x1ae   : > { %1097 = vrot.lane.b32.xlu1 %v1094_v55, %s4582_s17  ;;  %v1267_v55 = vmul.f32 %v1265_v47, %v5094_v32  ;;  %v1255_v57 = vsel %vm846_vm9, %v1252_v54, %v1254_v49  ;;  %v1253_v5 = vsel %vm846_vm9, %v1251_v61, %v1252_v54  ;;  %v1426_v49 = vstv %s4004_s23  ;;  %s4019_s23 = sld [smem:[#allocation16 + $0x29]] }
 0x1af   : > { %v1429_v52 = vmul.f32 %v1426_v49, %v5117_v46  ;;  %v1391_v54 = vrot.slane %v1385_v45, 2 }
 0x1b0   : > { %1060 = vrot.lane.b32.xlu0 %v1057_v58, %s4581_s3  ;;  %v1275_v58 = vrot.slane %v1268_v50, 3  ;;  %v1273_v63 = vrot.slane %v1267_v55, 3  ;;  %v1406_v55 = vmul.f32 %v1405_v39, %v5103_v37 }
 0x1b2   : > { %1118 = vrot.lane.b32.xlu1 %v1115_v0, %s4582_s17  ;;  %v1288_v0 = vmul.f32 %v1286_v56, %v5094_v32  ;;  %v1276_v2 = vsel %vm864_vm10, %v1273_v63, %v1275_v58  ;;  %v1274_v14 = vsel %vm864_vm10, %v1272_v6, %v1273_v63  ;;  %v1447_v58 = vstv %s4005_s1  ;;  %s4020_s1 = sld [smem:[#allocation16 + $0x30]] }
 0x1b3   : > { %v1450_v61 = vmul.f32 %v1447_v58, %v5117_v46  ;;  %v1412_v63 = vrot.slane %v1406_v55, 3  ;;  %v1587_v55 = vstv %s4012_s24  ;;  %s4033_s24 = sld [smem:[#allocation16 + $0x55]] }
 0x1b4   : > { %1095 = vrot.lane.b32.xlu0 %v1092_v3, %s4582_s17  ;;  %v1296_v3 = vrot.slane %v1289_v59, 4  ;;  %v1294_v8 = vrot.slane %v1288_v0, 4  ;;  %v1427_v0 = vmul.f32 %v1426_v49, %v5103_v37 }
 0x1b6   : > { %1139 = vrot.lane.b32.xlu1 %v1136_v9, %s4582_s17  ;;  %v1309_v9 = vmul.f32 %v1307_v1, %v5094_v32  ;;  %v1297_v11 = vsel %vm882_vm11, %v1294_v8, %v1296_v3  ;;  %v1295_v23 = vsel %vm882_vm11, %v1293_v15, %v1294_v8  ;;  %v1468_v3 = vstv %s4006_s19  ;;  %s4029_s19 = sld [smem:[#allocation16 + $0x39]] }
 0x1b7   : > { %v1471_v6 = vmul.f32 %v1468_v3, %v5117_v46  ;;  %v1433_v8 = vrot.slane %v1427_v0, 4  ;;  %v1589_v0 = vmul.f32 %v1587_v55, %v5094_v32 }
 0x1b8   : > { %1116 = vrot.lane.b32.xlu0 %v1113_v12, %s4582_s17  ;;  %v1317_v12 = vrot.slane %v1310_v4, 5  ;;  %v1315_v17 = vrot.slane %v1309_v9, 5  ;;  %v1448_v9 = vmul.f32 %v1447_v58, %v5103_v37 }
 0x1ba   : > { %1160 = vrot.lane.b32.xlu1 %v1157_v18, %s4582_s17  ;;  %v1330_v18 = vmul.f32 %v1328_v10, %v5094_v32  ;;  %v1318_v20 = vsel %vm900_vm12, %v1315_v17, %v1317_v12  ;;  %v1316_v33 = vsel %vm900_vm12, %v1314_v24, %v1315_v17  ;;  %v1503_v12 = vstv %s4008_s25  ;;  %s5422_s25 = sld [smem:[#allocation16 + $0x32]] }
 0x1bb   : > { %v1506_v15 = vmul.f32 %v1503_v12, %v5117_v46  ;;  %v1454_v17 = vrot.slane %v1448_v9, 5  ;;  %v1588_v9 = vmul.f32 %v1587_v55, %v5103_v37 }
 0x1bc   : > { %1137 = vrot.lane.b32.xlu0 %v1134_v21, %s4582_s17  ;;  %v1338_v21 = vrot.slane %v1331_v13, 6  ;;  %v1336_v26 = vrot.slane %v1330_v18, 6  ;;  %v1469_v18 = vmul.f32 %v1468_v3, %v5103_v37 }
 0x1be   : > { %1181 = vrot.lane.b32.xlu1 %v1178_v27, %s4582_s17  ;;  %v1365_v27 = vmul.f32 %v1363_v19, %v5094_v32  ;;  %v1339_v29 = vsel %vm918_vm13, %v1336_v26, %v1338_v21  ;;  %v1337_v43 = vsel %vm918_vm13, %v1335_v34, %v1336_v26  ;;  %v1524_v21 = vstv %s4009_s14  ;;  %s4030_s14 = sld [smem:[#allocation16 + $0x40]] }
 0x1bf   : > { %v1527_v24 = vmul.f32 %v1524_v21, %v5117_v46  ;;  %v1475_v26 = vrot.slane %v1469_v18, 6 }
 0x1c0   : > { %1158 = vrot.lane.b32.xlu0 %v1155_v30, %s4582_s17  ;;  %v1373_v30 = vrot.slane %v1366_v22, 1  ;;  %v1371_v36 = vrot.slane %v1365_v27, 1  ;;  %v1504_v27 = vmul.f32 %v1503_v12, %v5103_v37 }
 0x1c1   : > { %v1534_v34 = vrot.slane %v1527_v24, 2  ;;  %v1629_v24 = vstv %s5340_s18  ;;  %s5504_s18 = sld [smem:[#allocation16 + $0x33]] }
 0x1c2   : > { %1202 = vrot.lane.b32.xlu1 %v1199_v38, %s4582_s17  ;;  %v1386_v38 = vmul.f32 %v1384_v28, %v5094_v32  ;;  %v1374_v40 = vsel %vm828_vm8, %v1371_v36, %v1373_v30  ;;  %v1372_v53 = vsel %vm828_vm8, %v1370_v44, %v1371_v36 }
 0x1c4   : > { %1179 = vrot.lane.b32.xlu0 %v1176_v41, %s4582_s17  ;;  %v1394_v41 = vrot.slane %v1387_v31, 2  ;;  %v1392_v47 = vrot.slane %v1386_v38, 2  ;;  %v1545_v31 = vstv %s4010_s8  ;;  %v1510_v38 = vrot.slane %v1504_v27, 1  ;;  %s4031_s8 = sld [smem:[#allocation16 + $0x47]] }
 0x1c5   : > { %v1548_v35 = vmul.f32 %v1545_v31, %v5117_v46 }
 0x1c6   : > { %1237 = vrot.lane.b32.xlu1 %v1234_v48, %s4583_s6  ;;  %v1407_v48 = vmul.f32 %v1405_v39, %v5094_v32  ;;  %v1395_v50 = vsel %vm846_vm9, %v1392_v47, %v1394_v41  ;;  %v1393_v62 = vsel %vm846_vm9, %v1391_v54, %v1392_v47  ;;  %v1525_v39 = vmul.f32 %v1524_v21, %v5103_v37 }
 0x1c7   : > { %v1547_v41 = vmul.f32 %v1545_v31, %v5094_v32  ;;  %v1555_v47 = vrot.slane %v1548_v35, 3 }
 0x1c8   : > { %1200 = vrot.lane.b32.xlu0 %v1197_v51, %s4582_s17  ;;  %v1415_v51 = vrot.slane %v1408_v42, 3  ;;  %v1413_v56 = vrot.slane %v1407_v48, 3 }
 0x1ca   : > { %1258 = vrot.lane.b32.xlu1 %v1255_v57, %s4583_s6  ;;  %v1428_v57 = vmul.f32 %v1426_v49, %v5094_v32  ;;  %v1416_v59 = vsel %vm864_vm10, %v1413_v56, %v1415_v51  ;;  %v1414_v7 = vsel %vm864_vm10, %v1412_v63, %v1413_v56  ;;  %v1546_v51 = vmul.f32 %v1545_v31, %v5103_v37 }
 0x1cb   : > { %v1631_v31 = vmul.f32 %v1629_v24, %v5094_v32 }
 0x1cc   : > { %1235 = vrot.lane.b32.xlu0 %v1232_v60, %s4583_s6  ;;  %v1436_v60 = vrot.slane %v1429_v52, 4  ;;  %v1434_v1 = vrot.slane %v1428_v57, 4  ;;  %v1553_v52 = vrot.slane %v1547_v41, 3 }
 0x1ce   : > { %1279 = vrot.lane.b32.xlu1 %v1276_v2, %s4583_s6  ;;  %v1449_v2 = vmul.f32 %v1447_v58, %v5094_v32  ;;  %v1437_v4 = vsel %vm882_vm11, %v1434_v1, %v1436_v60  ;;  %v1435_v16 = vsel %vm882_vm11, %v1433_v8, %v1434_v1  ;;  %v1556_v56 = vsel %vm864_vm10, %v1553_v52, %v1555_v47 }
 0x1d0   : > { %1256 = vrot.lane.b32.xlu0 %v1253_v5, %s4583_s6  ;;  %v1457_v5 = vrot.slane %v1450_v61, 5  ;;  %v1455_v10 = vrot.slane %v1449_v2, 5  ;;  %v1552_v61 = vrot.slane %v1546_v51, 3  ;;  %v1608_v2 = vstv %s4013_s21  ;;  %s4034_s21 = sld [smem:[#allocation16 + $0x5c]] }
 0x1d1   : > { %v1609_v18 = vmul.f32 %v1608_v2, %v5103_v37 }
 0x1d2   : > { %1300 = vrot.lane.b32.xlu1 %v1297_v11, %s4583_s6  ;;  %v1470_v11 = vmul.f32 %v1468_v3, %v5094_v32  ;;  %v1458_v13 = vsel %vm900_vm12, %v1455_v10, %v1457_v5  ;;  %v1456_v25 = vsel %vm900_vm12, %v1454_v17, %v1455_v10  ;;  %v1595_v10 = vrot.slane %v1589_v0, 5 }
 0x1d3   : > { %v1594_v17 = vrot.slane %v1588_v9, 5  ;;  %v1615_v27 = vrot.slane %v1609_v18, 6 }
 0x1d4   : > { %1277 = vrot.lane.b32.xlu0 %v1274_v14, %s4583_s6  ;;  %v1478_v14 = vrot.slane %v1471_v6, 6  ;;  %v1476_v19 = vrot.slane %v1470_v11, 6  ;;  %v1611_v6 = vmul.f32 %v1608_v2, %v5117_v46  ;;  %v1610_v11 = vmul.f32 %v1608_v2, %v5094_v32 }
 0x1d6   : > { %1321 = vrot.lane.b32.xlu1 %v1318_v20, %s4583_s6  ;;  %v1505_v20 = vmul.f32 %v1503_v12, %v5094_v32  ;;  %v1479_v22 = vsel %vm918_vm13, %v1476_v19, %v1478_v14  ;;  %v1477_v36 = vsel %vm918_vm13, %v1475_v26, %v1476_v19  ;;  %v1616_v19 = vrot.slane %v1610_v11, 6 }
 0x1d7   : > { %v1596_v26 = vsel %vm900_vm12, %v1594_v17, %v1595_v10 }
 0x1d8   : > { %1298 = vrot.lane.b32.xlu0 %v1295_v23, %s4583_s6  ;;  %v1513_v23 = vrot.slane %v1506_v15, 1  ;;  %v1511_v28 = vrot.slane %v1505_v20, 1  ;;  %v1618_v15 = vrot.slane %v1611_v6, 6 }
 0x1da   : > { %1342 = vrot.lane.b32.xlu1 %v1339_v29, %s4583_s6  ;;  %v1526_v29 = vmul.f32 %v1524_v21, %v5094_v32  ;;  %v1512_v49 = vsel %vm828_vm8, %v1510_v38, %v1511_v28  ;;  %v1643_v21 = vstv %s4015_s20  ;;  %v1617_v38 = vsel %vm918_vm13, %v1615_v27, %v1616_v19  ;;  %s4036_s20 = sld [smem:[#allocation16 + $0x3a]] }
 0x1dc   : > { %1319 = vrot.lane.b32.xlu0 %v1316_v33, %s4583_s6  ;;  %v1514_v33 = vsel %vm828_vm8, %v1511_v28, %v1513_v23  ;;  %v1645_v28 = vmul.f32 %v1643_v21, %v5094_v32 }
 0x1de   : > { %1377 = vrot.lane.b32.xlu1 %v1374_v40, %s4584_s26  ;;  %v1532_v40 = vrot.slane %v1526_v29, 2 }
 0x1e0   : > { %1340 = vrot.lane.b32.xlu0 %v1337_v43, %s4583_s6  ;;  %v1566_v43 = vstv %s4011_s15  ;;  %v1535_v44 = vsel %vm846_vm9, %v1532_v40, %v1534_v34  ;;  %s4032_s15 = sld [smem:[#allocation16 + $0x4e]] }
 0x1e1   : > { %v1569_v48 = vmul.f32 %v1566_v43, %v5117_v46 }
 0x1e2   : > { %1398 = vrot.lane.b32.xlu1 %v1395_v50, %s4584_s26  ;;  %v1531_v50 = vrot.slane %v1525_v39, 2  ;;  %v1644_v39 = vmul.f32 %v1643_v21, %v5103_v37 }
 0x1e3   : > { %v1576_v58 = vrot.slane %v1569_v48, 4 }
 0x1e4   : > { %1375 = vrot.lane.b32.xlu0 %v1372_v53, %s4584_s26  ;;  %v1568_v53 = vmul.f32 %v1566_v43, %v5094_v32  ;;  %v1533_v60 = vsel %vm846_vm9, %v1531_v50, %v1532_v40  ;;  %v1651_v40 = vrot.slane %v1645_v28, 1 }
 0x1e6   : > { %1419 = vrot.lane.b32.xlu1 %v1416_v59, %s4584_s26  ;;  %v1590_v59 = vmul.f32 %v1587_v55, %v5117_v46  ;;  %v1574_v63 = vrot.slane %v1568_v53, 4 }
 0x1e8   : > { %1396 = vrot.lane.b32.xlu0 %v1393_v62, %s4584_s26  ;;  %v1567_v62 = vmul.f32 %v1566_v43, %v5103_v37  ;;  %v1577_v3 = vsel %vm882_vm11, %v1574_v63, %v1576_v58  ;;  %v1597_v5 = vrot.slane %v1590_v59, 5  ;;  %v1706_v59 = vstv %s4018_s7  ;;  %s4039_s7 = sld [smem:[#allocation16 + $0x4f]] }
 0x1e9   : > { %v1708_v6 = vmul.f32 %v1706_v59, %v5094_v32  ;;  %v1707_v17 = vmul.f32 %v1706_v59, %v5103_v37 }
 0x1ea   : > { %1440 = vrot.lane.b32.xlu1 %v1437_v4, %s4584_s26  ;;  %v1573_v8 = vrot.slane %v1567_v62, 4 }
 0x1eb   : > { %v1714_v18 = vrot.slane %v1708_v6, 4 }
 0x1ec   : > { %1417 = vrot.lane.b32.xlu0 %v1414_v7, %s4584_s26  ;;  %v1554_v7 = vsel %vm864_vm10, %v1552_v61, %v1553_v52  ;;  %v1650_v52 = vrot.slane %v1644_v39, 1 }
 0x1ee   : > { %1461 = vrot.lane.b32.xlu1 %v1458_v13, %s4584_s26  ;;  %v1598_v13 = vsel %vm900_vm12, %v1595_v10, %v1597_v5  ;;  %v1652_v0 = vsel %vm828_vm8, %v1650_v52, %v1651_v40  ;;  %v1894_v52 = vstv %s4029_s19  ;;  %s4043_s19 = sld [smem:[#allocation16 + $0x3b]] }
 0x1f0   : > { %1438 = vrot.lane.b32.xlu0 %v1435_v16, %s4584_s26  ;;  %v1575_v16 = vsel %vm882_vm11, %v1573_v8, %v1574_v63  ;;  %v1709_v63 = vmul.f32 %v1706_v59, %v5117_v46  ;;  %v1727_v8 = vstv %s4019_s23  ;;  %s4040_s23 = sld [smem:[#allocation16 + $0x56]] }
 0x1f2   : > { %1482 = vrot.lane.b32.xlu1 %v1479_v22, %s4584_s26  ;;  %v1619_v22 = vsel %vm918_vm13, %v1616_v19, %v1618_v15  ;;  %v1716_v11 = vrot.slane %v1709_v63, 4  ;;  %v1729_v19 = vmul.f32 %v1727_v8, %v5094_v32 }
 0x1f4   : > { %1459 = vrot.lane.b32.xlu0 %v1456_v25, %s4584_s26  ;;  %v5303_v30 = vpop.permute.xlu1 %936  ;;  %v1646_v25 = vmul.f32 %v1643_v21, %v5117_v46 }
 0x1f5   : > { %7219 = vst [vmem:[#allocation30_spill] sm:$0xff] %v5303_v30 }
 0x1f6   : > { %1517 = vrot.lane.b32.xlu1 %v1514_v33, %s4585_s9  ;;  %v1664_v33 = vstv %s4016_s16  ;;  %v1653_v35 = vrot.slane %v1646_v25, 1  ;;  %s4037_s16 = sld [smem:[#allocation16 + $0x41]] }
 0x1f7   : > { %v1666_v41 = vmul.f32 %v1664_v33, %v5094_v32  ;;  %v1665_v53 = vmul.f32 %v1664_v33, %v5103_v37 }
 0x1f8   : > { %1480 = vrot.lane.b32.xlu0 %v1477_v36, %s4584_s26  ;;  %v5312_v42 = vpop.permute.xlu1 %1076  ;;  %v1667_v36 = vmul.f32 %v1664_v33, %v5117_v46  ;;  %v1654_v47 = vsel %vm828_vm8, %v1651_v40, %v1653_v35  ;;  %v1728_v33 = vmul.f32 %v1727_v8, %v5103_v37  ;;  %v1735_v35 = vrot.slane %v1729_v19, 5 }
 0x1f9   : > { %7220 = vst [vmem:[#allocation31_spill] sm:$0xff] %v5312_v42  ;;  %v1672_v55 = vrot.slane %v1666_v41, 2  ;;  %v1671_v2 = vrot.slane %v1665_v53, 2  ;;  %v5429_v41 = vld [vmem:[#allocation2 + $0x20] sm:$0xff] }
 0x1fa   : > { %v5315_v45 = vpop.permute.xlu0 %934  ;;  %1538 = vrot.lane.b32.xlu1 %v1535_v44, %s4585_s9  ;;  %v1685_v44 = vstv %s4017_s13  ;;  %v1674_v50 = vrot.slane %v1667_v36, 2  ;;  %s4038_s13 = sld [smem:[#allocation16 + $0x48]] }
 0x1fb   : > { %7221 = vst [vmem:[#allocation32_spill] sm:$0xff] %v5315_v45  ;;  %v1688_v51 = vmul.f32 %v1685_v44, %v5117_v46  ;;  %v1673_v15 = vsel %vm846_vm9, %v1671_v2, %v1672_v55  ;;  %v1915_v2 = vstv %s4030_s14  ;;  %s4044_s14 = sld [smem:[#allocation16 + $0x42]] }
 0x1fc   : > { %1515 = vrot.lane.b32.xlu0 %v1512_v49, %s4585_s9  ;;  %v5323_v54 = vpop.permute.xlu1 %1216  ;;  %v1630_v49 = vmul.f32 %v1629_v24, %v5103_v37  ;;  %v1717_v24 = vsel %vm882_vm11, %v1714_v18, %v1716_v11 }
 0x1fd   : > { %7222 = vst [vmem:[#allocation33_spill] sm:$0xff] %v5323_v54  ;;  %v1695_v62 = vrot.slane %v1688_v51, 3 }
 0x1fe   : > { %v5326_v57 = vpop.permute.xlu0 %1074  ;;  %1559 = vrot.lane.b32.xlu1 %v1556_v56, %s4585_s9  ;;  %v1687_v56 = vmul.f32 %v1685_v44, %v5094_v32 }
 0x1ff   : > { %7223 = vst [vmem:[#allocation34_spill] sm:$0xff] %v5326_v57 }
 0x200   : > { %1536 = vrot.lane.b32.xlu0 %v1533_v60, %s4585_s9  ;;  %v5334_v1 = vpop.permute.xlu1 %1356  ;;  %v1675_v60 = vsel %vm846_vm9, %v1672_v55, %v1674_v50  ;;  %v1693_v5 = vrot.slane %v1687_v56, 3  ;;  %v1896_v56 = vmul.f32 %v1894_v52, %v5429_v41 }
 0x201   : > { %7224 = vst [vmem:[#allocation35_spill] sm:$0xff] %v5334_v1  ;;  %v2118_v1 = vstv %s4040_s23  ;;  %s4054_s23 = sld [smem:[#allocation16 + $0x58]] }
 0x202   : > { %v5337_v4 = vpop.permute.xlu0 %1214  ;;  %1580 = vrot.lane.b32.xlu1 %v1577_v3, %s4585_s9  ;;  %v1686_v3 = vmul.f32 %v1685_v44, %v5103_v37  ;;  %v1696_v9 = vsel %vm864_vm10, %v1693_v5, %v1695_v62  ;;  %v5431_v44 = vld [vmem:[#allocation2 + $0x28] sm:$0x3f]  ;;  %v1880_v62 = vstv %s5422_s25  ;;  %v1902_v6 = vrot.slane %v1896_v56, 1  ;;  %s5581_s25 = sld [smem:[#allocation16 + $0x34]] }
 0x203   : > { %7225 = vst [vmem:[#allocation36_spill] sm:$0xff] %v5337_v4  ;;  %v1897_v59 = vmul.f32 %v1894_v52, %v5431_v44  ;;  %v1918_v11 = vmul.f32 %v1915_v2, %v5431_v44 }
 0x204   : > { %1557 = vrot.lane.b32.xlu0 %v1554_v7, %s4585_s9  ;;  %v5347_v12 = vpop.permute.xlu1 %1496 }
 0x205   : > { %7226 = vst [vmem:[#allocation37_spill] sm:$0xff] %v5347_v12 }
 0x206   : > { %v5350_v14 = vpop.permute.xlu0 %1354  ;;  %1601 = vrot.lane.b32.xlu1 %v1598_v13, %s4585_s9  ;;  %v1730_v13 = vmul.f32 %v1727_v8, %v5117_v46  ;;  %v1904_v8 = vrot.slane %v1897_v59, 1 }
 0x207   : > { %7227 = vst [vmem:[#allocation38_spill] sm:$0xff] %v5350_v14 }
 0x208   : > { %1578 = vrot.lane.b32.xlu0 %v1575_v16, %s4585_s9  ;;  %v5356_v20 = vpop.permute.xlu1 %957  ;;  %v1692_v16 = vrot.slane %v1686_v3, 3  ;;  %v5451_v3 = vld [vmem:[#allocation2 + $0x18] sm:$0xff] }
 0x209   : > { %7228 = vst [vmem:[#allocation39_spill] sm:$0xff] %v5356_v20 }
 0x20a   : > { %v5359_v23 = vpop.permute.xlu0 %1494  ;;  %1622 = vrot.lane.b32.xlu1 %v1619_v22, %s4585_s9  ;;  %v1748_v22 = vstv %s4020_s1  ;;  %v1694_v28 = vsel %vm864_vm10, %v1692_v16, %v1693_v5  ;;  %s4041_s1 = sld [smem:[#allocation16 + $0x5d]] }
 0x20b   : > { %7229 = vst [vmem:[#allocation40_spill] sm:$0xff] %v5359_v23  ;;  %v1751_v27 = vmul.f32 %v1748_v22, %v5117_v46  ;;  %v1750_v36 = vmul.f32 %v1748_v22, %v5094_v32  ;;  %v1734_v32 = vrot.slane %v1728_v33, 5 }
 0x20c   : > { %1599 = vrot.lane.b32.xlu0 %v1596_v26, %s4585_s9  ;;  %v5367_v29 = vpop.permute.xlu1 %978  ;;  %v1737_v26 = vrot.slane %v1730_v13, 5 }
 0x20d   : > { %7230 = vst [vmem:[#allocation41_spill] sm:$0xff] %v5367_v29  ;;  %v1758_v40 = vrot.slane %v1751_v27, 6  ;;  %v1756_v50 = vrot.slane %v1750_v36, 6  ;;  %v1925_v27 = vrot.slane %v1918_v11, 2  ;;  %v1916_v36 = vmul.f32 %v1915_v2, %v5451_v3 }
 0x20e   : > { %v5370_v34 = vpop.permute.xlu0 %955  ;;  %1636 = vrot.lane.b32.xlu1 %v1631_v31, %s4586_s22  ;;  %v1713_v31 = vrot.slane %v1707_v17, 4  ;;  %v1738_v39 = vsel %vm900_vm12, %v1735_v35, %v1737_v26  ;;  %v1881_v17 = vmul.f32 %v1880_v62, %v5451_v3  ;;  %v1999_v11 = vstv %s4034_s21  ;;  %s4048_s21 = sld [smem:[#allocation16 + $0x5e]] }
 0x20f   : > { %7231 = vst [vmem:[#allocation42_spill] sm:$0xff] %v5370_v34  ;;  %v1759_v53 = vsel %vm918_vm13, %v1756_v50, %v1758_v40  ;;  %v1922_v56 = vrot.slane %v1916_v36, 2 }
 0x210   : > { %1620 = vrot.lane.b32.xlu0 %v1617_v38, %s4585_s9  ;;  %v5378_v43 = vpop.permute.xlu1 %999 }
 0x211   : > { %7232 = vst [vmem:[#allocation43_spill] sm:$0xff] %v5378_v43 }
 0x212   : > { %v5381_v48 = vpop.permute.xlu0 %976  ;;  %1657 = vrot.lane.b32.xlu1 %v1654_v47, %s4586_s22  ;;  %v1715_v47 = vsel %vm882_vm11, %v1713_v31, %v1714_v18  ;;  %v1895_v18 = vmul.f32 %v1894_v52, %v5451_v3  ;;  %v1957_v31 = vstv %s4032_s15  ;;  %s4046_s15 = sld [smem:[#allocation16 + $0x50]] }
 0x213   : > { %7233 = vst [vmem:[#allocation44_spill] sm:$0xff] %v5381_v48 }
 0x214   : > { %1634 = vrot.lane.b32.xlu0 %v1630_v49, %s4586_s22  ;;  %v5389_v58 = vpop.permute.xlu1 %1020  ;;  %v1749_v49 = vmul.f32 %v1748_v22, %v5103_v37  ;;  %v1905_v22 = vsel %vm828_vm8, %v1902_v6, %v1904_v8 }
 0x215   : > { %7234 = vst [vmem:[#allocation45_spill] sm:$0xff] %v5389_v58 }
 0x216   : > { %v5392_v61 = vpop.permute.xlu0 %997  ;;  %1678 = vrot.lane.b32.xlu1 %v1675_v60, %s4586_s22  ;;  %v1736_v60 = vsel %vm900_vm12, %v1734_v32, %v1735_v35  ;;  %v1755_v37 = vrot.slane %v1749_v49, 6  ;;  %v1901_v35 = vrot.slane %v1895_v18, 1  ;;  %v2001_v18 = vmul.f32 %v1999_v11, %v5429_v41 }
 0x217   : > { %7235 = vst [vmem:[#allocation46_spill] sm:$0xff] %v5392_v61 }
 0x218   : > { %1655 = vrot.lane.b32.xlu0 %v1652_v0, %s4586_s22  ;;  %v5400_v7 = vpop.permute.xlu1 %1041  ;;  %v1882_v0 = vmul.f32 %v1880_v62, %v5429_v41  ;;  %v1757_v13 = vsel %vm918_vm13, %v1755_v37, %v1756_v50  ;;  %v1960_v50 = vmul.f32 %v1957_v31, %v5431_v44  ;;  %v1903_v52 = vsel %vm828_vm8, %v1901_v35, %v1902_v6 }
 0x219   : > { %7236 = vst [vmem:[#allocation47_spill] sm:$0xff] %v5400_v7  ;;  %v1978_v37 = vstv %s4033_s24  ;;  %v2002_v35 = vmul.f32 %v1999_v11, %v5431_v44  ;;  %s4047_s24 = sld [smem:[#allocation16 + $0x57]] }
 0x21a   : > { %v5403_v10 = vpop.permute.xlu0 %1018  ;;  %1699 = vrot.lane.b32.xlu1 %v1696_v9, %s4586_s22  ;;  %v1917_v9 = vmul.f32 %v1915_v2, %v5429_v41  ;;  %v1967_v2 = vrot.slane %v1960_v50, 4  ;;  %v1980_v8 = vmul.f32 %v1978_v37, %v5429_v41  ;;  %v2007_v50 = vrot.slane %v2001_v18, 6 }
 0x21b   : > { %7237 = vst [vmem:[#allocation48_spill] sm:$0xff] %v5403_v10  ;;  %v5984_v10 = vld [vmem:[#allocation2 + $0x30] sm:$0xff] }
 0x21c   : > { %1676 = vrot.lane.b32.xlu0 %v1673_v15, %s4586_s22  ;;  %v5411_v21 = vpop.permute.xlu1 %1062  ;;  %v1936_v15 = vstv %s4031_s8  ;;  %v1923_v26 = vrot.slane %v1917_v9, 2  ;;  %v1981_v9 = vmul.f32 %v1978_v37, %v5431_v44  ;;  %s4045_s8 = sld [smem:[#allocation16 + $0x49]] }
 0x21d   : > { %7238 = vst [vmem:[#allocation49_spill] sm:$0xff] %v5411_v21  ;;  %v1938_v19 = vmul.f32 %v1936_v15, %v5429_v41 }
 0x21e   : > { %v5414_v25 = vpop.permute.xlu0 %1039  ;;  %1720 = vrot.lane.b32.xlu1 %v1717_v24, %s4586_s22  ;;  %v1926_v40 = vsel %vm846_vm9, %v1923_v26, %v1925_v27  ;;  %v1924_v6 = vsel %vm846_vm9, %v1922_v56, %v1923_v26  ;;  %v1986_v27 = vrot.slane %v1980_v8, 5 }
 0x21f   : > { %7239 = vst [vmem:[#allocation50_spill] sm:$0xff] %v5414_v25  ;;  %v1944_v32 = vrot.slane %v1938_v19, 3 }
 0x220   : > { %1697 = vrot.lane.b32.xlu0 %v1694_v28, %s4586_s22  ;;  %v5424_v38 = vpop.permute.xlu1 %1097  ;;  %v1939_v28 = vmul.f32 %v1936_v15, %v5431_v44 }
 0x221   : > { %7240 = vst [vmem:[#allocation51_spill] sm:$0xff] %v5424_v38 }
 0x222   : > { %v5427_v46 = vpop.permute.xlu0 %1060  ;;  %1741 = vrot.lane.b32.xlu1 %v1738_v39, %s4586_s22  ;;  %v1959_v39 = vmul.f32 %v1957_v31, %v5429_v41  ;;  %v1946_v49 = vrot.slane %v1939_v28, 3  ;;  %v1988_v28 = vrot.slane %v1981_v9, 5 }
 0x223   : > { %7241 = vst [vmem:[#allocation52_spill] sm:$0xff] %v5427_v46 }
 0x224   : > { %1718 = vrot.lane.b32.xlu0 %v1715_v47, %s4586_s22  ;;  %v5437_v51 = vpop.permute.xlu1 %1118  ;;  %v1965_v59 = vrot.slane %v1959_v39, 4  ;;  %v1947_v62 = vsel %vm864_vm10, %v1944_v32, %v1946_v49  ;;  %v1979_v39 = vmul.f32 %v1978_v37, %v5451_v3 }
 0x225   : > { %7242 = vst [vmem:[#allocation53_spill] sm:$0xff] %v5437_v51 }
 0x226   : > { %v5440_v55 = vpop.permute.xlu0 %1095  ;;  %1762 = vrot.lane.b32.xlu1 %v1759_v53, %s4586_s22  ;;  %v1968_v19 = vsel %vm882_vm11, %v1965_v59, %v1967_v2  ;;  %v2034_v2 = vstv %s4036_s20  ;;  %s4050_s20 = sld [smem:[#allocation16 + $0x3c]] }
 0x227   : > { %7243 = vst [vmem:[#allocation54_spill] sm:$0xff] %v5440_v55  ;;  %v2036_v9 = vmul.f32 %v2034_v2, %v5429_v41 }
 0x228   : > { %1739 = vrot.lane.b32.xlu0 %v1736_v60, %s4586_s22  ;;  %v5448_v63 = vpop.permute.xlu1 %1139  ;;  %v1937_v60 = vmul.f32 %v1936_v15, %v5451_v3 }
 0x229   : > { %7244 = vst [vmem:[#allocation55_spill] sm:$0xff] %v5448_v63 }
 0x22a   : > { %v5453_v5 = vpop.permute.xlu0 %1116  ;;  %1887 = vrot.lane.b32.xlu1 %v1882_v0, %s4581_s3  ;;  %v1943_v15 = vrot.slane %v1937_v60, 3  ;;  %v1985_v60 = vrot.slane %v1979_v39, 5 }
 0x22b   : > { %7245 = vst [vmem:[#allocation56_spill] sm:$0xff] %v5453_v5 }
 0x22c   : > { %1760 = vrot.lane.b32.xlu0 %v1757_v13, %s4586_s22  ;;  %v5460_v16 = vpop.permute.xlu1 %1160  ;;  %v1945_v26 = vsel %vm864_vm10, %v1943_v15, %v1944_v32  ;;  %v2020_v15 = vstv %s5504_s18  ;;  %s5658_s18 = sld [smem:[#allocation16 + $0x35]] }
 0x22d   : > { %7246 = vst [vmem:[#allocation57_spill] sm:$0xff] %v5460_v16  ;;  %v2022_v18 = vmul.f32 %v2020_v15, %v5429_v41 }
 0x22e   : > { %v5466_v24 = vpop.permute.xlu0 %1137  ;;  %1908 = vrot.lane.b32.xlu1 %v1905_v22, %s4581_s3 }
 0x22f   : > { %7247 = vst [vmem:[#allocation58_spill] sm:$0xff] %v5466_v24 }
 0x230   : > { %1885 = vrot.lane.b32.xlu0 %v1881_v17, %s4581_s3  ;;  %v5471_v33 = vpop.permute.xlu1 %1181  ;;  %v1958_v17 = vmul.f32 %v1957_v31, %v5451_v3 }
 0x231   : > { %7248 = vst [vmem:[#allocation59_spill] sm:$0xff] %v5471_v33  ;;  %v5944_v33 = vld [vmem:[#allocation2 + $0x18] sm:$0xff] }
 0x232   : > { %v5476_v47 = vpop.permute.xlu0 %1158  ;;  %1929 = vrot.lane.b32.xlu1 %v1926_v40, %s4581_s3  ;;  %v1964_v36 = vrot.slane %v1958_v17, 4  ;;  %v1989_v40 = vsel %vm900_vm12, %v1986_v27, %v1988_v28  ;;  %v2055_v17 = vstv %s4037_s16  ;;  %s4051_s16 = sld [smem:[#allocation16 + $0x43]] }
 0x233   : > { %7249 = vst [vmem:[#allocation60_spill] sm:$0xff] %v5476_v47  ;;  %v2057_v28 = vmul.f32 %v2055_v17, %v5429_v41  ;;  %v2058_v39 = vmul.f32 %v2055_v17, %v5431_v44 }
 0x234   : > { %1906 = vrot.lane.b32.xlu0 %v1903_v52, %s4581_s3  ;;  %v5482_v53 = vpop.permute.xlu1 %1202  ;;  %v2009_v52 = vrot.slane %v2002_v35, 6  ;;  %v1966_v32 = vsel %vm882_vm11, %v1964_v36, %v1965_v59  ;;  %v1987_v59 = vsel %vm900_vm12, %v1985_v60, %v1986_v27  ;;  %v2035_v60 = vmul.f32 %v2034_v2, %v5451_v3 }
 0x235   : > { %7250 = vst [vmem:[#allocation61_spill] sm:$0xff] %v5482_v53 }
 0x236   : > { %v5486_v0 = vpop.permute.xlu0 %1179  ;;  %1950 = vrot.lane.b32.xlu1 %v1947_v62, %s4581_s3  ;;  %v2000_v62 = vmul.f32 %v1999_v11, %v5451_v3  ;;  %v2010_v37 = vsel %vm918_vm13, %v2007_v50, %v2009_v52  ;;  %v2021_v52 = vmul.f32 %v2020_v15, %v5451_v3 }
 0x237   : > { %7251 = vst [vmem:[#allocation62_spill] sm:$0xff] %v5486_v0 }
 0x238   : > { %1927 = vrot.lane.b32.xlu0 %v1924_v6, %s4581_s3  ;;  %v5493_v13 = vpop.permute.xlu1 %1237  ;;  %v2037_v6 = vmul.f32 %v2034_v2, %v5431_v44  ;;  %v2041_v2 = vrot.slane %v2035_v60, 1 }
 0x239   : > { %7252 = vst [vmem:[#allocation63_spill] sm:$0xff] %v5493_v13  ;;  %v5884_v13 = vld [vmem:[#allocation2 + $0x28] sm:$0x3f] }
 0x23a   : > { %v5498_v22 = vpop.permute.xlu0 %1200  ;;  %1971 = vrot.lane.b32.xlu1 %v1968_v19, %s4581_s3  ;;  %v2006_v19 = vrot.slane %v2000_v62, 6  ;;  %v2044_v36 = vrot.slane %v2037_v6, 1  ;;  %v2076_v62 = vstv %s4038_s13  ;;  %v2065_v6 = vrot.slane %v2058_v39, 2  ;;  %s4052_s13 = sld [smem:[#allocation16 + $0x4a]] }
 0x23b   : > { %7253 = vst [vmem:[#allocation64_spill] sm:$0xff] %v5498_v22  ;;  %v2077_v14 = vmul.f32 %v2076_v62, %v5451_v3 }
 0x23c   : > { %1948 = vrot.lane.b32.xlu0 %v1945_v26, %s4581_s3  ;;  %v5506_v31 = vpop.permute.xlu1 %1258  ;;  %v2042_v26 = vrot.slane %v2036_v9, 1  ;;  %v2008_v27 = vsel %vm918_vm13, %v2006_v19, %v2007_v50  ;;  %v2079_v50 = vmul.f32 %v2076_v62, %v5431_v44  ;;  %v2056_v19 = vmul.f32 %v2055_v17, %v5451_v3 }
 0x23d   : > { %7254 = vst [vmem:[#allocation65_spill] sm:$0xff] %v5506_v31 }
 0x23e   : > { %v5510_v49 = vpop.permute.xlu0 %1235  ;;  %1992 = vrot.lane.b32.xlu1 %v1989_v40, %s4581_s3  ;;  %v2086_v23 = vrot.slane %v2079_v50, 3  ;;  %v2062_v60 = vrot.slane %v2056_v19, 2  ;;  %v2120_v50 = vmul.f32 %v2118_v1, %v5429_v41 }
 0x23f   : > { %7255 = vst [vmem:[#allocation66_spill] sm:$0xff] %v5510_v49 }
 0x240   : > { %1969 = vrot.lane.b32.xlu0 %v1966_v32, %s4581_s3  ;;  %v5515_v56 = vpop.permute.xlu1 %1279  ;;  %v2063_v32 = vrot.slane %v2057_v28, 2 }
 0x241   : > { %7256 = vst [vmem:[#allocation67_spill] sm:$0xff] %v5515_v56 }
 0x242   : > { %v5519_v8 = vpop.permute.xlu0 %1256  ;;  %2013 = vrot.lane.b32.xlu1 %v2010_v37, %s4581_s3  ;;  %v2045_v37 = vsel %vm828_vm8, %v2042_v26, %v2044_v36  ;;  %v2066_v36 = vsel %vm846_vm9, %v2063_v32, %v2065_v6 }
 0x243   : > { %7257 = vst [vmem:[#allocation68_spill] sm:$0xff] %v5519_v8 }
 0x244   : > { %1990 = vrot.lane.b32.xlu0 %v1987_v59, %s4581_s3  ;;  %v5527_v11 = vpop.permute.xlu1 %1300  ;;  %v2078_v59 = vmul.f32 %v2076_v62, %v5429_v41  ;;  %v2083_v62 = vrot.slane %v2077_v14, 3 }
 0x245   : > { %7258 = vst [vmem:[#allocation69_spill] sm:$0xff] %v5527_v11 }
 0x246   : > { %v5531_v35 = vpop.permute.xlu0 %1277  ;;  %2027 = vrot.lane.b32.xlu1 %v2022_v18, %s4582_s17  ;;  %v2097_v18 = vstv %s4039_s7  ;;  %s4053_s7 = sld [smem:[#allocation16 + $0x51]] }
 0x247   : > { %7259 = vst [vmem:[#allocation70_spill] sm:$0xff] %v5531_v35  ;;  %v2099_v28 = vmul.f32 %v2097_v18, %v5429_v41  ;;  %v2100_v12 = vmul.f32 %v2097_v18, %v5431_v44 }
 0x248   : > { %2011 = vrot.lane.b32.xlu0 %v2008_v27, %s4581_s3  ;;  %v5537_v40 = vpop.permute.xlu1 %1321  ;;  %v2084_v27 = vrot.slane %v2078_v59, 3 }
 0x249   : > { %7260 = vst [vmem:[#allocation71_spill] sm:$0xff] %v5537_v40  ;;  %v2105_v17 = vrot.slane %v2099_v28, 4  ;;  %v2107_v59 = vrot.slane %v2100_v12, 4  ;;  %v2098_v28 = vmul.f32 %v2097_v18, %v5451_v3 }
 0x24a   : > { %v5542_v9 = vpop.permute.xlu0 %1298  ;;  %2048 = vrot.lane.b32.xlu1 %v2045_v37, %s4582_s17  ;;  %v2087_v6 = vsel %vm864_vm10, %v2084_v27, %v2086_v23 }
 0x24b   : > { %7261 = vst [vmem:[#allocation72_spill] sm:$0xff] %v5542_v9  ;;  %v2108_v12 = vsel %vm882_vm11, %v2105_v17, %v2107_v59  ;;  %v2104_v18 = vrot.slane %v2098_v28, 4 }
 0x24c   : > { %2025 = vrot.lane.b32.xlu0 %v2021_v52, %s4582_s17  ;;  %v5548_v15 = vpop.permute.xlu1 %1342  ;;  %v2043_v52 = vsel %vm828_vm8, %v2041_v2, %v2042_v26  ;;  %v2064_v26 = vsel %vm846_vm9, %v2062_v60, %v2063_v32  ;;  %v2139_v2 = vstv %s4041_s1  ;;  %v2085_v32 = vsel %vm864_vm10, %v2083_v62, %v2084_v27  ;;  %s4055_s1 = sld [smem:[#allocation16 + $0x5f]] }
 0x24d   : > { %7262 = vst [vmem:[#allocation73_spill] sm:$0xff] %v5548_v15  ;;  %v2141_v23 = vmul.f32 %v2139_v2, %v5429_v41  ;;  %v2119_v60 = vmul.f32 %v2118_v1, %v5451_v3  ;;  %v2106_v27 = vsel %vm882_vm11, %v2104_v18, %v2105_v17  ;;  %v2160_v18 = vstv %s5581_s25  ;;  %s5734_s25 = sld [smem:[#allocation16 + $0x36]] }
 0x24e   : > { %v5553_v39 = vpop.permute.xlu0 %1319  ;;  %2069 = vrot.lane.b32.xlu1 %v2066_v36, %s4582_s17  ;;  %v2121_v36 = vmul.f32 %v2118_v1, %v5431_v44  ;;  %v2140_v1 = vmul.f32 %v2139_v2, %v5451_v3 }
 0x24f   : > { %7263 = vst [vmem:[#allocation74_spill] sm:$0xff] %v5553_v39  ;;  %v2125_v28 = vrot.slane %v2119_v60, 5 }
 0x250   : > { %2046 = vrot.lane.b32.xlu0 %v2043_v52, %s4582_s17  ;;  %v5559_v37 = vpop.permute.xlu1 %1377 }
 0x251   : > { %7264 = vst [vmem:[#allocation75_spill] sm:$0xff] %v5559_v37  ;;  %v2126_v37 = vrot.slane %v2120_v50, 5 }
 0x252   : > { %v5563_v39 = vpop.permute.xlu0 %1340  ;;  %2090 = vrot.lane.b32.xlu1 %v2087_v6, %s4582_s17  ;;  %v2142_v6 = vmul.f32 %v2139_v2, %v5431_v44  ;;  %v2162_v2 = vmul.f32 %v2160_v18, %v5429_v41 }
 0x253   : > { %7265 = vst [vmem:[#allocation76_spill] sm:$0xff] %v5563_v39  ;;  %v2128_v39 = vrot.slane %v2121_v36, 5  ;;  %v2147_v36 = vrot.slane %v2141_v23, 6  ;;  %v2127_v17 = vsel %vm900_vm12, %v2125_v28, %v2126_v37  ;;  %v2216_v28 = vstv %s4045_s8  ;;  %s4059_s8 = sld [smem:[#allocation16 + $0x4b]] }
 0x254   : > { %2067 = vrot.lane.b32.xlu0 %v2064_v26, %s4582_s17  ;;  %v5570_v19 = vpop.permute.xlu1 %1398  ;;  %v2149_v26 = vrot.slane %v2142_v6, 6 }
 0x255   : > { %7266 = vst [vmem:[#allocation77_spill] sm:$0xff] %v5570_v19  ;;  %v2129_v59 = vsel %vm900_vm12, %v2126_v37, %v2128_v39  ;;  %v2258_v19 = vstv %s4047_s24  ;;  %s4061_s24 = sld [smem:[#allocation16 + $0x59]] }
 0x256   : > { %v5575_v52 = vpop.permute.xlu0 %1375  ;;  %2111 = vrot.lane.b32.xlu1 %v2108_v12, %s4582_s17  ;;  %v2174_v12 = vstv %s4043_s19  ;;  %v2150_v39 = vsel %vm918_vm13, %v2147_v36, %v2149_v26  ;;  %v2195_v26 = vstv %s4044_s14  ;;  %s4057_s19 = sld [smem:[#allocation16 + $0x3d]]  ;;  %s4058_s14 = sld [smem:[#allocation16 + $0x44]] }
 0x257   : > { %7267 = vst [vmem:[#allocation78_spill] sm:$0xff] %v5575_v52  ;;  %v2176_v23 = vmul.f32 %v2174_v12, %v5429_v41  ;;  %v2177_v6 = vmul.f32 %v2174_v12, %v5431_v44 }
 0x258   : > { %2088 = vrot.lane.b32.xlu0 %v2085_v32, %s4582_s17  ;;  %v5583_v14 = vpop.permute.xlu1 %1419 }
 0x259   : > { %7268 = vst [vmem:[#allocation79_spill] sm:$0xff] %v5583_v14 }
 0x25a   : > { %v5587_v50 = vpop.permute.xlu0 %1396  ;;  %2132 = vrot.lane.b32.xlu1 %v2129_v59, %s4582_s17  ;;  %v2146_v59 = vrot.slane %v2140_v1, 6  ;;  %v2161_v1 = vmul.f32 %v2160_v18, %v5451_v3 }
 0x25b   : > { %7269 = vst [vmem:[#allocation80_spill] sm:$0xff] %v5587_v50  ;;  %v2184_v50 = vrot.slane %v2177_v6, 1  ;;  %v2538_v35 = vstv %s4061_s24  ;;  %s5887_s24 = sld [smem:[#allocation16 + $0x63]] }
 0x25c   : > { %2109 = vrot.lane.b32.xlu0 %v2106_v27, %s4582_s17  ;;  %v5592_v62 = vpop.permute.xlu1 %1440  ;;  %v2148_v37 = vsel %vm918_vm13, %v2146_v59, %v2147_v36  ;;  %v2219_v36 = vmul.f32 %v2216_v28, %v5431_v44  ;;  %v2237_v59 = vstv %s4046_s15  ;;  %s4060_s15 = sld [smem:[#allocation16 + $0x52]] }
 0x25d   : > { %7270 = vst [vmem:[#allocation81_spill] sm:$0xff] %v5592_v62  ;;  %v2197_v62 = vmul.f32 %v2195_v26, %v5429_v41  ;;  %v2240_v14 = vmul.f32 %v2237_v59, %v5431_v44 }
 0x25e   : > { %v5596_v32 = vpop.permute.xlu0 %1417  ;;  %2153 = vrot.lane.b32.xlu1 %v2150_v39, %s4582_s17  ;;  %v2198_v39 = vmul.f32 %v2195_v26, %v5431_v44 }
 0x25f   : > { %7271 = vst [vmem:[#allocation82_spill] sm:$0xff] %v5596_v32  ;;  %v2182_v32 = vrot.slane %v2176_v23, 1  ;;  %v2218_v23 = vmul.f32 %v2216_v28, %v5429_v41  ;;  %v2203_v52 = vrot.slane %v2197_v62, 2 }
 0x260   : > { %2130 = vrot.lane.b32.xlu0 %v2127_v17, %s4582_s17  ;;  %v5604_v60 = vpop.permute.xlu1 %1461 }
 0x261   : > { %7272 = vst [vmem:[#allocation83_spill] sm:$0xff] %v5604_v60  ;;  %v2175_v60 = vmul.f32 %v2174_v12, %v5451_v3  ;;  %v2185_v6 = vsel %vm828_vm8, %v2182_v32, %v2184_v50  ;;  %v2224_v62 = vrot.slane %v2218_v23, 3  ;;  %v2247_v23 = vrot.slane %v2240_v14, 4 }
 0x262   : > { %v5607_v27 = vpop.permute.xlu0 %1438  ;;  %2167 = vrot.lane.b32.xlu1 %v2162_v2, %s4583_s6  ;;  %v2205_v2 = vrot.slane %v2198_v39, 2  ;;  %v2226_v39 = vrot.slane %v2219_v36, 3  ;;  %v2260_v36 = vmul.f32 %v2258_v19, %v5429_v41 }
 0x263   : > { %7273 = vst [vmem:[#allocation84_spill] sm:$0xff] %v5607_v27  ;;  %v2181_v12 = vrot.slane %v2175_v60, 1 }
 0x264   : > { %2151 = vrot.lane.b32.xlu0 %v2148_v37, %s4582_s17  ;;  %v5614_v17 = vpop.permute.xlu1 %1482  ;;  %v2196_v37 = vmul.f32 %v2195_v26, %v5451_v3  ;;  %v2206_v50 = vsel %vm846_vm9, %v2203_v52, %v2205_v2  ;;  %v2227_v2 = vsel %vm864_vm10, %v2224_v62, %v2226_v39 }
 0x265   : > { %7274 = vst [vmem:[#allocation85_spill] sm:$0xff] %v5614_v17  ;;  %v2239_v17 = vmul.f32 %v2237_v59, %v5429_v41 }
 0x266   : > { %v5620_v27 = vpop.permute.xlu0 %1459  ;;  %2188 = vrot.lane.b32.xlu1 %v2185_v6, %s4583_s6  ;;  %v2202_v60 = vrot.slane %v2196_v37, 2  ;;  %v2238_v37 = vmul.f32 %v2237_v59, %v5451_v3 }
 0x267   : > { %7275 = vst [vmem:[#allocation86_spill] sm:$0xff] %v5620_v27  ;;  %v2245_v26 = vrot.slane %v2239_v17, 4 }
 0x268   : > { %2165 = vrot.lane.b32.xlu0 %v2161_v1, %s4583_s6  ;;  %v5625_v18 = vpop.permute.xlu1 %1517  ;;  %v2183_v1 = vsel %vm828_vm8, %v2181_v12, %v2182_v32  ;;  %v2204_v32 = vsel %vm846_vm9, %v2202_v60, %v2203_v52  ;;  %v2279_v12 = vstv %s4048_s21  ;;  %v2259_v60 = vmul.f32 %v2258_v19, %v5451_v3  ;;  %s4062_s21 = sld [smem:[#allocation16 + $0x60]] }
 0x269   : > { %7276 = vst [vmem:[#allocation87_spill] sm:$0xff] %v5625_v18  ;;  %v2217_v18 = vmul.f32 %v2216_v28, %v5451_v3  ;;  %v2281_v39 = vmul.f32 %v2279_v12, %v5429_v41  ;;  %v2248_v14 = vsel %vm882_vm11, %v2245_v26, %v2247_v23 }
 0x26a   : > { %v5630_v27 = vpop.permute.xlu0 %1480  ;;  %2209 = vrot.lane.b32.xlu1 %v2206_v50, %s4583_s6  ;;  %v2261_v50 = vmul.f32 %v2258_v19, %v5431_v44 }
 0x26b   : > { %7277 = vst [vmem:[#allocation88_spill] sm:$0xff] %v5630_v27  ;;  %v2223_v28 = vrot.slane %v2217_v18, 3  ;;  %v2244_v18 = vrot.slane %v2238_v37, 4  ;;  %v2280_v37 = vmul.f32 %v2279_v12, %v5451_v3 }
 0x26c   : > { %2186 = vrot.lane.b32.xlu0 %v2183_v1, %s4583_s6  ;;  %v5636_v6 = vpop.permute.xlu1 %1538 }
 0x26d   : > { %7278 = vst [vmem:[#allocation89_spill] sm:$0xff] %v5636_v6  ;;  %v2268_v6 = vrot.slane %v2261_v50, 5  ;;  %v2225_v52 = vsel %vm864_vm10, %v2223_v28, %v2224_v62  ;;  %v2287_v50 = vrot.slane %v2281_v39, 6  ;;  %v2246_v62 = vsel %vm882_vm11, %v2244_v18, %v2245_v26 }
 0x26e   : > { %v5640_v27 = vpop.permute.xlu0 %1515  ;;  %2230 = vrot.lane.b32.xlu1 %v2227_v2, %s4583_s6  ;;  %v2282_v2 = vmul.f32 %v2279_v12, %v5431_v44  ;;  %v2300_v18 = vstv %s5658_s18  ;;  %s5812_s18 = sld [smem:[#allocation16 + $0x37]] }
 0x26f   : > { %7279 = vst [vmem:[#allocation90_spill] sm:$0xff] %v5640_v27  ;;  %v2266_v27 = vrot.slane %v2260_v36, 5  ;;  %v2302_v12 = vmul.f32 %v2300_v18, %v5429_v41 }
 0x270   : > { %2207 = vrot.lane.b32.xlu0 %v2204_v32, %s4583_s6  ;;  %v5647_v17 = vpop.permute.xlu1 %1559  ;;  %v2289_v32 = vrot.slane %v2282_v2, 6 }
 0x271   : > { %7280 = vst [vmem:[#allocation91_spill] sm:$0xff] %v5647_v17  ;;  %v2269_v23 = vsel %vm900_vm12, %v2266_v27, %v2268_v6 }
 0x272   : > { %v5652_v1 = vpop.permute.xlu0 %1536  ;;  %2251 = vrot.lane.b32.xlu1 %v2248_v14, %s4583_s6  ;;  %v2265_v14 = vrot.slane %v2259_v60, 5  ;;  %v2290_v19 = vsel %vm918_vm13, %v2287_v50, %v2289_v32  ;;  %v2335_v60 = vstv %s4051_s16  ;;  %s4065_s16 = sld [smem:[#allocation16 + $0x45]] }
 0x273   : > { %7281 = vst [vmem:[#allocation92_spill] sm:$0xff] %v5652_v1  ;;  %v2337_v32 = vmul.f32 %v2335_v60, %v5429_v41  ;;  %v2356_v1 = vstv %s4052_s13  ;;  %s4066_s13 = sld [smem:[#allocation16 + $0x4c]] }
 0x274   : > { %2228 = vrot.lane.b32.xlu0 %v2225_v52, %s4583_s6  ;;  %v5660_v59 = vpop.permute.xlu1 %1580  ;;  %v2314_v52 = vstv %s4050_s20  ;;  %v2267_v26 = vsel %vm900_vm12, %v2265_v14, %v2266_v27  ;;  %s4064_s20 = sld [smem:[#allocation16 + $0x3e]] }
 0x275   : > { %7282 = vst [vmem:[#allocation93_spill] sm:$0xff] %v5660_v59  ;;  %v2316_v39 = vmul.f32 %v2314_v52, %v5429_v41  ;;  %v2317_v2 = vmul.f32 %v2314_v52, %v5431_v44 }
 0x276   : > { %v5664_v36 = vpop.permute.xlu0 %1557  ;;  %2272 = vrot.lane.b32.xlu1 %v2269_v23, %s4583_s6 }
 0x277   : > { %7283 = vst [vmem:[#allocation94_spill] sm:$0xff] %v5664_v36 }
 0x278   : > { %2249 = vrot.lane.b32.xlu0 %v2246_v62, %s4583_s6  ;;  %v5669_v28 = vpop.permute.xlu1 %1601  ;;  %v2286_v62 = vrot.slane %v2280_v37, 6 }
 0x279   : > { %7284 = vst [vmem:[#allocation95_spill] sm:$0xff] %v5669_v28  ;;  %v2322_v28 = vrot.slane %v2316_v39, 1  ;;  %v2301_v39 = vmul.f32 %v2300_v18, %v5451_v3  ;;  %v2636_v4 = vstv %s4066_s13  ;;  %s6003_s13 = sld [smem:[#allocation16 + $0x86]] }
 0x27a   : > { %v5673_v6 = vpop.permute.xlu0 %1578  ;;  %2293 = vrot.lane.b32.xlu1 %v2290_v19, %s4583_s6  ;;  %v2324_v19 = vrot.slane %v2317_v2, 1  ;;  %v2288_v27 = vsel %vm918_vm13, %v2286_v62, %v2287_v50  ;;  %v2358_v2 = vmul.f32 %v2356_v1, %v5429_v41  ;;  %v2359_v50 = vmul.f32 %v2356_v1, %v5431_v44 }
 0x27b   : > { %7285 = vst [vmem:[#allocation96_spill] sm:$0xff] %v5673_v6  ;;  %v2338_v6 = vmul.f32 %v2335_v60, %v5431_v44  ;;  %v2336_v62 = vmul.f32 %v2335_v60, %v5451_v3 }
 0x27c   : > { %2270 = vrot.lane.b32.xlu0 %v2267_v26, %s4583_s6  ;;  %v5681_v23 = vpop.permute.xlu1 %1622  ;;  %v2343_v26 = vrot.slane %v2337_v32, 2  ;;  %v2325_v59 = vsel %vm828_vm8, %v2322_v28, %v2324_v19  ;;  %v2377_v32 = vstv %s4053_s7  ;;  %v2364_v18 = vrot.slane %v2358_v2, 3  ;;  %s4067_s7 = sld [smem:[#allocation16 + $0x53]] }
 0x27d   : > { %7286 = vst [vmem:[#allocation97_spill] sm:$0xff] %v5681_v23  ;;  %v2345_v37 = vrot.slane %v2338_v6, 2  ;;  %v2315_v23 = vmul.f32 %v2314_v52, %v5451_v3  ;;  %v2342_v60 = vrot.slane %v2336_v62, 2 }
 0x27e   : > { %v5686_v36 = vpop.permute.xlu0 %1599  ;;  %2307 = vrot.lane.b32.xlu1 %v2302_v12, %s4584_s26 }
 0x27f   : > { %7287 = vst [vmem:[#allocation98_spill] sm:$0xff] %v5686_v36  ;;  %v2346_v6 = vsel %vm846_vm9, %v2343_v26, %v2345_v37  ;;  %v2321_v52 = vrot.slane %v2315_v23, 1  ;;  %v2380_v36 = vmul.f32 %v2377_v32, %v5431_v44  ;;  %v2398_v37 = vstv %s4054_s23  ;;  %s5844_s23 = sld [smem:[#allocation16 + $0x38]] }
 0x280   : > { %2291 = vrot.lane.b32.xlu0 %v2288_v27, %s4583_s6  ;;  %v5691_v14 = vpop.permute.xlu1 %1636  ;;  %v2366_v27 = vrot.slane %v2359_v50, 3 }
 0x281   : > { %7288 = vst [vmem:[#allocation99_spill] sm:$0xff] %v5691_v14  ;;  %v2387_v14 = vrot.slane %v2380_v36, 4 }
 0x282   : > { %v5695_v17 = vpop.permute.xlu0 %1620  ;;  %2328 = vrot.lane.b32.xlu1 %v2325_v59, %s4584_s26  ;;  %v2323_v59 = vsel %vm828_vm8, %v2321_v52, %v2322_v28  ;;  %v2367_v2 = vsel %vm864_vm10, %v2364_v18, %v2366_v27  ;;  %v2344_v28 = vsel %vm846_vm9, %v2342_v60, %v2343_v26  ;;  %v2419_v27 = vstv %s4055_s1  ;;  %s5847_s1 = sld [smem:[#allocation16 + $0x3f]] }
 0x283   : > { %7289 = vst [vmem:[#allocation100_spill] sm:$0xff] %v5695_v17  ;;  %v2379_v17 = vmul.f32 %v2377_v32, %v5429_v41 }
 0x284   : > { %2305 = vrot.lane.b32.xlu0 %v2301_v39, %s4584_s26  ;;  %v5702_v12 = vpop.permute.xlu1 %1657  ;;  %v2357_v39 = vmul.f32 %v2356_v1, %v5451_v3 }
 0x285   : > { %7290 = vst [vmem:[#allocation101_spill] sm:$0xff] %v5702_v12  ;;  %v2385_v12 = vrot.slane %v2379_v17, 4 }
 0x286   : > { %v5706_v19 = vpop.permute.xlu0 %1634  ;;  %2349 = vrot.lane.b32.xlu1 %v2346_v6, %s4584_s26  ;;  %v2401_v6 = vmul.f32 %v2398_v37, %v5431_v44  ;;  %v2363_v1 = vrot.slane %v2357_v39, 3 }
 0x287   : > { %7291 = vst [vmem:[#allocation102_spill] sm:$0xff] %v5706_v19  ;;  %v2400_v19 = vmul.f32 %v2398_v37, %v5429_v41 }
 0x288   : > { %2326 = vrot.lane.b32.xlu0 %v2323_v59, %s4584_s26  ;;  %v5713_v23 = vpop.permute.xlu1 %1678  ;;  %v2378_v59 = vmul.f32 %v2377_v32, %v5451_v3  ;;  %v2408_v36 = vrot.slane %v2401_v6, 5  ;;  %v2365_v26 = vsel %vm864_vm10, %v2363_v1, %v2364_v18 }
 0x289   : > { %7292 = vst [vmem:[#allocation103_spill] sm:$0xff] %v5713_v23  ;;  %v2406_v62 = vrot.slane %v2400_v19, 5  ;;  %v2421_v23 = vmul.f32 %v2419_v27, %v5429_v41 }
 0x28a   : > { %v5718_v50 = vpop.permute.xlu0 %1655  ;;  %2370 = vrot.lane.b32.xlu1 %v2367_v2, %s4584_s26  ;;  %v2422_v2 = vmul.f32 %v2419_v27, %v5431_v44  ;;  %v2384_v32 = vrot.slane %v2378_v59, 4 }
 0x28b   : > { %7293 = vst [vmem:[#allocation104_spill] sm:$0xff] %v5718_v50  ;;  %v2388_v50 = vsel %vm882_vm11, %v2385_v12, %v2387_v14  ;;  %v2399_v14 = vmul.f32 %v2398_v37, %v5451_v3  ;;  %v2409_v60 = vsel %vm900_vm12, %v2406_v62, %v2408_v36  ;;  %v2427_v6 = vrot.slane %v2421_v23, 6 }
 0x28c   : > { %2347 = vrot.lane.b32.xlu0 %v2344_v28, %s4584_s26  ;;  %v5724_v52 = vpop.permute.xlu1 %1699  ;;  %v2429_v28 = vrot.slane %v2422_v2, 6  ;;  %v2386_v18 = vsel %vm882_vm11, %v2384_v32, %v2385_v12  ;;  %v2420_v37 = vmul.f32 %v2419_v27, %v5451_v3  ;;  %v2440_v32 = vstv %s5734_s25  ;;  %s5862_s25 = sld [smem:[#allocation16 + $0x46]] }
 0x28d   : > { %7294 = vst [vmem:[#allocation105_spill] sm:$0xff] %v5724_v52  ;;  %v2405_v59 = vrot.slane %v2399_v14, 5  ;;  %v2442_v14 = vmul.f32 %v2440_v32, %v5429_v41 }
 0x28e   : > { %v5728_v17 = vpop.permute.xlu0 %1676  ;;  %2391 = vrot.lane.b32.xlu1 %v2388_v50, %s4584_s26  ;;  %v2454_v50 = vstv %s4057_s19  ;;  %v2430_v23 = vsel %vm918_vm13, %v2427_v6, %v2429_v28  ;;  %s5860_s19 = sld [smem:[#allocation16 + $0x6a]] }
 0x28f   : > { %7295 = vst [vmem:[#allocation106_spill] sm:$0xff] %v5728_v17  ;;  %v2457_v36 = vmul.f32 %v2454_v50, %v5431_v44  ;;  %v2407_v12 = vsel %vm900_vm12, %v2405_v59, %v2406_v62 }
 0x290   : > { %2368 = vrot.lane.b32.xlu0 %v2365_v26, %s4584_s26  ;;  %v5737_v19 = vpop.permute.xlu1 %1720  ;;  %v2456_v26 = vmul.f32 %v2454_v50, %v5429_v41 }
 0x291   : > { %7296 = vst [vmem:[#allocation107_spill] sm:$0xff] %v5737_v19 }
 0x292   : > { %v5741_v39 = vpop.permute.xlu0 %1697  ;;  %2412 = vrot.lane.b32.xlu1 %v2409_v60, %s4584_s26  ;;  %v2426_v60 = vrot.slane %v2420_v37, 6  ;;  %v2441_v37 = vmul.f32 %v2440_v32, %v5451_v3  ;;  %v5919_v24 = vstv %s5862_s25  ;;  %s6139_s25 = sld [smem:[#allocation16 + $0x79]] }
 0x293   : > { %7297 = vst [vmem:[#allocation108_spill] sm:$0xff] %v5741_v39  ;;  %v2464_v39 = vrot.slane %v2457_v36, 1  ;;  %v2496_v36 = vstv %s4059_s8  ;;  %s5867_s8 = sld [smem:[#allocation16 + $0x4d]] }
 0x294   : > { %2389 = vrot.lane.b32.xlu0 %v2386_v18, %s4584_s26  ;;  %v5746_v1 = vpop.permute.xlu1 %1741  ;;  %v2462_v18 = vrot.slane %v2456_v26, 1  ;;  %v2428_v62 = vsel %vm918_vm13, %v2426_v60, %v2427_v6  ;;  %v2455_v26 = vmul.f32 %v2454_v50, %v5451_v3  ;;  %v2499_v6 = vmul.f32 %v2496_v36, %v5431_v44 }
 0x295   : > { %7298 = vst [vmem:[#allocation109_spill] sm:$0xff] %v5746_v1  ;;  %v2475_v1 = vstv %s4058_s14  ;;  %v2517_v60 = vstv %s4060_s15  ;;  %v2497_v15 = vmul.f32 %v2496_v36, %v5451_v3  ;;  %s5865_s14 = sld [smem:[#allocation16 + $0x31]]  ;;  %s5874_s15 = sld [smem:[#allocation16 + $0x54]]  ;;  %v2845_v47 = vstv %s5860_s19 }
 0x296   : > { %v5752_v2 = vpop.permute.xlu0 %1718  ;;  %2433 = vrot.lane.b32.xlu1 %v2430_v23, %s4584_s26  ;;  %v2477_v28 = vmul.f32 %v2475_v1, %v5429_v41  ;;  %v2478_v23 = vmul.f32 %v2475_v1, %v5431_v44  ;;  %v2461_v50 = vrot.slane %v2455_v26, 1  ;;  %v2506_v52 = vrot.slane %v2499_v6, 3  ;;  %s6116_s19 = sld [smem:[#allocation16 + $0x72]] }
 0x297   : > { %7299 = vst [vmem:[#allocation110_spill] sm:$0xff] %v5752_v2  ;;  %v2541_v6 = vmul.f32 %v2538_v35, %v5431_v44 }
 0x298   : > { %2410 = vrot.lane.b32.xlu0 %v2407_v12, %s4584_s26  ;;  %v5759_v27 = vpop.permute.xlu1 %1762  ;;  %v2465_v12 = vsel %vm828_vm8, %v2462_v18, %v2464_v39  ;;  %v2483_v2 = vrot.slane %v2477_v28, 2  ;;  %v2476_v39 = vmul.f32 %v2475_v1, %v5451_v3 }
 0x299   : > { %7300 = vst [vmem:[#allocation111_spill] sm:$0xff] %v5759_v27  ;;  %v2485_v27 = vrot.slane %v2478_v23, 2 }
 0x29a   : > { %v5761_v17 = vpop.permute.xlu0 %1739  ;;  %2447 = vrot.lane.b32.xlu1 %v2442_v14, %s4585_s9  ;;  %v2498_v14 = vmul.f32 %v2496_v36, %v5429_v41  ;;  %v2482_v1 = vrot.slane %v2476_v39, 2  ;;  %v2503_v36 = vrot.slane %v2497_v15, 3 }
 0x29b   : > { %7301 = vst [vmem:[#allocation112_spill] sm:$0xff] %v5761_v17  ;;  %v2486_v28 = vsel %vm846_vm9, %v2483_v2, %v2485_v27  ;;  %v5955_v63 = vstv %s5874_s15  ;;  %s6240_s15 = sld [smem:[#allocation16 + $0x6c]] }
 0x29c   : > { %2431 = vrot.lane.b32.xlu0 %v2428_v62, %s4584_s26  ;;  %v5768_v59 = vpop.permute.xlu1 %1887  ;;  %v2519_v62 = vmul.f32 %v2517_v60, %v5429_v41  ;;  %v2504_v19 = vrot.slane %v2498_v14, 3  ;;  %v2540_v14 = vmul.f32 %v2538_v35, %v5429_v41 }
 0x29e   : > { %v5773_v17 = vpop.permute.xlu0 %1760  ;;  %2468 = vrot.lane.b32.xlu1 %v2465_v12, %s4585_s9  ;;  %v2463_v12 = vsel %vm828_vm8, %v2461_v50, %v2462_v18  ;;  %v2525_v26 = vrot.slane %v2519_v62, 4  ;;  %v2507_v27 = vsel %vm864_vm10, %v2504_v19, %v2506_v52  ;;  %v2484_v18 = vsel %vm846_vm9, %v2482_v1, %v2483_v2 }
 0x29f   : > { %7302 = vst [vmem:[#allocation113_spill] sm:$0xff] %v5773_v17  ;;  %v2520_v17 = vmul.f32 %v2517_v60, %v5431_v44  ;;  %v2518_v50 = vmul.f32 %v2517_v60, %v5451_v3  ;;  %v2559_v52 = vstv %s4062_s21  ;;  %v2505_v2 = vsel %vm864_vm10, %v2503_v36, %v2504_v19  ;;  %s5891_s21 = sld [smem:[#allocation16 + $0x71]] }
 0x2a0   : > { %2445 = vrot.lane.b32.xlu0 %v2441_v37, %s4585_s9  ;;  %v5780_v32 = vpop.permute.xlu1 %1908  ;;  %v2561_v8 = vmul.f32 %v2559_v52, %v5429_v41  ;;  %v2539_v60 = vmul.f32 %v2538_v35, %v5451_v3 }
 0x2a1   : > { %v2527_v9 = vrot.slane %v2520_v17, 4  ;;  %v2524_v15 = vrot.slane %v2518_v50, 4  ;;  %v2560_v50 = vmul.f32 %v2559_v52, %v5451_v3 }
 0x2a2   : > { %v5785_v23 = vpop.permute.xlu0 %1885  ;;  %2489 = vrot.lane.b32.xlu1 %v2486_v28, %s4585_s9  ;;  %v2546_v28 = vrot.slane %v2540_v14, 5  ;;  %v2545_v36 = vrot.slane %v2539_v60, 5  ;;  %v2615_v60 = vstv %s4065_s16  ;;  %s5951_s16 = sld [smem:[#allocation16 + $0x7f]] }
 0x2a3   : > { %v2528_v17 = vsel %vm882_vm11, %v2525_v26, %v2527_v9  ;;  %v2526_v19 = vsel %vm882_vm11, %v2524_v15, %v2525_v26  ;;  %v2580_v15 = vstv %s5812_s18  ;;  %v2618_v11 = vmul.f32 %v2615_v60, %v5431_v44  ;;  %s5923_s18 = sld [smem:[#allocation16 + $0x78]] }
 0x2a4   : > { %2466 = vrot.lane.b32.xlu0 %v2463_v12, %s4585_s9  ;;  %v5790_v37 = vpop.permute.xlu1 %1929  ;;  %v2548_v12 = vrot.slane %v2541_v6, 5  ;;  %v2567_v6 = vrot.slane %v2561_v8, 6  ;;  %v2547_v26 = vsel %vm900_vm12, %v2545_v36, %v2546_v28 }
 0x2a6   : > { %v5794_v40 = vpop.permute.xlu0 %1906  ;;  %2510 = vrot.lane.b32.xlu1 %v2507_v27, %s4585_s9  ;;  %v2562_v27 = vmul.f32 %v2559_v52, %v5431_v44  ;;  %v2549_v1 = vsel %vm900_vm12, %v2546_v28, %v2548_v12  ;;  %v2582_v52 = vmul.f32 %v2580_v15, %v5429_v41 }
 0x2a8   : > { %2487 = vrot.lane.b32.xlu0 %v2484_v18, %s4585_s9  ;;  %v5801_v39 = vpop.permute.xlu1 %1950  ;;  %v2569_v18 = vrot.slane %v2562_v27, 6 }
 0x2a9   : > { %v2887_v58 = vstv %s5923_s18  ;;  %s6278_s18 = sld [smem:[#allocation16 + $0x81]] }
 0x2aa   : > { %v5805_v62 = vpop.permute.xlu0 %1927  ;;  %2531 = vrot.lane.b32.xlu1 %v2528_v17, %s4585_s9  ;;  %v2570_v35 = vsel %vm918_vm13, %v2567_v6, %v2569_v18  ;;  %v2617_v18 = vmul.f32 %v2615_v60, %v5429_v41 }
 0x2ac   : > { %2508 = vrot.lane.b32.xlu0 %v2505_v2, %s4585_s9  ;;  %v5814_v9 = vpop.permute.xlu1 %1971  ;;  %v2594_v2 = vstv %s4064_s20  ;;  %s5907_s20 = sld [smem:[#allocation16 + $0x5b]] }
 0x2ad   : > { %v2596_v8 = vmul.f32 %v2594_v2, %v5429_v41  ;;  %v2597_v27 = vmul.f32 %v2594_v2, %v5431_v44  ;;  %v2595_v31 = vmul.f32 %v2594_v2, %v5451_v3 }
 0x2ae   : > { %v5818_v14 = vpop.permute.xlu0 %1948  ;;  %2552 = vrot.lane.b32.xlu1 %v2549_v1, %s4585_s9 }
 0x2af   : > { %v2602_v56 = vrot.slane %v2596_v8, 1 }
 0x2b0   : > { %2529 = vrot.lane.b32.xlu0 %v2526_v19, %s4585_s9  ;;  %v5823_v17 = vpop.permute.xlu1 %1992  ;;  %v2566_v19 = vrot.slane %v2560_v50, 6  ;;  %v2623_v50 = vrot.slane %v2617_v18, 2 }
 0x2b2   : > { %v5827_v12 = vpop.permute.xlu0 %1969  ;;  %2573 = vrot.lane.b32.xlu1 %v2570_v35, %s4585_s9  ;;  %v2604_v35 = vrot.slane %v2597_v27, 1  ;;  %v2568_v28 = vsel %vm918_vm13, %v2566_v19, %v2567_v6  ;;  %v5857_v6 = vmul.f32 %v2636_v4, %v5429_v41  ;;  %v2639_v19 = vmul.f32 %v2636_v4, %v5431_v44 }
 0x2b3   : > { %v2601_v41 = vrot.slane %v2595_v31, 1  ;;  %v2616_v44 = vmul.f32 %v2615_v60, %v5451_v3  ;;  %v5987_v21 = vstv %s5907_s20  ;;  %s6267_s20 = sld [smem:[#allocation16 + $0x7a]] }
 0x2b4   : > { %2550 = vrot.lane.b32.xlu0 %v2547_v26, %s4585_s9  ;;  %v5835_v1 = vpop.permute.xlu1 %2013  ;;  %v2625_v26 = vrot.slane %v2618_v11, 2  ;;  %v2605_v8 = vsel %vm828_vm8, %v2602_v56, %v2604_v35  ;;  %v2644_v35 = vrot.slane %v5857_v6, 3 }
 0x2b5   : > { %v2603_v60 = vsel %vm828_vm8, %v2601_v41, %v2602_v56  ;;  %v2622_v54 = vrot.slane %v2616_v44, 2  ;;  %v5927_v44 = vld [vmem:[#allocation2 + $0x40] sm:$0x3f] }
 0x2b6   : > { %v5840_v49 = vpop.permute.xlu0 %1990  ;;  %2587 = vrot.lane.b32.xlu1 %v2582_v52, %s4586_s22  ;;  %v2581_v52 = vmul.f32 %v2580_v15, %v5451_v3  ;;  %v2626_v2 = vsel %vm846_vm9, %v2623_v50, %v2625_v26  ;;  %v2657_v15 = vstv %s4067_s7  ;;  %v5894_v26 = vstv %s5844_s23  ;;  %s6037_s7 = sld [smem:[#allocation16 + $0x8d]]  ;;  %s6091_s23 = sld [smem:[#allocation16 + $0x6b]] }
 0x2b7   : > { %v2660_v31 = vmul.f32 %v5884_v13, %v2657_v15  ;;  %v5899_v6 = vmul.f32 %v5884_v13, %v5894_v26  ;;  %v2848_v16 = vmul.f32 %v2845_v47, %v5927_v44 }
 0x2b8   : > { %2571 = vrot.lane.b32.xlu0 %v2568_v28, %s4585_s9  ;;  %v5849_v36 = vpop.permute.xlu1 %2027  ;;  %v2646_v28 = vrot.slane %v2639_v19, 3  ;;  %v5902_v19 = vstv %s5847_s1  ;;  %s6107_s1 = sld [smem:[#allocation16 + $0x64]] }
 0x2b9   : > { %v2667_v0 = vrot.slane %v2660_v31, 4  ;;  %v5916_v53 = vmul.f32 %v5884_v13, %v5902_v19  ;;  %v5935_v31 = vstv %s5867_s8  ;;  %v1788_v55 = vrot.slane %v5899_v6, 1  ;;  %s6185_s8 = sld [smem:[#allocation16 + $0x87]] }
 0x2ba   : > { %v5853_v27 = vpop.permute.xlu0 %2011  ;;  %2608 = vrot.lane.b32.xlu1 %v2605_v8, %s4586_s22  ;;  %v5879_v8 = vld [vmem:[#allocation2 + $0x20] sm:$0xff]  ;;  %v2647_v56 = vsel %vm864_vm10, %v2644_v35, %v2646_v28  ;;  %v2658_v28 = vmul.f32 %v5944_v33, %v2657_v15  ;;  %v2866_v6 = vstv %s5891_s21  ;;  %v2855_v46 = vrot.slane %v2848_v16, 1  ;;  %s6259_s21 = sld [smem:[#allocation16 + $0x65]] }
 0x2bb   : > { %v1805_v57 = vrot.slane %v5916_v53, 2  ;;  %v5977_v53 = vmul.f32 %v5879_v8, %v5902_v19  ;;  %v2869_v48 = vmul.f32 %v2866_v6, %v5927_v44  ;;  %v2846_v16 = vmul.f32 %v2845_v47, %v5984_v10 }
 0x2bc   : > { %2585 = vrot.lane.b32.xlu0 %v2581_v52, %s4586_s22  ;;  %v5870_v11 = vpop.permute.xlu1 %2048  ;;  %v5882_v52 = vmul.f32 %v5879_v8, %v2657_v15  ;;  %v5964_v15 = vmul.f32 %v5884_v13, %v5935_v31  ;;  %v6009_v43 = vmul.f32 %v5879_v8, %v5919_v24 }
 0x2bd   : > { %v2876_v29 = vrot.slane %v2869_v48, 2 }
 0x2be   : > { %v5876_v18 = vpop.permute.xlu0 %2025  ;;  %2629 = vrot.lane.b32.xlu1 %v2626_v2, %s4586_s22  ;;  %v2637_v2 = vmul.f32 %v2636_v4, %v5451_v3  ;;  %v2624_v4 = vsel %vm846_vm9, %v2622_v54, %v2623_v50  ;;  %v5925_v3 = vld [vmem:[#allocation2 + $0x38] sm:$0xff] }
 0x2bf   : > { %v5948_v5 = vmul.f32 %v2845_v47, %v5925_v3  ;;  %v6024_v20 = vmul.f32 %v2887_v58, %v5925_v3 }
 0x2c0   : > { %2606 = vrot.lane.b32.xlu0 %v2603_v60, %s4586_s22  ;;  %v5904_v22 = vpop.permute.xlu1 %2069  ;;  %v2665_v60 = vrot.slane %v5882_v52, 4  ;;  %v5932_v52 = vmul.f32 %v5884_v13, %v5919_v24  ;;  %v2643_v50 = vrot.slane %v2637_v2, 3  ;;  %v2831_v2 = vstv %s5887_s24  ;;  %s6248_s24 = sld [smem:[#allocation16 + $0x73]] }
 0x2c2   : > { %v5910_v41 = vpop.permute.xlu0 %2046  ;;  %2650 = vrot.lane.b32.xlu1 %v2647_v56, %s4586_s22  ;;  %v5939_v56 = vmul.f32 %v5879_v8, %v5894_v26  ;;  %v2645_v38 = vsel %vm864_vm10, %v2643_v50, %v2644_v35  ;;  %v2833_v35 = vmul.f32 %v2831_v2, %v5925_v3  ;;  %v2664_v50 = vrot.slane %v2658_v28, 4 }
 0x2c3   : > { %v1779_v28 = vmul.f32 %v5944_v33, %v5894_v26  ;;  %v2890_v26 = vmul.f32 %v2887_v58, %v5927_v44 }
 0x2c4   : > { %2627 = vrot.lane.b32.xlu0 %v2624_v4, %s4586_s22  ;;  %v5942_v54 = vpop.permute.xlu1 %2090  ;;  %v2668_v4 = vsel %vm882_vm11, %v2665_v60, %v2667_v0  ;;  %v5972_v0 = vmul.f32 %v5884_v13, %v5955_v63  ;;  %v1786_v42 = vrot.slane %v5939_v56, 1  ;;  %v7305_v56 = vstv %s5865_s14 }
 0x2c5   : > { %v1774_v61 = vmul.f32 %v5879_v8, %v7305_v56  ;;  %v2908_v56 = vstv %s5951_s16  ;;  %s6286_s16 = sld [smem:[#allocation16 + $0x62]] }
 0x2c6   : > { %v5958_v51 = vpop.permute.xlu0 %2067  ;;  %2671 = vrot.lane.b32.xlu1 %v2668_v4, %s4586_s22  ;;  %v2853_v4 = vrot.slane %v5948_v5, 1  ;;  %v2666_v5 = vsel %vm882_vm11, %v2664_v50, %v2665_v60  ;;  %v1789_v60 = vsel %vm828_vm8, %v1786_v42, %v1788_v55  ;;  %v2832_v50 = vmul.f32 %v2831_v2, %v5984_v10 }
 0x2c7   : > { %7303 = vst [vmem:[#allocation114_spill] sm:$0xff] %v5958_v51  ;;  %v6029_v55 = vmul.f32 %v5884_v13, %v5987_v21  ;;  %v2852_v2 = vrot.slane %v2846_v16, 1  ;;  %v1793_v48 = vadd.f32 %v1789_v60, %v1774_v61  ;;  %v1785_v13 = vrot.slane %v1779_v28, 1 }
 0x2c8   : > { %2648 = vrot.lane.b32.xlu0 %v2645_v38, %s4586_s22  ;;  %v5980_v25 = vpop.permute.xlu1 %2111  ;;  %v5995_v38 = vmul.f32 %v2866_v6, %v5925_v3  ;;  %v2856_v47 = vsel %vm828_vm8, %v2853_v4, %v2855_v46  ;;  %v6033_v46 = vmul.f32 %v5879_v8, %v5935_v31  ;;  %v1796_v16 = vmul.f32 %v5944_v33, %v5902_v19 }
 0x2c9   : > { %7304 = vst [vmem:[#allocation115_spill] sm:$0xff] %v5980_v25  ;;  %v6052_v61 = vmul.f32 %v2908_v56, %v5925_v3  ;;  %v2911_v60 = vmul.f32 %v2908_v56, %v5927_v44  ;;  %v7312_v25 = vrot.slane %v5932_v52, 3 }
 0x2ca   : > { %v5992_v7 = vpop.permute.xlu0 %2088  ;;  %2838 = vrot.lane.b32.xlu1 %v2833_v35, %s4581_s3  ;;  %v2874_v34 = vrot.slane %v5995_v38, 2  ;;  %v7309_v38 = vrot.slane %v5977_v53, 2 }
 0x2cb   : > { %7306 = vst [vmem:[#allocation116_spill] sm:$0xff] %v5992_v7  ;;  %v7310_v7 = vstv %s5865_s14  ;;  %v2916_v52 = vrot.slane %v6052_v61, 4  ;;  %s6164_s14 = sld [smem:[#allocation16 + $0x80]] }
 0x2cc   : > { %2669 = vrot.lane.b32.xlu0 %v2666_v5, %s4586_s22  ;;  %v6015_v35 = vpop.permute.xlu1 %2132  ;;  %v2867_v5 = vmul.f32 %v2866_v6, %v5984_v10  ;;  %v1806_v30 = vsel %vm846_vm9, %v7309_v38, %v1805_v57  ;;  %v1787_v57 = vsel %vm828_vm8, %v1785_v13, %v1786_v42  ;;  %v2877_v28 = vsel %vm846_vm9, %v2874_v34, %v2876_v29 }
 0x2cd   : > { %7307 = vst [vmem:[#allocation117_spill] sm:$0xff] %v6015_v35  ;;  %v1773_v35 = vmul.f32 %v5944_v33, %v7310_v7  ;;  %v2897_v38 = vrot.slane %v2890_v26, 3  ;;  %v2854_v7 = vsel %vm828_vm8, %v2852_v2, %v2853_v4  ;;  %v1810_v51 = vadd.f32 %v1806_v30, %v1793_v48 }
 0x2ce   : > { %v6020_v45 = vpop.permute.xlu0 %2109  ;;  %2859 = vrot.lane.b32.xlu1 %v2856_v47, %s4581_s3  ;;  %v2873_v19 = vrot.slane %v2867_v5, 2  ;;  %v7313_v42 = vrot.slane %v6009_v43, 3  ;;  %v1837_v13 = vrot.slane %v6033_v46, 4  ;;  %v2918_v26 = vrot.slane %v2911_v60, 4 }
 0x2cf   : > { %7308 = vst [vmem:[#allocation118_spill] sm:$0xff] %v6020_v45  ;;  %v2888_v45 = vmul.f32 %v2887_v58, %v5984_v10  ;;  %v1792_v4 = vadd.f32 %v1787_v57, %v1773_v35  ;;  %v1813_v58 = vmul.f32 %v5944_v33, %v5919_v24  ;;  %v1802_v2 = vrot.slane %v1796_v16, 2 }
 0x2d0   : > { %2836 = vrot.lane.b32.xlu0 %v2832_v50, %s4581_s3  ;;  %v6049_v6 = vpop.permute.xlu1 %2153  ;;  %v2895_v50 = vrot.slane %v6024_v20, 3  ;;  %v1823_v29 = vsel %vm864_vm10, %v7313_v42, %v7312_v25  ;;  %v6072_v20 = vmul.f32 %v5879_v8, %v5955_v63  ;;  %v2875_v35 = vsel %vm846_vm9, %v2873_v19, %v2874_v34 }
 0x2d1   : > { %7311 = vst [vmem:[#allocation119_spill] sm:$0xff] %v6049_v6  ;;  %v2929_v6 = vstv %s6003_s13  ;;  %v2894_v24 = vrot.slane %v2888_v45, 3  ;;  %v2909_v57 = vmul.f32 %v2908_v56, %v5984_v10  ;;  %v1827_v16 = vadd.f32 %v1823_v29, %v1810_v51  ;;  %s6300_s13 = sld [smem:[#allocation16 + $0x88]] }
 0x2d2   : > { %v6057_v47 = vpop.permute.xlu0 %2130  ;;  %2880 = vrot.lane.b32.xlu1 %v2877_v28, %s4581_s3  ;;  %v2898_v25 = vsel %vm864_vm10, %v2895_v50, %v2897_v38  ;;  %v6084_v48 = vmul.f32 %v2929_v6, %v5925_v3  ;;  %v2932_v28 = vmul.f32 %v2929_v6, %v5927_v44  ;;  %v1854_v61 = vrot.slane %v6072_v20, 5 }
 0x2d3   : > { %v6096_v60 = vmul.f32 %v5879_v8, %v5987_v21  ;;  %v7314_v38 = vrot.slane %v5977_v53, 2  ;;  %v1819_v45 = vrot.slane %v1813_v58, 3  ;;  %v1830_v56 = vmul.f32 %v5944_v33, %v5935_v31 }
 0x2d4   : > { %2857 = vrot.lane.b32.xlu0 %v2854_v7, %s4581_s3  ;;  %v6077_v30 = vpop.permute.xlu1 %2167  ;;  %v2950_v7 = vstv %s6037_s7  ;;  %v2919_v51 = vsel %vm882_vm11, %v2916_v52, %v2918_v26  ;;  %v2937_v8 = vrot.slane %v6084_v48, 5  ;;  %v2939_v53 = vrot.slane %v2932_v28, 5  ;;  %s6312_s7 = sld [smem:[#allocation16 + $0x8f]] }
 0x2d5   : > { %v1804_v42 = vsel %vm846_vm9, %v1802_v2, %v7314_v38  ;;  %v6113_v20 = vmul.f32 %v2950_v7, %v5925_v3  ;;  %v7315_v31 = vrot.slane %v5964_v15, 4  ;;  %v2896_v26 = vsel %vm864_vm10, %v2894_v24, %v2895_v50 }
 0x2d6   : > { %v6081_v5 = vpop.permute.xlu0 %2151  ;;  %2901 = vrot.lane.b32.xlu1 %v2898_v25, %s4581_s3  ;;  %v1809_v34 = vadd.f32 %v1804_v42, %v1792_v4  ;;  %v2953_v4 = vmul.f32 %v2950_v7, %v5927_v44  ;;  %v2915_v2 = vrot.slane %v2909_v57, 4  ;;  %v2930_v25 = vmul.f32 %v2929_v6, %v5984_v10 }
 0x2d7   : > { %v1840_v58 = vsel %vm882_vm11, %v1837_v13, %v7315_v31  ;;  %v1873_v48 = vrot.slane %v6029_v55, 6  ;;  %v7317_v15 = vrot.slane %v5972_v0, 5  ;;  %v1847_v6 = vmul.f32 %v5944_v33, %v5955_v63 }
 0x2d8   : > { %2878 = vrot.lane.b32.xlu0 %v2875_v35, %s4581_s3  ;;  %v6104_v19 = vpop.permute.xlu1 %2188  ;;  %v1844_v28 = vadd.f32 %v1840_v58, %v1827_v16  ;;  %v7316_v35 = vrot.slane %v6009_v43, 3  ;;  %v1836_v43 = vrot.slane %v1830_v56, 4  ;;  %v2940_v55 = vsel %vm900_vm12, %v2937_v8, %v2939_v53 }
 0x2d9   : > { %v1857_v42 = vsel %vm900_vm12, %v1854_v61, %v7317_v15  ;;  %v2958_v0 = vrot.slane %v6113_v20, 6  ;;  %v2960_v16 = vrot.slane %v2953_v4, 6  ;;  %v2951_v63 = vmul.f32 %v2950_v7, %v5984_v10 }
 0x2da   : > { %v6109_v29 = vpop.permute.xlu0 %2165  ;;  %2922 = vrot.lane.b32.xlu1 %v2919_v51, %s4581_s3  ;;  %v1821_v38 = vsel %vm864_vm10, %v1819_v45, %v7316_v35  ;;  %v1871_v51 = vrot.slane %v6096_v60, 6  ;;  %v2917_v60 = vsel %vm882_vm11, %v2915_v2, %v2916_v52  ;;  %v2985_v45 = vstv %s6091_s23  ;;  %s6353_s23 = sld [smem:[#allocation16 + $0x66]] }
 0x2db   : > { %v1826_v50 = vadd.f32 %v1821_v38, %v1809_v34  ;;  %v2936_v34 = vrot.slane %v2930_v25, 5  ;;  %v1861_v31 = vadd.f32 %v1857_v42, %v1844_v28  ;;  %v1838_v56 = vsel %vm882_vm11, %v1836_v43, %v1837_v13 }
 0x2dc   : > { %2899 = vrot.lane.b32.xlu0 %v2896_v26, %s4581_s3  ;;  %v6137_v24 = vpop.permute.xlu1 %2209  ;;  %v1864_v53 = vmul.f32 %v5944_v33, %v5987_v21  ;;  %v1853_v4 = vrot.slane %v1847_v6, 5  ;;  %v2971_v52 = vstv %s6107_s1  ;;  %v2961_v26 = vsel %vm918_vm13, %v2958_v0, %v2960_v16  ;;  %s6358_s1 = sld [smem:[#allocation16 + $0x74]] }
 0x2dd   : > { %v1843_v20 = vadd.f32 %v1838_v56, %v1826_v50  ;;  %v2987_v7 = vmul.f32 %v2985_v45, %v5925_v3  ;;  %v2988_v46 = vmul.f32 %v2985_v45, %v5927_v44  ;;  %v3006_v13 = vstv %s6116_s19  ;;  %s6370_s19 = sld [smem:[#allocation16 + $0x7b]] }
 0x2de   : > { %v6142_v57 = vpop.permute.xlu0 %2186  ;;  %2943 = vrot.lane.b32.xlu1 %v2940_v55, %s4581_s3  ;;  %v1874_v21 = vsel %vm918_vm13, %v1871_v51, %v1873_v48  ;;  %v2938_v33 = vsel %vm900_vm12, %v2936_v34, %v2937_v8  ;;  %v2957_v25 = vrot.slane %v2951_v63, 6  ;;  %v1855_v35 = vsel %vm900_vm12, %v1853_v4, %v1854_v61 }
 0x2df   : > { %v1878_v28 = vadd.f32 %v1874_v21, %v1861_v31  ;;  %v1870_v38 = vrot.slane %v1864_v53, 6  ;;  %v1860_v15 = vadd.f32 %v1855_v35, %v1843_v20  ;;  %v2973_v50 = vmul.f32 %v2971_v52, %v5925_v3 }
 0x2e0   : > { %2920 = vrot.lane.b32.xlu0 %v2917_v60, %s4581_s3  ;;  %v6155_v58 = vpop.permute.xlu1 %2230  ;;  %v6175_v6 = vmul.f32 %v3006_v13, %v5925_v3  ;;  %v3027_v48 = vstv %s6139_s25  ;;  %v2993_v8 = vrot.slane %v2987_v7, 1  ;;  %v2995_v16 = vrot.slane %v2988_v46, 1  ;;  %s6393_s25 = sld [smem:[#allocation16 + $0x82]] }
 0x2e1   : > { %v1892_v43 = vadd.f32 %v5768_v59, %v1878_v28  ;;  %v3009_v61 = vmul.f32 %v3006_v13, %v5927_v44  ;;  %v2959_v60 = vsel %vm918_vm13, %v2957_v25, %v2958_v0  ;;  %v2986_v34 = vmul.f32 %v2985_v45, %v5984_v10 }
 0x2e2   : > { %v6159_v2 = vpop.permute.xlu0 %2207  ;;  %2964 = vrot.lane.b32.xlu1 %v2961_v26, %s4581_s3  ;;  %v1872_v31 = vsel %vm918_vm13, %v1870_v38, %v1871_v51  ;;  %v6191_v59 = vmul.f32 %v3027_v48, %v5925_v3  ;;  %v2972_v20 = vmul.f32 %v2971_v52, %v5984_v10  ;;  %v3014_v0 = vrot.slane %v6175_v6, 2 }
 0x2e3   : > { %v1913_v63 = vadd.f32 %v5780_v32, %v1892_v43  ;;  %v1877_v56 = vadd.f32 %v1872_v31, %v1860_v15  ;;  %v3030_v45 = vmul.f32 %v3027_v48, %v5927_v44  ;;  %v2996_v32 = vsel %vm828_vm8, %v2993_v8, %v2995_v16 }
 0x2e4   : > { %2941 = vrot.lane.b32.xlu0 %v2938_v33, %s4581_s3  ;;  %v6171_v42 = vpop.permute.xlu1 %2251  ;;  %v3016_v51 = vrot.slane %v3009_v61, 2  ;;  %v3048_v7 = vstv %s6164_s14  ;;  %v2992_v21 = vrot.slane %v2986_v34, 1  ;;  %v3007_v52 = vmul.f32 %v3006_v13, %v5984_v10  ;;  %s6403_s14 = sld [smem:[#allocation16 + $0x89]] }
 0x2e5   : > { %v1934_v4 = vadd.f32 %v5790_v37, %v1913_v63  ;;  %v1891_v46 = vadd.f32 %v5785_v23, %v1877_v56  ;;  %v3035_v37 = vrot.slane %v6191_v59, 3  ;;  %v3037_v35 = vrot.slane %v3030_v45, 3 }
 0x2e6   : > { %v6179_v55 = vpop.permute.xlu0 %2228  ;;  %2978 = vrot.lane.b32.xlu1 %v2973_v50, %s4582_s17  ;;  %v6215_v38 = vmul.f32 %v3048_v7, %v5925_v3  ;;  %v3051_v23 = vmul.f32 %v3048_v7, %v5927_v44  ;;  %v3017_v13 = vsel %vm846_vm9, %v3014_v0, %v3016_v51  ;;  %v3028_v50 = vmul.f32 %v3027_v48, %v5984_v10 }
 0x2e7   : > { %v1955_v33 = vadd.f32 %v5801_v39, %v1934_v4  ;;  %v1912_v25 = vadd.f32 %v5794_v40, %v1891_v46  ;;  %v2994_v40 = vsel %vm828_vm8, %v2992_v21, %v2993_v8  ;;  %v3013_v43 = vrot.slane %v3007_v52, 2 }
 0x2e8   : > { %2962 = vrot.lane.b32.xlu0 %v2959_v60, %s4581_s3  ;;  %v6193_v53 = vpop.permute.xlu1 %2272  ;;  %s6203_s3 = sld [smem:[#allocation16 + $0x8e]]  ;;  %v3069_v16 = vstv %s6185_s8  ;;  %v3038_v34 = vsel %vm864_vm10, %v3035_v37, %v3037_v35  ;;  %v3056_v48 = vrot.slane %v6215_v38, 4  ;;  %v3049_v45 = vmul.f32 %v3048_v7, %v5984_v10  ;;  %s6434_s8 = sld [smem:[#allocation16 + $0x69]] }
 0x2e9   : > { %v1976_v15 = vadd.f32 %v5814_v9, %v1955_v33  ;;  %v1933_v6 = vadd.f32 %v5805_v62, %v1912_v25  ;;  %v3058_v62 = vrot.slane %v3051_v23, 4  ;;  %v3071_v8 = vmul.f32 %v3069_v16, %v5925_v3 }
 0x2ea   : > { %v6200_v26 = vpop.permute.xlu0 %2249  ;;  %2999 = vrot.lane.b32.xlu1 %v2996_v32, %s4582_s17  ;;  %v3072_v59 = vmul.f32 %v3069_v16, %v5927_v44  ;;  %v3015_v56 = vsel %vm846_vm9, %v3013_v43, %v3014_v0  ;;  %v3055_v33 = vrot.slane %v3049_v45, 4  ;;  %v3070_v25 = vmul.f32 %v3069_v16, %v5984_v10  ;;  %v7318_v43 = vld [vmem:[#allocation115_spill] sm:$0xff] }
 0x2eb   : > { %v1997_v61 = vadd.f32 %v5823_v17, %v1976_v15  ;;  %v1954_v9 = vadd.f32 %v5818_v14, %v1933_v6  ;;  %v3059_v51 = vsel %vm882_vm11, %v3056_v48, %v3058_v62  ;;  %v3077_v21 = vrot.slane %v3071_v8, 5 }
 0x2ec   : > { %2976 = vrot.lane.b32.xlu0 %v2972_v20, %s4582_s17  ;;  %v6212_v28 = vpop.permute.xlu1 %2293  ;;  %v3034_v20 = vrot.slane %v3028_v50, 3  ;;  %v3079_v7 = vrot.slane %v3072_v59, 5 }
 0x2ed   : > { %v2018_v63 = vadd.f32 %v5835_v1, %v1997_v61  ;;  %v1975_v14 = vadd.f32 %v5827_v12, %v1954_v9  ;;  %v7319_v61 = vld [vmem:[#allocation114_spill] sm:$0xff] }
 0x2ee   : > { %v6220_v39 = vpop.permute.xlu0 %2270  ;;  %3020 = vrot.lane.b32.xlu1 %v3017_v13, %s4582_s17  ;;  %v3090_v17 = vstv %s6203_s3  ;;  %s6448_s3 = sld [smem:[#allocation16 + $0x90]] }
 0x2ef   : > { %v2032_v1 = vadd.f32 %v5849_v36, %v2018_v63  ;;  %v1996_v4 = vadd.f32 %v5840_v49, %v1975_v14  ;;  %v3092_v12 = vmul.f32 %v3090_v17, %v5925_v3  ;;  %v3093_v36 = vmul.f32 %v3090_v17, %v5927_v44  ;;  %v7320_v63 = vld [vmem:[#allocation117_spill] sm:$0xff] }
 0x2f0   : > { %2997 = vrot.lane.b32.xlu0 %v2994_v40, %s4582_s17  ;;  %v6230_v60 = vpop.permute.xlu1 %2307  ;;  %v3036_v49 = vsel %vm864_vm10, %v3034_v20, %v3035_v37  ;;  %v3091_v23 = vmul.f32 %v3090_v17, %v5984_v10  ;;  %v3080_v37 = vsel %vm900_vm12, %v3077_v21, %v3079_v7  ;;  %v3076_v40 = vrot.slane %v3070_v25, 5  ;;  %v7323_v7 = vld [vmem:[#allocation118_spill] sm:$0xff] }
 0x2f1   : > { %v2053_v46 = vadd.f32 %v5870_v11, %v2032_v1  ;;  %v2017_v52 = vadd.f32 %v5853_v27, %v1996_v4  ;;  %v3098_v27 = vrot.slane %v3092_v12, 6  ;;  %v3100_v50 = vrot.slane %v3093_v36, 6 }
 0x2f2   : > { %v6235_v31 = vpop.permute.xlu0 %2291  ;;  %3041 = vrot.lane.b32.xlu1 %v3038_v34, %s4582_s17  ;;  %v3111_v17 = vstv %s6259_s21  ;;  %v3097_v14 = vrot.slane %v3091_v23, 6  ;;  %v3078_v45 = vsel %vm900_vm12, %v3076_v40, %v3077_v21  ;;  %s6488_s21 = sld [smem:[#allocation16 + $0x67]] }
 0x2f3   : > { %v2074_v11 = vadd.f32 %v5904_v22, %v2053_v46  ;;  %v2031_v35 = vadd.f32 %v5876_v18, %v2017_v52  ;;  %v3125_v22 = vstv %s6240_s15  ;;  %v3057_v18 = vsel %vm882_vm11, %v3055_v33, %v3056_v48  ;;  %s6453_s15 = sld [smem:[#allocation16 + $0x70]] }
 0x2f4   : > { %3018 = vrot.lane.b32.xlu0 %v3015_v56, %s4582_s17  ;;  %v6251_v32 = vpop.permute.xlu1 %2328  ;;  %v6292_v62 = vmul.f32 %v3125_v22, %v5925_v3  ;;  %v3101_v8 = vsel %vm918_vm13, %v3098_v27, %v3100_v50  ;;  %v7321_v56 = vld [vmem:[#allocation116_spill] sm:$0xff]  ;;  %v3167_v46 = vstv %s6267_s20  ;;  %v3126_v23 = vmul.f32 %v3125_v22, %v5984_v10  ;;  %s6490_s20 = sld [smem:[#allocation16 + $0x7e]] }
 0x2f5   : > { %v2095_v15 = vadd.f32 %v5942_v54, %v2074_v11  ;;  %v2052_v6 = vadd.f32 %v5910_v41, %v2031_v35  ;;  %v3146_v54 = vstv %s6248_s24  ;;  %v3128_v41 = vmul.f32 %v3125_v22, %v5927_v44  ;;  %s6470_s24 = sld [smem:[#allocation16 + $0x77]] }
 0x2f6   : > { %v6256_v0 = vpop.permute.xlu0 %2305  ;;  %3062 = vrot.lane.b32.xlu1 %v3059_v51, %s4582_s17  ;;  %v6306_v1 = vmul.f32 %v3146_v54, %v5925_v3  ;;  %v3149_v4 = vmul.f32 %v3146_v54, %v5927_v44  ;;  %v7322_v51 = vld [vmem:[#allocation119_spill] sm:$0xff]  ;;  %v3133_v21 = vrot.slane %v6292_v62, 1  ;;  %v3099_v35 = vsel %vm918_vm13, %v3097_v14, %v3098_v27 }
 0x2f7   : > { %v2116_v16 = vadd.f32 %v7318_v43, %v2095_v15  ;;  %v2073_v9 = vadd.f32 %v7319_v61, %v2052_v6  ;;  %v3135_v33 = vrot.slane %v3128_v41, 1  ;;  %v3188_v15 = vstv %s6278_s18  ;;  %s6560_s18 = sld [smem:[#allocation16 + $0x8c]] }
 0x2f8   : > { %3039 = vrot.lane.b32.xlu0 %v3036_v49, %s4582_s17  ;;  %v6270_v38 = vpop.permute.xlu1 %2349  ;;  %v3113_v49 = vmul.f32 %v3111_v17, %v5925_v3  ;;  %v3154_v50 = vrot.slane %v6306_v1, 2  ;;  %v3156_v6 = vrot.slane %v3149_v4, 2  ;;  %v3147_v27 = vmul.f32 %v3146_v54, %v5984_v10 }
 0x2f9   : > { %v2137_v48 = vadd.f32 %v7320_v63, %v2116_v16  ;;  %v2094_v20 = vadd.f32 %v7321_v56, %v2073_v9  ;;  %v2723_v22 = vstv %s6286_s16  ;;  %v3136_v16 = vsel %vm828_vm8, %v3133_v21, %v3135_v33  ;;  %s6605_s16 = sld [smem:[#allocation16 + $0x75]] }
 0x2fa   : > { %v6275_v13 = vpop.permute.xlu0 %2326  ;;  %3083 = vrot.lane.b32.xlu1 %v3080_v37, %s4582_s17  ;;  %v3112_v61 = vmul.f32 %v3111_v17, %v5984_v10  ;;  %v6340_v9 = vmul.f32 %v3188_v15, %v5925_v3  ;;  %v3191_v41 = vmul.f32 %v3188_v15, %v5927_v44  ;;  %v3168_v54 = vmul.f32 %v3167_v46, %v5984_v10 }
 0x2fb   : > { %v2158_v12 = vadd.f32 %v7322_v51, %v2137_v48  ;;  %v2115_v36 = vadd.f32 %v7323_v7, %v2094_v20  ;;  %v3209_v63 = vstv %s6300_s13  ;;  %v3157_v48 = vsel %vm846_vm9, %v3154_v50, %v3156_v6  ;;  %s6582_s13 = sld [smem:[#allocation16 + $0x6e]] }
 0x2fc   : > { %3060 = vrot.lane.b32.xlu0 %v3057_v18, %s4582_s17  ;;  %v6289_v34 = vpop.permute.xlu1 %2370  ;;  %v3169_v18 = vmul.f32 %v3167_v46, %v5925_v3  ;;  %v3153_v56 = vrot.slane %v3147_v27, 2  ;;  %v3230_v20 = vstv %s6312_s7  ;;  %v3211_v1 = vmul.f32 %v3209_v63, %v5925_v3  ;;  %s6627_s7 = sld [smem:[#allocation16 + $0x7c]] }
 0x2fd   : > { %v2172_v25 = vadd.f32 %v6077_v30, %v2158_v12  ;;  %v2136_v37 = vadd.f32 %v6057_v47, %v2115_v36  ;;  %v3170_v30 = vmul.f32 %v3167_v46, %v5927_v44  ;;  %v3212_v4 = vmul.f32 %v3209_v63, %v5927_v44 }
 0x2fe   : > { %v6297_v59 = vpop.permute.xlu0 %2347  ;;  %3104 = vrot.lane.b32.xlu1 %v3101_v8, %s4582_s17  ;;  %v3132_v8 = vrot.slane %v3126_v23, 1  ;;  %v3175_v17 = vrot.slane %v3169_v18, 3  ;;  %v3189_v51 = vmul.f32 %v3188_v15, %v5984_v10  ;;  %v3196_v46 = vrot.slane %v6340_v9, 4 }
 0x2ff   : > { %v2193_v40 = vadd.f32 %v6104_v19, %v2172_v25  ;;  %v2157_v43 = vadd.f32 %v6081_v5, %v2136_v37  ;;  %v3177_v14 = vrot.slane %v3170_v30, 3  ;;  %v3198_v7 = vrot.slane %v3191_v41, 4 }
 0x300   : > { %3081 = vrot.lane.b32.xlu0 %v3078_v45, %s4582_s17  ;;  %v6315_v52 = vpop.permute.xlu1 %2391  ;;  %v3174_v36 = vrot.slane %v3168_v54, 3  ;;  %v6376_v33 = vmul.f32 %v3230_v20, %v5925_v3  ;;  %v3155_v23 = vsel %vm846_vm9, %v3153_v56, %v3154_v50  ;;  %v3217_v37 = vrot.slane %v3211_v1, 5 }
 0x301   : > { %v2214_v19 = vadd.f32 %v6137_v24, %v2193_v40  ;;  %v2171_v5 = vadd.f32 %v6109_v29, %v2157_v43  ;;  %v3219_v6 = vrot.slane %v3212_v4, 5  ;;  %v3195_v18 = vrot.slane %v3189_v51, 4 }
 0x302   : > { %v6320_v11 = vpop.permute.xlu0 %2368  ;;  %3118 = vrot.lane.b32.xlu1 %v3113_v49, %s4583_s6  ;;  %v3134_v49 = vsel %vm828_vm8, %v3132_v8, %v3133_v21  ;;  %v3199_v30 = vsel %vm882_vm11, %v3196_v46, %v3198_v7  ;;  %v3176_v27 = vsel %vm864_vm10, %v3174_v36, %v3175_v17  ;;  %v3286_v41 = vstv %s6358_s1  ;;  %s4113_s1 = sld [smem:[#allocation16 + $0x6f]] }
 0x303   : > { %v2235_v24 = vadd.f32 %v6155_v58, %v2214_v19  ;;  %v2192_v45 = vadd.f32 %v6142_v57, %v2171_v5  ;;  %v3231_v19 = vmul.f32 %v3230_v20, %v5984_v10  ;;  %v3197_v5 = vsel %vm882_vm11, %v3195_v18, %v3196_v46 }
 0x304   : > { %3102 = vrot.lane.b32.xlu0 %v3099_v35, %s4582_s17  ;;  %v6335_v47 = vpop.permute.xlu1 %2412  ;;  %s6348_s17 = sld [smem:[#allocation16 + $0x6d]]  ;;  %v3178_v35 = vsel %vm864_vm10, %v3175_v17, %v3177_v14 }
 0x305   : > { %v2256_v12 = vadd.f32 %v6171_v42, %v2235_v24  ;;  %v2213_v57 = vadd.f32 %v6159_v2, %v2192_v45  ;;  %v3233_v42 = vmul.f32 %v3230_v20, %v5927_v44  ;;  %v3210_v2 = vmul.f32 %v3209_v63, %v5984_v10 }
 0x306   : > { %v6343_v62 = vpop.permute.xlu0 %2389  ;;  %3139 = vrot.lane.b32.xlu1 %v3136_v16, %s4583_s6  ;;  %v3220_v63 = vsel %vm900_vm12, %v3217_v37, %v3219_v6  ;;  %v6427_v20 = vmul.f32 %v3286_v41, %v5925_v3  ;;  %v3237_v51 = vrot.slane %v3231_v19, 6 }
 0x307   : > { %v2277_v25 = vadd.f32 %v6193_v53, %v2256_v12  ;;  %v2234_v15 = vadd.f32 %v6179_v55, %v2213_v57  ;;  %v3238_v55 = vrot.slane %v6376_v33, 6  ;;  %v3240_v16 = vrot.slane %v3233_v42, 6 }
 0x308   : > { %3116 = vrot.lane.b32.xlu0 %v3112_v61, %s4583_s6  ;;  %v6361_v29 = vpop.permute.xlu1 %2433  ;;  %v3251_v61 = vstv %s6353_s23  ;;  %v3216_v9 = vrot.slane %v3210_v2, 5  ;;  %v3287_v33 = vmul.f32 %v3286_v41, %v5984_v10  ;;  %v3328_v42 = vstv %s6393_s25  ;;  %s6665_s23 = sld [smem:[#allocation16 + $0x8a]]  ;;  %s4114_s25 = sld [smem:[#allocation16 + $0x76]] }
 0x309   : > { %v2298_v40 = vadd.f32 %v6212_v28, %v2277_v25  ;;  %v2255_v43 = vadd.f32 %v6200_v26, %v2234_v15  ;;  %v6417_v17 = vmul.f32 %v3251_v61, %v5925_v3  ;;  %v6420_v24 = vmul.f32 %v3251_v61, %v5984_v10 }
 0x30a   : > { %v6367_v58 = vpop.permute.xlu0 %2410  ;;  %3160 = vrot.lane.b32.xlu1 %v3157_v48, %s4583_s6  ;;  %v3265_v50 = vstv %s6348_s17  ;;  %v3241_v1 = vsel %vm918_vm13, %v3238_v55, %v3240_v16  ;;  %v3218_v4 = vsel %vm900_vm12, %v3216_v9, %v3217_v37  ;;  %v3239_v2 = vsel %vm918_vm13, %v3237_v51, %v3238_v55  ;;  %s6648_s17 = sld [smem:[#allocation16 + $0x83]] }
 0x30b   : > { %v2312_v28 = vadd.f32 %v6230_v60, %v2298_v40  ;;  %v2276_v54 = vadd.f32 %v6220_v39, %v2255_v43  ;;  %v6411_v48 = vmul.f32 %v3265_v50, %v5925_v3  ;;  %v3307_v39 = vstv %s6370_s19  ;;  %s6707_s19 = sld [smem:[#allocation16 + $0x68]] }
 0x30c   : > { %3137 = vrot.lane.b32.xlu0 %v3134_v49, %s4583_s6  ;;  %v6385_v21 = vpop.permute.xlu1 %2447  ;;  %v3268_v56 = vmul.f32 %v3265_v50, %v5927_v44  ;;  %v3266_v7 = vmul.f32 %v3265_v50, %v5984_v10  ;;  %v3309_v36 = vmul.f32 %v3307_v39, %v5925_v3  ;;  %v3310_v49 = vmul.f32 %v3307_v39, %v5927_v44 }
 0x30d   : > { %v2333_v60 = vadd.f32 %v6251_v32, %v2312_v28  ;;  %v2297_v14 = vadd.f32 %v6235_v31, %v2276_v54  ;;  %v3289_v32 = vmul.f32 %v3286_v41, %v5927_v44  ;;  %v3273_v46 = vrot.slane %v6411_v48, 1 }
 0x30e   : > { %v6388_v53 = vpop.permute.xlu0 %2431  ;;  %3181 = vrot.lane.b32.xlu1 %v3178_v35, %s4583_s6  ;;  %v3275_v25 = vrot.slane %v3268_v56, 1  ;;  %v3294_v35 = vrot.slane %v6427_v20, 2  ;;  %v3308_v15 = vmul.f32 %v3307_v39, %v5984_v10  ;;  %v6460_v37 = vstv %s6403_s14  ;;  %s4115_s14 = sld [smem:[#allocation16 + $0x7d]] }
 0x30f   : > { %v2354_v45 = vadd.f32 %v6270_v38, %v2333_v60  ;;  %v2311_v31 = vadd.f32 %v6256_v0, %v2297_v14  ;;  %v3272_v18 = vrot.slane %v3266_v7, 1  ;;  %v6464_v40 = vmul.f32 %v3328_v42, %v5925_v3 }
 0x310   : > { %3158 = vrot.lane.b32.xlu0 %v3155_v23, %s4583_s6  ;;  %v6406_v26 = vpop.permute.xlu1 %2468  ;;  %v3296_v23 = vrot.slane %v3289_v32, 2  ;;  %v3315_v50 = vrot.slane %v3309_v36, 3  ;;  %v3317_v43 = vrot.slane %v3310_v49, 3  ;;  %v3293_v55 = vrot.slane %v3287_v33, 2 }
 0x311   : > { %v2375_v38 = vadd.f32 %v6289_v34, %v2354_v45  ;;  %v2332_v0 = vadd.f32 %v6275_v13, %v2311_v31  ;;  %v6478_v28 = vmul.f32 %v6460_v37, %v5925_v3  ;;  %v3314_v9 = vrot.slane %v3308_v15, 3 }
 0x312   : > { %v6414_v8 = vpop.permute.xlu0 %2445  ;;  %3202 = vrot.lane.b32.xlu1 %v3199_v30, %s4583_s6  ;;  %v3331_v30 = vmul.f32 %v3328_v42, %v5927_v44  ;;  %v3297_v61 = vsel %vm846_vm9, %v3294_v35, %v3296_v23  ;;  %v3352_v19 = vmul.f32 %v6460_v37, %v5927_v44  ;;  %v6494_v39 = vsel %vm864_vm10, %v3315_v50, %v3317_v43 }
 0x313   : > { %v2396_v34 = vadd.f32 %v6315_v52, %v2375_v38  ;;  %v2353_v13 = vadd.f32 %v6297_v59, %v2332_v0  ;;  %v3276_v59 = vsel %vm828_vm8, %v3273_v46, %v3275_v25  ;;  %v6497_v14 = vsel %vm846_vm9, %v3293_v55, %v3294_v35 }
 0x314   : > { %3179 = vrot.lane.b32.xlu0 %v3176_v27, %s4583_s6  ;;  %v6437_v12 = vpop.permute.xlu1 %2489  ;;  %v3338_v48 = vrot.slane %v3331_v30, 4  ;;  %v2746_v32 = vstv %s6453_s15  ;;  %v2763_v49 = vstv %s6470_s24  ;;  %s6739_s15 = sld [smem:[#allocation16 + $0x7]]  ;;  %s6760_s24 = sld [smem:[#allocation16]] }
 0x315   : > { %v2417_v52 = vadd.f32 %v6335_v47, %v2396_v34  ;;  %v2374_v16 = vadd.f32 %v6320_v11, %v2353_v13  ;;  %v2729_v11 = vstv %s6434_s8  ;;  %v2749_v38 = vmul.f32 %v2746_v32, %v5927_v44  ;;  %s6725_s8 = sld [smem:[#allocation16 + $0x84]] }
 0x316   : > { %v6443_v57 = vpop.permute.xlu0 %2466  ;;  %3223 = vrot.lane.b32.xlu1 %v3220_v63, %s4583_s6  ;;  %v3274_v63 = vsel %vm828_vm8, %v3272_v18, %v3273_v46  ;;  %v2732_v20 = vmul.f32 %v2729_v11, %v5927_v44  ;;  %v6508_v45 = vmul.f32 %v2729_v11, %v5925_v3  ;;  %v6523_v46 = vmul.f32 %v3328_v42, %v5984_v10 }
 0x317   : > { %v2438_v47 = vadd.f32 %v6361_v29, %v2417_v52  ;;  %v2395_v41 = vadd.f32 %v6343_v62, %v2374_v16  ;;  %v6500_v62 = vstv %s6448_s3  ;;  %v2730_v23 = vmul.f32 %v2729_v11, %v5984_v10  ;;  %s6737_s3 = sld [smem:[#allocation16 + $0x5a]] }
 0x318   : > { %3200 = vrot.lane.b32.xlu0 %v3197_v5, %s4583_s6  ;;  %v2511_v6 = vpop.permute.xlu1 %2510  ;;  %v3336_v5 = vrot.slane %v6464_v40, 4  ;;  %v2739_v42 = vrot.slane %v2732_v20, 1  ;;  %v2737_v0 = vrot.slane %v6508_v45, 1  ;;  %v3335_v15 = vrot.slane %v6523_v46, 4  ;;  %v6587_v20 = vld [vmem:[#allocation2 + $0x38] sm:$0xff] }
 0x319   : > { %v2452_v29 = vadd.f32 %v6385_v21, %v2438_v47  ;;  %v2416_v56 = vadd.f32 %v6367_v58, %v2395_v41  ;;  %v3359_v58 = vrot.slane %v3352_v19, 5  ;;  %v3391_v13 = vstv %s6488_s21  ;;  %v6577_v19 = vld [vmem:[#allocation2 + $0x40] sm:$0x3f]  ;;  %s6765_s21 = sld [smem:[#allocation16 + $0xe]] }
 0x31a   : > { %v6468_v27 = vpop.permute.xlu0 %2487  ;;  %3244 = vrot.lane.b32.xlu1 %v3241_v1, %s4583_s6  ;;  %v6513_v1 = vsel %vm864_vm10, %v3314_v9, %v3315_v50  ;;  %v6520_v31 = vsel %vm882_vm11, %v3336_v5, %v3338_v48  ;;  %v2766_v30 = vmul.f32 %v2763_v49, %v5927_v44  ;;  %v2725_v52 = vmul.f32 %v2723_v22, %v5925_v3 }
 0x31b   : > { %v2473_v21 = vadd.f32 %v6406_v26, %v2452_v29  ;;  %v2437_v51 = vadd.f32 %v6388_v53, %v2416_v56  ;;  %v6527_v26 = vmul.f32 %v6500_v62, %v5925_v3  ;;  %v6534_v53 = vmul.f32 %v6500_v62, %v5927_v44 }
 0x31c   : > { %3221 = vrot.lane.b32.xlu0 %v3218_v4, %s4583_s6  ;;  %v2532_v54 = vpop.permute.xlu1 %2531  ;;  %v3357_v4 = vrot.slane %v6478_v28, 5  ;;  %v2756_v50 = vrot.slane %v2749_v38, 2  ;;  %v2740_v43 = vsel %vm828_vm8, %v2737_v0, %v2739_v42  ;;  %v2747_v47 = vmul.f32 %v2746_v32, %v5984_v10 }
 0x31d   : > { %v2494_v7 = vadd.f32 %v6437_v12, %v2473_v21  ;;  %v2451_v33 = vadd.f32 %v6414_v8, %v2437_v51  ;;  %v6542_v12 = vmul.f32 %v2746_v32, %v5925_v3  ;;  %v6553_v8 = vmul.f32 %v6460_v37, %v5984_v10 }
 0x31e   : > { %v2509_v60 = vpop.permute.xlu0 %2508  ;;  %3258 = vrot.lane.b32.xlu1 %v6417_v17, %s4584_s26  ;;  %v6549_v35 = vsel %vm900_vm12, %v3357_v4, %v3359_v58  ;;  %v6567_v37 = vmul.f32 %v2763_v49, %v5925_v3  ;;  %v3378_v44 = vrot.slane %v6527_v26, 6  ;;  %v2773_v48 = vrot.slane %v2766_v30, 3 }
 0x31f   : > { %v2515_v25 = vadd.f32 %v2511_v6, %v2494_v7  ;;  %v2472_v34 = vadd.f32 %v6443_v57, %v2451_v33  ;;  %v2780_v6 = vstv %s6490_s20  ;;  %v2754_v55 = vrot.slane %v6542_v12, 2  ;;  %s6769_s20 = sld [smem:[#allocation16 + $0x61]] }
 0x320   : > { %3242 = vrot.lane.b32.xlu0 %v3239_v2, %s4583_s6  ;;  %v2553_v17 = vpop.permute.xlu1 %2552  ;;  %s6529_s6 = sld [smem:[#allocation16 + $0x85]]  ;;  %v2744_v29 = vadd.f32 %v2740_v43, %v2725_v52  ;;  %v6590_v32 = vmul.f32 %v6587_v20, %v2780_v6  ;;  %v2724_v45 = vmul.f32 %v2723_v22, %v5984_v10  ;;  %v2753_v51 = vrot.slane %v2747_v47, 2 }
 0x321   : > { %v2493_v57 = vadd.f32 %v6468_v27, %v2472_v34  ;;  %v3380_v27 = vrot.slane %v6534_v53, 6  ;;  %v3356_v7 = vrot.slane %v6553_v8, 5  ;;  %v2814_v53 = vstv %s6560_s18  ;;  %v6617_v34 = vld [vmem:[#allocation2 + $0x30] sm:$0xff]  ;;  %s6785_s18 = sld [smem:[#allocation16 + $0x15]] }
 0x322   : > { %v2530_v36 = vpop.permute.xlu0 %2529  ;;  %3279 = vrot.lane.b32.xlu1 %v3276_v59, %s4584_s26  ;;  %v2736_v59 = vrot.slane %v2730_v23, 1  ;;  %v2755_v8 = vsel %vm846_vm9, %v2753_v51, %v2754_v55  ;;  %v2817_v30 = vmul.f32 %v6577_v19, %v2814_v53  ;;  %v6622_v52 = vmul.f32 %v6587_v20, %v2814_v53 }
 0x323   : > { %v2514_v3 = vadd.f32 %v2509_v60, %v2493_v57  ;;  %v2757_v60 = vsel %vm846_vm9, %v2754_v55, %v2756_v50  ;;  %v3381_v55 = vsel %vm918_vm13, %v3378_v44, %v3380_v27 }
 0x324   : > { %3256 = vrot.lane.b32.xlu0 %v6420_v24, %s4584_s26  ;;  %v2574_v2 = vpop.permute.xlu1 %2573  ;;  %v2536_v24 = vadd.f32 %v2532_v54, %v2515_v25  ;;  %v2738_v58 = vsel %vm828_vm8, %v2736_v59, %v2737_v0  ;;  %v2761_v22 = vadd.f32 %v2757_v60, %v2744_v29  ;;  %v3337_v25 = vsel %vm882_vm11, %v3335_v15, %v3336_v5 }
 0x325   : > { %v2535_v56 = vadd.f32 %v2530_v36, %v2514_v3  ;;  %v2743_v0 = vadd.f32 %v2738_v58, %v2724_v45  ;;  %v3371_v5 = vmul.f32 %v6617_v34, %v6500_v62  ;;  %v3405_v15 = vstv %s6582_s13  ;;  %s6803_s13 = sld [smem:[#allocation16 + $0x1c]] }
 0x326   : > { %v2551_v18 = vpop.permute.xlu0 %2550  ;;  %3300 = vrot.lane.b32.xlu1 %v3297_v61, %s4584_s26  ;;  %v2557_v16 = vadd.f32 %v2553_v17, %v2536_v24  ;;  %v2783_v61 = vmul.f32 %v6577_v19, %v2780_v6  ;;  %v2797_v11 = vstv %s6529_s6  ;;  %v2764_v17 = vmul.f32 %v2763_v49, %v5984_v10  ;;  %s6780_s6 = sld [smem:[#allocation16 + $0x92]] }
 0x327   : > { %v2800_v36 = vmul.f32 %v6577_v19, %v2797_v11  ;;  %v6603_v12 = vmul.f32 %v6587_v20, %v2797_v11  ;;  %v2788_v49 = vrot.slane %v6590_v32, 4  ;;  %v2760_v43 = vadd.f32 %v2755_v8, %v2743_v0 }
 0x328   : > { %3277 = vrot.lane.b32.xlu0 %v3274_v63, %s4584_s26  ;;  %v2588_v9 = vpop.permute.xlu1 %2587  ;;  %v2578_v41 = vadd.f32 %v2574_v2, %v2557_v16  ;;  %v2771_v63 = vrot.slane %v6567_v37, 3  ;;  %v2790_v42 = vrot.slane %v2783_v61, 4  ;;  %v2770_v23 = vrot.slane %v2764_v17, 3 }
 0x329   : > { %v2805_v50 = vrot.slane %v6603_v12, 5  ;;  %v2798_v59 = vmul.f32 %v6617_v34, %v2797_v11  ;;  %v2824_v3 = vrot.slane %v2817_v30, 6  ;;  %v3408_v61 = vmul.f32 %v6577_v19, %v3405_v15 }
 0x32a   : > { %v2572_v54 = vpop.permute.xlu0 %2571  ;;  %3321 = vrot.lane.b32.xlu1 %v6494_v39, %s4584_s26  ;;  %v2592_v21 = vadd.f32 %v2588_v9, %v2578_v41  ;;  %v2556_v39 = vadd.f32 %v2551_v18, %v2535_v56  ;;  %v2774_v10 = vsel %vm864_vm10, %v2771_v63, %v2773_v48  ;;  %v2807_v18 = vrot.slane %v2800_v36, 5 }
 0x32b   : > { %v2778_v40 = vadd.f32 %v2774_v10, %v2761_v22  ;;  %v2791_v57 = vsel %vm882_vm11, %v2788_v49, %v2790_v42  ;;  %v2772_v62 = vsel %vm864_vm10, %v2770_v23, %v2771_v63  ;;  %v6643_v9 = vmul.f32 %v6587_v20, %v3405_v15 }
 0x32c   : > { %3298 = vrot.lane.b32.xlu0 %v6497_v14, %s4584_s26  ;;  %v2609_v46 = vpop.permute.xlu1 %2608  ;;  %v2577_v14 = vadd.f32 %v2572_v54, %v2556_v39  ;;  %v2822_v48 = vrot.slane %v6622_v52, 6  ;;  %v3426_v29 = vstv %s6605_s16  ;;  %v3377_v11 = vrot.slane %v3371_v5, 6  ;;  %s6837_s16 = sld [smem:[#allocation16 + $0x23]] }
 0x32d   : > { %v2613_v38 = vadd.f32 %v2609_v46, %v2592_v21  ;;  %v2795_v27 = vadd.f32 %v2791_v57, %v2778_v40  ;;  %v2777_v63 = vadd.f32 %v2772_v62, %v2760_v43  ;;  %v3393_v56 = vmul.f32 %v6587_v20, %v3391_v13 }
 0x32e   : > { %v2586_v33 = vpop.permute.xlu0 %2585  ;;  %3342 = vrot.lane.b32.xlu1 %v6520_v31, %s4584_s26  ;;  %v2781_v31 = vmul.f32 %v6617_v34, %v2780_v6  ;;  %v2804_v32 = vrot.slane %v2798_v59, 5  ;;  %v2815_v45 = vmul.f32 %v6617_v34, %v2814_v53  ;;  %v3413_v58 = vrot.slane %v6643_v9, 1 }
 0x32f   : > { %v2591_v2 = vadd.f32 %v2586_v33, %v2577_v14  ;;  %v3415_v51 = vrot.slane %v3408_v61, 1  ;;  %v3428_v17 = vmul.f32 %v6587_v20, %v3426_v29  ;;  %v3429_v39 = vmul.f32 %v6577_v19, %v3426_v29 }
 0x330   : > { %3319 = vrot.lane.b32.xlu0 %v6513_v1, %s4584_s26  ;;  %v2630_v24 = vpop.permute.xlu1 %2629  ;;  %v2787_v16 = vrot.slane %v2781_v31, 4  ;;  %v3447_v33 = vstv %s6627_s7  ;;  %v3379_v42 = vsel %vm918_vm13, %v3377_v11, %v3378_v44  ;;  %v3406_v12 = vmul.f32 %v6617_v34, %v3405_v15  ;;  %s6850_s7 = sld [smem:[#allocation16 + $0x2a]] }
 0x331   : > { %v2634_v1 = vadd.f32 %v2630_v24, %v2613_v38  ;;  %v2825_v38 = vsel %vm918_vm13, %v2822_v48, %v2824_v3  ;;  %v3392_v14 = vmul.f32 %v6617_v34, %v3391_v13  ;;  %v2806_v10 = vsel %vm900_vm12, %v2804_v32, %v2805_v50 }
 0x332   : > { %v2607_v37 = vpop.permute.xlu0 %2606  ;;  %3363 = vrot.lane.b32.xlu1 %v6549_v35, %s4584_s26  ;;  %v3358_v35 = vsel %vm900_vm12, %v3356_v7, %v3357_v4  ;;  %v2808_v4 = vsel %vm900_vm12, %v2805_v50, %v2807_v18  ;;  %v2789_v60 = vsel %vm882_vm11, %v2787_v16, %v2788_v49  ;;  %v2821_v49 = vrot.slane %v2815_v45, 6 }
 0x333   : > { %v2612_v6 = vadd.f32 %v2607_v37, %v2591_v2  ;;  %v2812_v36 = vadd.f32 %v2808_v4, %v2795_v27  ;;  %v2794_v22 = vadd.f32 %v2789_v60, %v2777_v63  ;;  %v3434_v8 = vrot.slane %v3428_v17, 2 }
 0x334   : > { %3340 = vrot.lane.b32.xlu0 %v3337_v25, %s4584_s26  ;;  %v2651_v47 = vpop.permute.xlu1 %2650  ;;  %v3416_v25 = vsel %vm828_vm8, %v3413_v58, %v3415_v51  ;;  %v3436_v23 = vrot.slane %v3429_v39, 2  ;;  %v3449_v26 = vmul.f32 %v6587_v20, %v3447_v33  ;;  %v3450_v2 = vmul.f32 %v6577_v19, %v3447_v33 }
 0x335   : > { %v2655_v41 = vadd.f32 %v2651_v47, %v2634_v1  ;;  %v2829_v44 = vadd.f32 %v2825_v38, %v2812_v36  ;;  %v3427_v24 = vmul.f32 %v6617_v34, %v3426_v29  ;;  %v3468_v18 = vstv %s6648_s17  ;;  %s7408_s17 = sld [smem:[#allocation25_spill]] }
 0x336   : > { %v2628_v54 = vpop.permute.xlu0 %2627  ;;  %3384 = vrot.lane.b32.xlu1 %v3381_v55, %s4584_s26  ;;  %v2811_v30 = vadd.f32 %v2806_v10, %v2794_v22  ;;  %v3412_v52 = vrot.slane %v3406_v12, 1  ;;  %v2823_v37 = vsel %vm918_vm13, %v2821_v49, %v2822_v48  ;;  %v3437_v5 = vsel %vm846_vm9, %v3434_v8, %v3436_v23 }
 0x337   : > { %v2633_v28 = vadd.f32 %v2628_v54, %v2612_v6  ;;  %v3455_v15 = vrot.slane %v3449_v26, 3  ;;  %v3470_v6 = vmul.f32 %v6587_v20, %v3468_v18  ;;  %v3471_v57 = vmul.f32 %v6577_v19, %v3468_v18 }
 0x338   : > { %3361 = vrot.lane.b32.xlu0 %v3358_v35, %s4584_s26  ;;  %v2672_v21 = vpop.permute.xlu1 %2671  ;;  %v3457_v55 = vrot.slane %v3450_v2, 3  ;;  %v3433_v62 = vrot.slane %v3427_v24, 2  ;;  %v3489_v16 = vstv %s6665_s23  ;;  %v2828_v59 = vadd.f32 %v2823_v37, %v2811_v30 }
 0x339   : > { %v6661_v46 = vadd.f32 %v2672_v21, %v2655_v41  ;;  %v3414_v47 = vsel %vm828_vm8, %v3412_v52, %v3413_v58  ;;  %v3448_v35 = vmul.f32 %v6617_v34, %v3447_v33  ;;  %v3476_v61 = vrot.slane %v3470_v6, 4 }
 0x33a   : > { %v2649_v7 = vpop.permute.xlu0 %2648  ;;  %3398 = vrot.lane.b32.xlu1 %v3393_v56, %s4585_s9  ;;  %v3478_v41 = vrot.slane %v3471_v57, 4  ;;  %v3491_v54 = vmul.f32 %v6587_v20, %v3489_v16  ;;  %v3458_v48 = vsel %vm864_vm10, %v3455_v15, %v3457_v55  ;;  %v3492_v4 = vmul.f32 %v6577_v19, %v3489_v16 }
 0x33b   : > { %v2654_v53 = vadd.f32 %v2649_v7, %v2633_v28  ;;  %v3435_v28 = vsel %vm846_vm9, %v3433_v62, %v3434_v8  ;;  %v3454_v63 = vrot.slane %v3448_v35, 3  ;;  %v3469_v56 = vmul.f32 %v6617_v34, %v3468_v18  ;;  %s4132_s23 = sshll.u32 %s7408_s17, 10 }
 0x33c   : > { %3382 = vrot.lane.b32.xlu0 %v3379_v42, %s4584_s26  ;;  %v2839_v0 = vpop.permute.xlu1 %2838  ;;  %s6685_s26 = sld [smem:[#allocation16 + $0x91]]  ;;  %v3479_v45 = vsel %vm882_vm11, %v3476_v61, %v3478_v41  ;;  %v3497_v21 = vrot.slane %v3491_v54, 5  ;;  %v3490_v58 = vmul.f32 %v6617_v34, %v3489_v16  ;;  %v3499_v39 = vrot.slane %v3492_v4, 5 }
 0x33d   : > { %v2843_v1 = vadd.f32 %v2839_v0, %v2829_v44  ;;  %v3456_v33 = vsel %vm864_vm10, %v3454_v63, %v3455_v15  ;;  %v3545_v26 = vstv %s4113_s1  ;;  %v3566_v2 = vstv %s4114_s25 }
 0x33e   : > { %v2670_v31 = vpop.permute.xlu0 %2669  ;;  %3419 = vrot.lane.b32.xlu1 %v3416_v25, %s4585_s9  ;;  %v3496_v22 = vrot.slane %v3490_v58, 5  ;;  %v3547_v52 = vmul.f32 %v6587_v20, %v3545_v26  ;;  %v6730_v57 = vmul.f32 %v6587_v20, %v3566_v2 }
 0x33f   : > { %v6683_v13 = vadd.f32 %v2670_v31, %v2654_v53  ;;  %v3475_v53 = vrot.slane %v3469_v56, 4  ;;  %v3531_v31 = vstv %s6707_s19  ;;  %v3567_v56 = vmul.f32 %v6617_v34, %v3566_v2 }
 0x340   : > { %3396 = vrot.lane.b32.xlu0 %v3392_v14, %s4585_s9  ;;  %v2860_v40 = vpop.permute.xlu1 %2859  ;;  %v3500_v14 = vsel %vm900_vm12, %v3497_v21, %v3499_v39  ;;  %v3533_v6 = vmul.f32 %v6587_v20, %v3531_v31  ;;  %v3553_v62 = vrot.slane %v3547_v52, 1  ;;  %v6782_v52 = vld [vmem:[#allocation2 + $0x10] sm:$0x3f] }
 0x341   : > { %v2864_v50 = vadd.f32 %v2860_v40, %v2843_v1  ;;  %v3477_v8 = vsel %vm882_vm11, %v3475_v53, %v3476_v61  ;;  %v3548_v1 = vmul.f32 %v6577_v19, %v3545_v26  ;;  %v3498_v40 = vsel %vm900_vm12, %v3496_v22, %v3497_v21 }
 0x342   : > { %v2837_v43 = vpop.permute.xlu0 %2836  ;;  %3440 = vrot.lane.b32.xlu1 %v3437_v5, %s4585_s9  ;;  %v3510_v60 = vstv %s6685_s26  ;;  %v3532_v61 = vmul.f32 %v6617_v34, %v3531_v31  ;;  %v821_v22 = vstv %s6739_s15  ;;  %s610_s26 = scalar_lea.vmem [#allocation17], %s3965_s11  ;;  %s3707_s11 = scalar_lea.sflag [#allocation6], %s4963_s28 }
 0x343   : > { %v2842_v3 = vadd.f32 %v2837_v43, %v2828_v59  ;;  %v3512_v7 = vmul.f32 %v6587_v20, %v3510_v60  ;;  %v3513_v36 = vmul.f32 %v6577_v19, %v3510_v60  ;;  %v3511_v23 = vmul.f32 %v6617_v34, %v3510_v60  ;;  %s3722_s1 = sshll.u32 %s610_s26, 4  ;;  %s4587_s15 = smov [#allocation17]   ;;  %s7101_s1 = int_to_ptr.vmem [resolvable:$true] %s3722_s1 }
 0x344   : > { %3417 = vrot.lane.b32.xlu0 %v3414_v47, %s4585_s9  ;;  %v2881_v9 = vpop.permute.xlu1 %2880  ;;  %v3555_v16 = vrot.slane %v3548_v1, 1  ;;  %v3569_v59 = vmul.f32 %v6577_v19, %v3566_v2  ;;  %v3608_v60 = vstv %s6725_s8  ;;  %v824_v1 = vmul.f32 %v6782_v52, %v821_v22 }
 0x345   : > { %v2885_v27 = vadd.f32 %v2881_v9, %v2864_v50  ;;  %v3518_v49 = vrot.slane %v3512_v7, 6  ;;  %v3520_v0 = vrot.slane %v3513_v36, 6  ;;  %v3517_v5 = vrot.slane %v3511_v23, 6 }
 0x346   : > { %v2858_v29 = vpop.permute.xlu0 %2857  ;;  %3461 = vrot.lane.b32.xlu1 %v3458_v48, %s4585_s9  ;;  %v3587_v50 = vstv %s4115_s14  ;;  %v3556_v48 = vsel %vm828_vm8, %v3553_v62, %v3555_v16  ;;  %v3576_v4 = vrot.slane %v3569_v59, 2  ;;  %v6757_v39 = vmul.f32 %v6587_v20, %v3608_v60  ;;  %s7409_s14 = sld [smem:[#allocation123_spill]] }
 0x347   : > { %v2863_v11 = vadd.f32 %v2858_v29, %v2842_v3  ;;  %v3521_v18 = vsel %vm918_vm13, %v3518_v49, %v3520_v0  ;;  %v3519_v35 = vsel %vm918_vm13, %v3517_v5, %v3518_v49  ;;  %v3546_v3 = vmul.f32 %v6617_v34, %v3545_v26  ;;  %v4261_v0 = vld [vmem:[#allocation2 + $0x28] sm:$0x3f] }
 0x348   : > { %3438 = vrot.lane.b32.xlu0 %v3435_v28, %s4585_s9  ;;  %v2902_v32 = vpop.permute.xlu1 %2901  ;;  %v6743_v41 = vmul.f32 %v6587_v20, %v3587_v50  ;;  %v3590_v54 = vmul.f32 %v6577_v19, %v3587_v50  ;;  %v3574_v28 = vrot.slane %v6730_v57, 2  ;;  %v3611_v7 = vmul.f32 %v6577_v19, %v3608_v60 }
 0x349   : > { %v2906_v51 = vadd.f32 %v2902_v32, %v2885_v27  ;;  %v3552_v63 = vrot.slane %v3546_v3, 1  ;;  %v3588_v53 = vmul.f32 %v6617_v34, %v3587_v50  ;;  %v3616_v26 = vrot.slane %v6757_v39, 4 }
 0x34a   : > { %v2879_v17 = vpop.permute.xlu0 %2878  ;;  %3482 = vrot.lane.b32.xlu1 %v3479_v45, %s4585_s9  ;;  %v3595_v45 = vrot.slane %v6743_v41, 3  ;;  %v3597_v21 = vrot.slane %v3590_v54, 3  ;;  %v832_v3 = vrot.slane %v824_v1, 1 }
 0x34b   : > { %v2884_v38 = vadd.f32 %v2879_v17, %v2863_v11 }
 0x34c   : > { %3459 = vrot.lane.b32.xlu0 %v3456_v33, %s4585_s9  ;;  %v2923_v42 = vpop.permute.xlu1 %2922  ;;  %v3573_v33 = vrot.slane %v3567_v56, 2  ;;  %s7099_s8 = scalar_lea.hbm %s7409_s14, %s4132_s23 }
 0x34d   : > { %v2927_v12 = vadd.f32 %v2923_v42, %v2906_v51  ;;  %v3577_v51 = vsel %vm846_vm9, %v3574_v28, %v3576_v4  ;;  %v2678_v42 = vstv %s6737_s3  ;;  %s4469_s3 = scalar_lea.vmem %s7101_s1, 1024 }
 0x34e   : > { %v2900_v10 = vpop.permute.xlu0 %2899  ;;  %3503 = vrot.lane.b32.xlu1 %v3500_v14, %s4585_s9  ;;  %v3598_v14 = vsel %vm864_vm10, %v3595_v45, %v3597_v21  ;;  %p4470_p12 = scmp.ne.s32.totalorder %s7101_s1, %s4469_s3 }
 0x34f   : > { %v2905_v25 = vadd.f32 %v2900_v10, %v2884_v38  ;;  %v3554_v38 = vsel %vm828_vm8, %v3552_v63, %v3553_v62  ;;  %v4260_v10 = vld [vmem:[#allocation2 + $0x20] sm:$0xff] }
 0x350   : > { %3480 = vrot.lane.b32.xlu0 %v3477_v8, %s4585_s9  ;;  %v2944_v44 = vpop.permute.xlu1 %2943  ;;  %v6773_v49 = vmul.f32 %v4260_v10, %v2678_v42  ;;  %p4471_p8 = pnand %p4470_p12, %p7410_p4 }
 0x351   : > { %v2948_v24 = vadd.f32 %v2944_v44, %v2927_v12  ;;  %v3618_v44 = vrot.slane %v3611_v7, 4  ;;  %v6821_v7 = vld [vmem:[#allocation2] sm:$0xff] }
 0x352   : > { %v2921_v30 = vpop.permute.xlu0 %2920  ;;  %3524 = vrot.lane.b32.xlu1 %v3521_v18, %s4585_s9  ;;  %v3594_v18 = vrot.slane %v3588_v53, 3  ;;  %p4472_p3 = pneg %p4471_p8 }
 0x353   : > { %v2926_v37 = vadd.f32 %v2921_v30, %v2905_v25  ;;  %v2681_v25 = vmul.f32 %v4261_v0, %v2678_v42  ;;  %v3609_v30 = vmul.f32 %v6617_v34, %v3608_v60  ;;  %v3619_v50 = vsel %vm882_vm11, %v3616_v26, %v3618_v44 }
 0x354   : > { %3501 = vrot.lane.b32.xlu0 %v3498_v40, %s4585_s9  ;;  %v2965_v15 = vpop.permute.xlu1 %2964  ;;  %v3596_v59 = vsel %vm864_vm10, %v3594_v18, %v3595_v45 }
 0x355   : > { %v2969_v43 = vadd.f32 %v2965_v15, %v2948_v24  ;;  %v3575_v24 = vsel %vm846_vm9, %v3573_v33, %v3574_v28  ;;  %v2688_v62 = vrot.slane %v2681_v25, 5 }
 0x356   : > { %v2942_v55 = vpop.permute.xlu0 %2941  ;;  %3538 = vrot.lane.b32.xlu1 %v3533_v6, %s4586_s22 }
 0x357   : > { %v2947_v47 = vadd.f32 %v2942_v55, %v2926_v37  ;;  %v6788_v37 = vld [vmem:[#allocation2 + $0x8] sm:$0xff]  ;;  %v2686_v55 = vrot.slane %v6773_v49, 5 }
 0x358   : > { %3522 = vrot.lane.b32.xlu0 %v3519_v35, %s4585_s9  ;;  %v2979_v9 = vpop.permute.xlu1 %2978  ;;  %s6748_s9 = sld [smem:[#allocation16 + $0x8b]]  ;;  %v6791_v40 = vmul.f32 %v6788_v37, %v821_v22  ;;  %v815_v35 = vstv %s6760_s24 }
 0x359   : > { %v2983_v27 = vadd.f32 %v2979_v9, %v2969_v43  ;;  %v839_v9 = vstv %s6765_s21  ;;  %v2689_v63 = vsel %vm900_vm12, %v2686_v55, %v2688_v62  ;;  %v817_v39 = vmul.f32 %v6788_v37, %v815_v35 }
 0x35a   : > { %v2963_v29 = vpop.permute.xlu0 %2962  ;;  %3559 = vrot.lane.b32.xlu1 %v3556_v48, %s4586_s22  ;;  %v4264_v48 = vld [vmem:[#allocation2 + $0x18] sm:$0xff]  ;;  %v830_v4 = vrot.slane %v6791_v40, 1  ;;  %v840_v18 = vmul.f32 %v6821_v7, %v839_v9 }
 0x35b   : > { %v2968_v11 = vadd.f32 %v2963_v29, %v2947_v47  ;;  %v3615_v47 = vrot.slane %v3609_v30, 4  ;;  %v2679_v29 = vmul.f32 %v4264_v48, %v2678_v42 }
 0x35c   : > { %3536 = vrot.lane.b32.xlu0 %v3532_v61, %s4586_s22  ;;  %v3000_v32 = vpop.permute.xlu1 %2999  ;;  %v2699_v61 = vstv %s6769_s20 }
 0x35d   : > { %v3004_v58 = vadd.f32 %v3000_v32, %v2983_v27  ;;  %v6808_v28 = vmul.f32 %v4260_v10, %v2699_v61  ;;  %v2702_v60 = vmul.f32 %v4261_v0, %v2699_v61  ;;  %v3617_v45 = vsel %vm882_vm11, %v3615_v47, %v3616_v26 }
 0x35e   : > { %v2977_v17 = vpop.permute.xlu0 %2976  ;;  %3580 = vrot.lane.b32.xlu1 %v3577_v51, %s4586_s22  ;;  %v3629_v31 = vstv %s6748_s9  ;;  %v842_v51 = vmul.f32 %v6782_v52, %v839_v9  ;;  %v2685_v42 = vrot.slane %v2679_v29, 5  ;;  %v2700_v1 = vmul.f32 %v4264_v48, %v2699_v61  ;;  %s4473_s9 = sshll.u32 %s4587_s15, 4  ;;  %s4474_s9 = int_to_ptr.vmem [resolvable:$false] %s4473_s9 }
 0x35f   : > { %v2982_v36 = vadd.f32 %v2977_v17, %v2968_v11  ;;  %v6794_v15 = vmul.f32 %v6587_v20, %v3629_v31  ;;  %v3632_v6 = vmul.f32 %v6577_v19, %v3629_v31  ;;  %v3630_v21 = vmul.f32 %v6617_v34, %v3629_v31  ;;  %s4475_s24 = scalar_lea.vmem %s4474_s9, 2048  ;;  %p4476_p13 = scmp.lt.s32.totalorder %s7101_s1, %s4474_s9 }
 0x360   : > { %3557 = vrot.lane.b32.xlu0 %v3554_v38, %s4586_s22  ;;  %v3021_v12 = vpop.permute.xlu1 %3020  ;;  %v857_v17 = vstv %s6785_s18  ;;  %v833_v38 = vsel %vm828_vm8, %v830_v4, %v832_v3  ;;  %v2709_v49 = vrot.slane %v2702_v60, 6  ;;  %v850_v44 = vrot.slane %v842_v51, 2  ;;  %p4477_p0 = scmp.lt.s32.totalorder %s4475_s24, %s4469_s3 }
 0x361   : > { %v3025_v8 = vadd.f32 %v3021_v12, %v3004_v58  ;;  %v3637_v54 = vrot.slane %v6794_v15, 5  ;;  %v3639_v27 = vrot.slane %v3632_v6, 5  ;;  %v3650_v58 = vstv %s6780_s6 }
 0x362   : > { %v2998_v23 = vpop.permute.xlu0 %2997  ;;  %3601 = vrot.lane.b32.xlu1 %v3598_v14, %s4586_s22  ;;  %v2707_v12 = vrot.slane %v6808_v28, 6  ;;  %v6829_v0 = vmul.f32 %v6587_v20, %v3650_v58  ;;  %v3653_v25 = vmul.f32 %v6577_v19, %v3650_v58  ;;  %v3636_v26 = vrot.slane %v3630_v21, 5  ;;  %p4478_p7 = por %p4477_p0, %p4476_p13 }
 0x363   : > { %v3003_v2 = vadd.f32 %v2998_v23, %v2982_v36  ;;  %v822_v36 = vmul.f32 %v6821_v7, %v821_v22  ;;  %v3640_v53 = vsel %vm900_vm12, %v3637_v54, %v3639_v27  ;;  %v841_v22 = vmul.f32 %v6788_v37, %v839_v9 }
 0x364   : > { %3578 = vrot.lane.b32.xlu0 %v3575_v24, %s4586_s22  ;;  %v3042_v5 = vpop.permute.xlu1 %3041  ;;  %v2687_v23 = vsel %vm900_vm12, %v2685_v42, %v2686_v55  ;;  %v860_v31 = vmul.f32 %v6782_v52, %v857_v17  ;;  %v837_v20 = vadd.f32 %v833_v38, %v817_v39  ;;  %v859_v19 = vmul.f32 %v6788_v37, %v857_v17  ;;  %p4479_p1 = pnand %p4478_p7, %p4472_p3 }
 0x365   : > { %v3046_v57 = vadd.f32 %v3042_v5, %v3025_v8  ;;  %v829_v24 = vrot.slane %v822_v36, 1  ;;  %v2710_v5 = vsel %vm918_vm13, %v2707_v12, %v2709_v49  ;;  %v3658_v6 = vrot.slane %v6829_v0, 6 }
 0x366   : > { %v3019_v43 = vpop.permute.xlu0 %3018  ;;  %3622 = vrot.lane.b32.xlu1 %v3619_v50, %s4586_s22  ;;  %v848_v50 = vrot.slane %v841_v22, 2  ;;  %v3638_v55 = vsel %vm900_vm12, %v3636_v26, %v3637_v54  ;;  %v3651_v62 = vmul.f32 %v6617_v34, %v3650_v58  ;;  %v866_v61 = vrot.slane %v859_v19, 3 }
 0x367   : > { %v3024_v16 = vadd.f32 %v3019_v43, %v3003_v2  ;;  %v875_v2 = vstv %s6803_s13  ;;  %v831_v3 = vsel %vm828_vm8, %v829_v24, %v830_v4  ;;  %v2706_v34 = vrot.slane %v2700_v1, 6 }
 0x368   : > { %3599 = vrot.lane.b32.xlu0 %v3596_v59, %s4586_s22  ;;  %v3063_v41 = vpop.permute.xlu1 %3062  ;;  %v878_v59 = vmul.f32 %v6782_v52, %v875_v2  ;;  %v877_v47 = vmul.f32 %v6788_v37, %v875_v2  ;;  %v851_v9 = vsel %vm846_vm9, %v848_v50, %v850_v44  ;;  %v847_v48 = vrot.slane %v840_v18, 2 }
 0x369   : > { %v3067_v11 = vadd.f32 %v3063_v41, %v3046_v57  ;;  %v3660_v57 = vrot.slane %v3653_v25, 6  ;;  %v816_v41 = vmul.f32 %v6821_v7, %v815_v35  ;;  %v855_v27 = vadd.f32 %v851_v9, %v837_v20 }
 0x36a   : > { %v3040_v56 = vpop.permute.xlu0 %3039  ;;  %2692 = vrot.lane.b32.xlu1 %v2689_v63, %s4586_s22  ;;  %v858_v29 = vmul.f32 %v6821_v7, %v857_v17  ;;  %v3657_v60 = vrot.slane %v3651_v62, 6  ;;  %v893_v35 = vstv %s6837_s16  ;;  %v849_v17 = vsel %vm846_vm9, %v847_v48, %v848_v50  ;;  %v7326_v48 = vld [vmem:[#allocation41_spill] sm:$0xff] }
 0x36b   : > { %v3045_v32 = vadd.f32 %v3040_v56, %v3024_v16  ;;  %v868_v16 = vrot.slane %v860_v31, 3  ;;  %v3661_v28 = vsel %vm918_vm13, %v3658_v6, %v3660_v57  ;;  %v836_v4 = vadd.f32 %v831_v3, %v816_v41 }
 0x36c   : > { %3620 = vrot.lane.b32.xlu0 %v3617_v45, %s4586_s22  ;;  %v3084_v33 = vpop.permute.xlu1 %3083  ;;  %v2708_v56 = vsel %vm918_vm13, %v2706_v34, %v2707_v12  ;;  %v896_v45 = vmul.f32 %v6782_v52, %v893_v35  ;;  %v865_v39 = vrot.slane %v858_v29, 3  ;;  %v876_v36 = vmul.f32 %v6821_v7, %v875_v2 }
 0x36d   : > { %v3088_v14 = vadd.f32 %v3084_v33, %v3067_v11  ;;  %v869_v21 = vsel %vm864_vm10, %v866_v61, %v868_v16  ;;  %v884_v33 = vrot.slane %v877_v47, 4  ;;  %v854_v42 = vadd.f32 %v849_v17, %v836_v4  ;;  %v7324_v47 = vld [vmem:[#allocation30_spill] sm:$0xff]  ;;  %v7331_v17 = vld [vmem:[#allocation44_spill] sm:$0xff] }
 0x36e   : > { %v3061_v10 = vpop.permute.xlu0 %3060  ;;  %3643 = vrot.lane.b32.xlu1 %v3640_v53, %s4586_s22  ;;  %v873_v51 = vadd.f32 %v869_v21, %v855_v27  ;;  %v895_v53 = vmul.f32 %v6788_v37, %v893_v35  ;;  %v3659_v12 = vsel %vm918_vm13, %v3657_v60, %v3658_v6  ;;  %v894_v26 = vmul.f32 %v6821_v7, %v893_v35  ;;  %v7330_v21 = vld [vmem:[#allocation45_spill] sm:$0xff] }
 0x36f   : > { %v3066_v8 = vadd.f32 %v3061_v10, %v3045_v32  ;;  %v886_v32 = vrot.slane %v878_v59, 4  ;;  %v904_v10 = vrot.slane %v896_v45, 5 }
 0x370   : > { %2690 = vrot.lane.b32.xlu0 %v2687_v23, %s4586_s22  ;;  %v3105_v30 = vpop.permute.xlu1 %3104  ;;  %v883_v23 = vrot.slane %v876_v36, 4  ;;  %v902_v31 = vrot.slane %v895_v53, 5  ;;  %v901_v1 = vrot.slane %v894_v26, 5  ;;  %v7336_v26 = vld [vmem:[#allocation50_spill] sm:$0xff] }
 0x371   : > { %v6842_v40 = vadd.f32 %v3105_v30, %v3088_v14  ;;  %v911_v14 = vstv %s6850_s7  ;;  %v887_v0 = vsel %vm882_vm11, %v884_v33, %v886_v32  ;;  %v7329_v32 = vld [vmem:[#allocation42_spill] sm:$0xff] }
 0x372   : > { %v3082_v15 = vpop.permute.xlu0 %3081  ;;  %2713 = vrot.lane.b32.xlu1 %v2710_v5, %s4586_s22  ;;  %v914_v49 = vmul.f32 %v6782_v52, %v911_v14  ;;  %v891_v22 = vadd.f32 %v887_v0, %v873_v51  ;;  %v913_v2 = vmul.f32 %v6788_v37, %v911_v14  ;;  %v905_v19 = vsel %vm900_vm12, %v902_v31, %v904_v10  ;;  %v7334_v10 = vld [vmem:[#allocation49_spill] sm:$0xff]  ;;  %v7335_v0 = vld [vmem:[#allocation48_spill] sm:$0xff] }
 0x373   : > { %v3087_v43 = vadd.f32 %v3082_v15, %v3066_v8  ;;  %v867_v8 = vsel %vm864_vm10, %v865_v39, %v866_v61  ;;  %v885_v30 = vsel %vm882_vm11, %v883_v23, %v884_v33  ;;  %v912_v5 = vmul.f32 %v6821_v7, %v911_v14  ;;  %v7325_v61 = vld [vmem:[#allocation39_spill] sm:$0xff] }
 0x374   : > { %3641 = vrot.lane.b32.xlu0 %v3638_v55, %s4586_s22  ;;  %v6859_v54 = vpop.permute.xlu1 %3118  ;;  %v872_v24 = vadd.f32 %v867_v8, %v854_v42  ;;  %v922_v20 = vrot.slane %v914_v49, 6  ;;  %v909_v18 = vadd.f32 %v905_v19, %v891_v22  ;;  %v920_v6 = vrot.slane %v913_v2, 6  ;;  %v7332_v33 = vld [vmem:[#allocation47_spill] sm:$0xff] }
 0x375   : > { %v903_v55 = vsel %vm900_vm12, %v901_v1, %v902_v31  ;;  %v919_v62 = vrot.slane %v912_v5, 6  ;;  %v7337_v2 = vld [vmem:[#allocation31_spill] sm:$0xff] }
 0x376   : > { %v3103_v11 = vpop.permute.xlu0 %3102  ;;  %3664 = vrot.lane.b32.xlu1 %v3661_v28, %s4586_s22  ;;  %v890_v57 = vadd.f32 %v885_v30, %v872_v24  ;;  %v923_v50 = vsel %vm918_vm13, %v920_v6, %v922_v20  ;;  %v7327_v28 = vld [vmem:[#allocation32_spill] sm:$0xff]  ;;  %v7339_v1 = vld [vmem:[#allocation51_spill] sm:$0xff] }
 0x377   : > { %v6864_v63 = vadd.f32 %v3103_v11, %v3087_v43  ;;  %v927_v37 = vadd.f32 %v923_v50, %v909_v18  ;;  %v921_v7 = vsel %vm918_vm13, %v919_v62, %v920_v6  ;;  %v7338_v20 = vld [vmem:[#allocation52_spill] sm:$0xff]  ;;  %v7340_v6 = vld [vmem:[#allocation34_spill] sm:$0xff] }
 0x378   : > { %2711 = vrot.lane.b32.xlu0 %v2708_v56, %s4586_s22  ;;  %v6871_v58 = vpop.permute.xlu1 %3139  ;;  %v908_v59 = vadd.f32 %v903_v55, %v890_v57  ;;  %v7328_v56 = vld [vmem:[#allocation43_spill] sm:$0xff] }
 0x379   : > { %v941_v3 = vadd.f32 %v7324_v47, %v927_v37  ;;  %v7341_v37 = vld [vmem:[#allocation53_spill] sm:$0xff] }
 0x37a   : > { %v6875_v38 = vpop.permute.xlu0 %3116  ;;  %v926_v27 = vadd.f32 %v921_v7, %v908_v59  ;;  %v7342_v59 = vld [vmem:[#allocation55_spill] sm:$0xff] }
 0x37b   : > { %v962_v41 = vadd.f32 %v7325_v61, %v941_v3  ;;  %v7343_v3 = vld [vmem:[#allocation54_spill] sm:$0xff] }
 0x37c   : > { %3662 = vrot.lane.b32.xlu0 %v3659_v12, %s4586_s22  ;;  %v6883_v25 = vpop.permute.xlu1 %3160  ;;  %v940_v11 = vadd.f32 %v7327_v28, %v926_v27  ;;  %v7333_v12 = vld [vmem:[#allocation46_spill] sm:$0xff]  ;;  %s7068_s22 = sld [smem:[#allocation3]] }
 0x37d   : > { %v983_v29 = vadd.f32 %v7326_v48, %v962_v41  ;;  %v7344_v41 = vld [vmem:[#allocation57_spill] sm:$0xff] }
 0x37e   : > { %v6887_v44 = vpop.permute.xlu0 %3137  ;;  %v961_v45 = vadd.f32 %v7329_v32, %v940_v11  ;;  %v7346_v11 = vld [vmem:[#allocation59_spill] sm:$0xff] }
 0x37f   : > { %v1004_v60 = vadd.f32 %v7328_v56, %v983_v29  ;;  %v7345_v29 = vld [vmem:[#allocation56_spill] sm:$0xff] }
 0x380   : > { %v6891_v52 = vpop.permute.xlu1 %3181  ;;  %v982_v39 = vadd.f32 %v7331_v17, %v961_v45 }
 0x381   : > { %v1025_v51 = vadd.f32 %v7330_v21, %v1004_v60  ;;  %v7347_v60 = vld [vmem:[#allocation58_spill] sm:$0xff]  ;;  %v7348_v21 = vld [vmem:[#allocation61_spill] sm:$0xff] }
 0x382   : > { %v6895_v15 = vpop.permute.xlu0 %3158  ;;  %v1003_v14 = vadd.f32 %v7333_v12, %v982_v39  ;;  %v7349_v39 = vld [vmem:[#allocation60_spill] sm:$0xff] }
 0x383   : > { %v1046_v53 = vadd.f32 %v7332_v33, %v1025_v51 }
 0x384   : > { %v6898_v43 = vpop.permute.xlu1 %3202  ;;  %v1024_v22 = vadd.f32 %v7335_v0, %v1003_v14 }
 0x385   : > { %v1067_v49 = vadd.f32 %v7334_v10, %v1046_v53  ;;  %v7350_v53 = vld [vmem:[#allocation62_spill] sm:$0xff]  ;;  %v7351_v10 = vld [vmem:[#allocation33_spill] sm:$0xff] }
 0x386   : > { %v6901_v16 = vpop.permute.xlu0 %3179  ;;  %v1045_v31 = vadd.f32 %v7336_v26, %v1024_v22  ;;  %v7352_v22 = vld [vmem:[#allocation64_spill] sm:$0xff] }
 0x387   : > { %v1081_v24 = vadd.f32 %v7337_v2, %v1067_v49  ;;  %v7353_v2 = vld [vmem:[#allocation63_spill] sm:$0xff] }
 0x388   : > { %v6904_v9 = vpop.permute.xlu1 %3223  ;;  %v1066_v19 = vadd.f32 %v7338_v20, %v1045_v31 }
 0x389   : > { %v1102_v5 = vadd.f32 %v7339_v1, %v1081_v24 }
 0x38a   : > { %v6908_v34 = vpop.permute.xlu0 %3200  ;;  %v1080_v57 = vadd.f32 %v7340_v6, %v1066_v19  ;;  %v7354_v19 = vld [vmem:[#allocation36_spill] sm:$0xff] }
 0x38b   : > { %v1123_v55 = vadd.f32 %v7341_v37, %v1102_v5  ;;  %v7355_v5 = vld [vmem:[#allocation65_spill] sm:$0xff]  ;;  %v7356_v37 = vld [vmem:[#allocation67_spill] sm:$0xff] }
 0x38c   : > { %v6912_v4 = vpop.permute.xlu1 %3244  ;;  %v1101_v7 = vadd.f32 %v7343_v3, %v1080_v57 }
 0x38d   : > { %v1144_v47 = vadd.f32 %v7342_v59, %v1123_v55 }
 0x38e   : > { %v6915_v35 = vpop.permute.xlu0 %3221  ;;  %v1122_v28 = vadd.f32 %v7345_v29, %v1101_v7  ;;  %v7358_v7 = vld [vmem:[#allocation69_spill] sm:$0xff]  ;;  %v7359_v29 = vld [vmem:[#allocation68_spill] sm:$0xff] }
 0x38f   : > { %v1165_v27 = vadd.f32 %v7344_v41, %v1144_v47  ;;  %v7357_v47 = vld [vmem:[#allocation66_spill] sm:$0xff] }
 0x390   : > { %v6920_v36 = vpop.permute.xlu1 %3258  ;;  %v1143_v32 = vadd.f32 %v7347_v60, %v1122_v28 }
 0x391   : > { %v1186_v56 = vadd.f32 %v7346_v11, %v1165_v27  ;;  %v3123_v27 = vadd.f32 %v6859_v54, %v6842_v40  ;;  %v3122_v40 = vadd.f32 %v6875_v38, %v6864_v63 }
 0x392   : > { %v6923_v42 = vpop.permute.xlu0 %3242  ;;  %v1164_v33 = vadd.f32 %v7349_v39, %v1143_v32 }
 0x393   : > { %v1207_v51 = vadd.f32 %v7348_v21, %v1186_v56  ;;  %v7360_v56 = vld [vmem:[#allocation71_spill] sm:$0xff]  ;;  %v3144_v32 = vadd.f32 %v6871_v58, %v3123_v27  ;;  %v7364_v58 = vld [vmem:[#allocation74_spill] sm:$0xff] }
 0x394   : > { %v6928_v8 = vpop.permute.xlu1 %3279  ;;  %v1185_v12 = vadd.f32 %v7350_v53, %v1164_v33  ;;  %v7362_v33 = vld [vmem:[#allocation73_spill] sm:$0xff] }
 0x395   : > { %v1221_v49 = vadd.f32 %v7351_v10, %v1207_v51  ;;  %v7361_v51 = vld [vmem:[#allocation70_spill] sm:$0xff]  ;;  %v7363_v10 = vld [vmem:[#allocation72_spill] sm:$0xff] }
 0x396   : > { %v6930_v23 = vpop.permute.xlu0 %3256  ;;  %v1206_v26 = vadd.f32 %v7352_v22, %v1185_v12  ;;  %v3165_v12 = vadd.f32 %v6883_v25, %v3144_v32  ;;  %v7366_v25 = vld [vmem:[#allocation76_spill] sm:$0xff] }
 0x397   : > { %v1242_v24 = vadd.f32 %v7353_v2, %v1221_v49 }
 0x398   : > { %v6935_v18 = vpop.permute.xlu1 %3300  ;;  %v1220_v1 = vadd.f32 %v7354_v19, %v1206_v26  ;;  %v3186_v22 = vadd.f32 %v6891_v52, %v3165_v12  ;;  %v7365_v19 = vld [vmem:[#allocation35_spill] sm:$0xff] }
 0x399   : > { %v1263_v6 = vadd.f32 %v7355_v5, %v1242_v24  ;;  %v3143_v24 = vadd.f32 %v6887_v44, %v3122_v40  ;;  %v7368_v44 = vld [vmem:[#allocation38_spill] sm:$0xff] }
 0x39a   : > { %v6937_v30 = vpop.permute.xlu0 %3277  ;;  %v1241_v3 = vadd.f32 %v7357_v47, %v1220_v1  ;;  %v3207_v5 = vadd.f32 %v6898_v43, %v3186_v22  ;;  %v7367_v47 = vld [vmem:[#allocation75_spill] sm:$0xff] }
 0x39b   : > { %v1284_v55 = vadd.f32 %v7356_v37, %v1263_v6  ;;  %v3164_v37 = vadd.f32 %v6895_v15, %v3143_v24  ;;  %v7374_v22 = vld [vmem:[#allocation83_spill] sm:$0xff] }
 0x39c   : > { %v6941_v50 = vpop.permute.xlu1 %3321  ;;  %v1262_v28 = vadd.f32 %v7359_v29, %v1241_v3  ;;  %v3228_v63 = vadd.f32 %v6904_v9, %v3207_v5  ;;  %v7369_v29 = vld [vmem:[#allocation77_spill] sm:$0xff] }
 0x39d   : > { %v1305_v41 = vadd.f32 %v7358_v7, %v1284_v55  ;;  %v3185_v52 = vadd.f32 %v6901_v16, %v3164_v37 }
 0x39e   : > { %v6944_v62 = vpop.permute.xlu0 %3298  ;;  %v1283_v39 = vadd.f32 %v7361_v51, %v1262_v28  ;;  %v3249_v7 = vadd.f32 %v6912_v4, %v3228_v63  ;;  %v7371_v51 = vld [vmem:[#allocation78_spill] sm:$0xff] }
 0x39f   : > { %v1326_v60 = vadd.f32 %v7360_v56, %v1305_v41  ;;  %v3206_v27 = vadd.f32 %v6908_v34, %v3185_v52  ;;  %v7378_v63 = vld [vmem:[#allocation86_spill] sm:$0xff] }
 0x3a0   : > { %v6948_v61 = vpop.permute.xlu1 %3342  ;;  %v1304_v49 = vadd.f32 %v7363_v10, %v1283_v39  ;;  %v3263_v15 = vadd.f32 %v6920_v36, %v3249_v7 }
 0x3a1   : > { %v1347_v53 = vadd.f32 %v7362_v33, %v1326_v60  ;;  %v3227_v9 = vadd.f32 %v6915_v35, %v3206_v27  ;;  %v7370_v60 = vld [vmem:[#allocation79_spill] sm:$0xff] }
 0x3a2   : > { %v6951_v48 = vpop.permute.xlu0 %3319  ;;  %v1325_v2 = vadd.f32 %v7364_v58, %v1304_v49  ;;  %v3284_v16 = vadd.f32 %v6928_v8, %v3263_v15  ;;  %v7373_v49 = vld [vmem:[#allocation80_spill] sm:$0xff] }
 0x3a3   : > { %v1361_v1 = vadd.f32 %v7365_v19, %v1347_v53  ;;  %v3248_v4 = vadd.f32 %v6923_v42, %v3227_v9  ;;  %v7372_v53 = vld [vmem:[#allocation81_spill] sm:$0xff] }
 0x3a4   : > { %v6956_v45 = vpop.permute.xlu1 %3363  ;;  %v1346_v6 = vadd.f32 %v7366_v25, %v1325_v2  ;;  %v3305_v34 = vadd.f32 %v6935_v18, %v3284_v16  ;;  %v7375_v2 = vld [vmem:[#allocation82_spill] sm:$0xff]  ;;  %v7376_v42 = vld [vmem:[#allocation85_spill] sm:$0xff]  ;;  %v7377_v18 = vld [vmem:[#allocation84_spill] sm:$0xff] }
 0x3a5   : > { %v1382_v3 = vadd.f32 %v7367_v47, %v1361_v1  ;;  %v3262_v36 = vadd.f32 %v6930_v23, %v3248_v4 }
 0x3a6   : > { %v6959_v17 = vpop.permute.xlu0 %3340  ;;  %v1360_v41 = vadd.f32 %v7368_v44, %v1346_v6  ;;  %v3326_v58 = vadd.f32 %v6941_v50, %v3305_v34  ;;  %v7385_v34 = vld [vmem:[#allocation90_spill] sm:$0xff] }
 0x3a7   : > { %v1403_v28 = vadd.f32 %v7369_v29, %v1382_v3  ;;  %v3283_v24 = vadd.f32 %v6937_v30, %v3262_v36  ;;  %v7379_v3 = vld [vmem:[#allocation37_spill] sm:$0xff] }
 0x3a8   : > { %v6963_v14 = vpop.permute.xlu1 %3384  ;;  %v1381_v39 = vadd.f32 %v7371_v51, %v1360_v41  ;;  %v3347_v5 = vadd.f32 %v6948_v61, %v3326_v58  ;;  %v7380_v41 = vld [vmem:[#allocation88_spill] sm:$0xff] }
 0x3a9   : > { %v1424_v32 = vadd.f32 %v7370_v60, %v1403_v28  ;;  %v3304_v37 = vadd.f32 %v6944_v62, %v3283_v24  ;;  %v7382_v60 = vld [vmem:[#allocation40_spill] sm:$0xff] }
 0x3aa   : > { %v6966_v0 = vpop.permute.xlu0 %3361  ;;  %v1402_v40 = vadd.f32 %v7373_v49, %v1381_v39  ;;  %v3368_v23 = vadd.f32 %v6956_v45, %v3347_v5  ;;  %v7381_v45 = vld [vmem:[#allocation87_spill] sm:$0xff]  ;;  %v7390_v5 = vld [vmem:[#allocation97_spill] sm:$0xff] }
 0x3ab   : > { %v1445_v12 = vadd.f32 %v7372_v53, %v1424_v32  ;;  %v3325_v50 = vadd.f32 %v6951_v48, %v3304_v37 }
 0x3ac   : > { %v6969_v31 = vpop.permute.xlu1 %3398  ;;  %v1423_v8 = vadd.f32 %v7375_v2, %v1402_v40  ;;  %v3389_v30 = vadd.f32 %v6963_v14, %v3368_v23  ;;  %v7383_v14 = vld [vmem:[#allocation89_spill] sm:$0xff]  ;;  %v7388_v2 = vld [vmem:[#allocation95_spill] sm:$0xff] }
 0x3ad   : > { %v1466_v35 = vadd.f32 %v7374_v22, %v1445_v12  ;;  %v3346_v61 = vadd.f32 %v6959_v17, %v3325_v50  ;;  %v7386_v40 = vld [vmem:[#allocation93_spill] sm:$0xff] }
 0x3ae   : > { %v6972_v20 = vpop.permute.xlu0 %3382  ;;  %v1444_v6 = vadd.f32 %v7377_v18, %v1423_v8  ;;  %v3403_v29 = vadd.f32 %v6969_v31, %v3389_v30  ;;  %v7384_v31 = vld [vmem:[#allocation91_spill] sm:$0xff] }
 0x3af   : > { %v1487_v1 = vadd.f32 %v7376_v42, %v1466_v35  ;;  %v3367_v62 = vadd.f32 %v6966_v0, %v3346_v61  ;;  %v7389_v42 = vld [vmem:[#allocation94_spill] sm:$0xff]  ;;  %v7395_v61 = vld [vmem:[#allocation100_spill] sm:$0xff] }
 0x3b0   : > { %v6976_v57 = vpop.permute.xlu1 %3419  ;;  %v1465_v52 = vadd.f32 %v7378_v63, %v1444_v6  ;;  %v7392_v63 = vld [vmem:[#allocation99_spill] sm:$0xff] }
 0x3b1   : > { %v1501_v7 = vadd.f32 %v7379_v3, %v1487_v1  ;;  %v3424_v9 = vadd.f32 %v6976_v57, %v3403_v29  ;;  %v3388_v16 = vadd.f32 %v6972_v20, %v3367_v62  ;;  %v7387_v20 = vld [vmem:[#allocation92_spill] sm:$0xff]  ;;  %v7393_v3 = vld [vmem:[#allocation98_spill] sm:$0xff] }
 0x3b2   : > { %v6979_v59 = vpop.permute.xlu0 %3396  ;;  %v1486_v27 = vadd.f32 %v7380_v41, %v1465_v52 }
 0x3b3   : > { %v1522_v15 = vadd.f32 %v7381_v45, %v1501_v7  ;;  %v3402_v17 = vadd.f32 %v6979_v59, %v3388_v16 }
 0x3b4   : > { %v6986_v11 = vpop.permute.xlu1 %3440  ;;  %v1500_v32 = vadd.f32 %v7382_v60, %v1486_v27 }
 0x3b5   : > { %v1543_v51 = vadd.f32 %v7383_v14, %v1522_v15  ;;  %v3445_v39 = vadd.f32 %v6986_v11, %v3424_v9  ;;  %v7397_v9 = vld [vmem:[#allocation102_spill] sm:$0xff]  ;;  %v7399_v14 = vld [vmem:[#allocation104_spill] sm:$0xff] }
 0x3b6   : > { %v6990_v21 = vpop.permute.xlu0 %3417  ;;  %v1521_v49 = vadd.f32 %v7385_v34, %v1500_v32  ;;  %v7398_v32 = vld [vmem:[#allocation105_spill] sm:$0xff]  ;;  %v7401_v34 = vld [vmem:[#allocation106_spill] sm:$0xff] }
 0x3b7   : > { %v1564_v53 = vadd.f32 %v7384_v31, %v1543_v51  ;;  %v3423_v57 = vadd.f32 %v6990_v21, %v3402_v17  ;;  %v7391_v21 = vld [vmem:[#allocation96_spill] sm:$0xff]  ;;  %v7400_v17 = vld [vmem:[#allocation107_spill] sm:$0xff] }
 0x3b8   : > { %v6998_v54 = vpop.permute.xlu1 %3461  ;;  %v1542_v35 = vadd.f32 %v7387_v20, %v1521_v49 }
 0x3b9   : > { %v3466_v0 = vadd.f32 %v6998_v54, %v3445_v39  ;;  %v1585_v36 = vadd.f32 %v7386_v40, %v1564_v53 }
 0x3ba   : > { %v7001_v26 = vpop.permute.xlu0 %3438  ;;  %v1563_v1 = vadd.f32 %v7389_v42, %v1542_v35  ;;  %v3673_v35 = vstv %s7068_s22 }
 0x3bb   : > { %v3444_v58 = vadd.f32 %v7001_v26, %v3423_v57  ;;  %v1606_v59 = vadd.f32 %v7388_v2, %v1585_v36  ;;  %v7402_v57 = vld [vmem:[#allocation109_spill] sm:$0xff] }
 0x3bc   : > { %v3483_v55 = vpop.permute.xlu1 %3482  ;;  %v1584_v37 = vadd.f32 %v7391_v21, %v1563_v1 }
 0x3bd   : > { %v3487_v22 = vadd.f32 %v3483_v55, %v3466_v0  ;;  %v1627_v18 = vadd.f32 %v7390_v5, %v1606_v59  ;;  %v7406_v5 = vld [vmem:[#allocation112_spill] sm:$0xff] }
 0x3be   : > { %v7010_v38 = vpop.permute.xlu0 %3459  ;;  %v1605_v7 = vadd.f32 %v7393_v3, %v1584_v37 }
 0x3bf   : > { %v3465_v54 = vadd.f32 %v7010_v38, %v3444_v58  ;;  %v1641_v52 = vadd.f32 %v7392_v63, %v1627_v18 }
 0x3c0   : > { %v3504_v43 = vpop.permute.xlu1 %3503  ;;  %v1626_v29 = vadd.f32 %v7395_v61, %v1605_v7 }
 0x3c1   : > { %v3508_v8 = vadd.f32 %v3504_v43, %v3487_v22  ;;  %v7394_v43 = vld [vmem:[#allocation101_spill] sm:$0xff]  ;;  %v7403_v22 = vld [vmem:[#allocation108_spill] sm:$0xff] }
 0x3c2   : > { %v3481_v56 = vpop.permute.xlu0 %3480  ;;  %v1662_v41 = vadd.f32 %v7394_v43, %v1641_v52  ;;  %v1640_v60 = vadd.f32 %v7397_v9, %v1626_v29  ;;  %v4269_v9 = vld [vmem:[%s4969_s27 + $0x38] sm:$0xff] }
 0x3c3   : > { %v3486_v23 = vadd.f32 %v3481_v56, %v3465_v54 }
 0x3c4   : > { %v3525_v33 = vpop.permute.xlu1 %3524  ;;  %v1661_v51 = vadd.f32 %v7399_v14, %v1640_v60 }
 0x3c5   : > { %v3529_v6 = vadd.f32 %v3525_v33, %v3508_v8  ;;  %v7396_v33 = vld [vmem:[#allocation103_spill] sm:$0xff] }
 0x3c6   : > { %v3502_v10 = vpop.permute.xlu0 %3501  ;;  %v1683_v45 = vadd.f32 %v7396_v33, %v1662_v41  ;;  %v4267_v33 = vld [vmem:[%s4969_s27 + $0x18] sm:$0xff] }
 0x3c7   : > { %v3507_v30 = vadd.f32 %v3502_v10, %v3486_v23 }
 0x3c8   : > { %v3539_v19 = vpop.permute.xlu1 %3538  ;;  %v1704_v16 = vadd.f32 %v7398_v32, %v1683_v45  ;;  %v4270_v32 = vld [vmem:[%s4969_s27] sm:$0xff] }
 0x3c9   : > { %v3543_v50 = vadd.f32 %v3539_v19, %v3529_v6 }
 0x3ca   : > { %v3523_v25 = vpop.permute.xlu0 %3522 }
 0x3cb   : > { %v3528_v38 = vadd.f32 %v3523_v25, %v3507_v30  ;;  %v1725_v25 = vadd.f32 %v7400_v17, %v1704_v16 }
 0x3cc   : > { %v3560_v47 = vpop.permute.xlu1 %3559 }
 0x3cd   : > { %v3564_v27 = vadd.f32 %v3560_v47, %v3543_v50  ;;  %v1746_v40 = vadd.f32 %v7402_v57, %v1725_v25 }
 0x3ce   : > { %v3537_v44 = vpop.permute.xlu0 %3536 }
 0x3cf   : > { %v3542_v19 = vadd.f32 %v3537_v44, %v3528_v38  ;;  %v4266_v38 = vld [vmem:[%s4969_s27 + $0x8] sm:$0xff] }
 0x3d0   : > { %v3581_v28 = vpop.permute.xlu1 %3580 }
 0x3d1   : > { %v3585_v56 = vadd.f32 %v3581_v28, %v3564_v27  ;;  %v1682_v28 = vadd.f32 %v7401_v34, %v1661_v51  ;;  %v4272_v51 = vld [vmem:[%s4969_s27 + $0x20] sm:$0xff] }
 0x3d2   : > { %v3558_v48 = vpop.permute.xlu0 %3557 }
 0x3d3   : > { %v3563_v47 = vadd.f32 %v3558_v48, %v3542_v19  ;;  %v1703_v20 = vadd.f32 %v7403_v22, %v1682_v28  ;;  %v7404_v48 = vld [vmem:[#allocation111_spill] sm:$0xff] }
 0x3d4   : > { %v3602_v4 = vpop.permute.xlu1 %3601  ;;  %v1767_v2 = vadd.f32 %v7404_v48, %v1746_v40 }
 0x3d5   : > { %v3606_v10 = vadd.f32 %v3602_v4, %v3585_v56  ;;  %v4268_v56 = vld [vmem:[%s4969_s27 + $0x28] sm:$0xff] }
 0x3d6   : > { %v3579_v12 = vpop.permute.xlu0 %3578 }
 0x3d7   : > { %v3584_v49 = vadd.f32 %v3579_v12, %v3563_v47 }
 0x3d8   : > { %v3623_v11 = vpop.permute.xlu1 %3622 }
 0x3d9   : > { %v3627_v31 = vadd.f32 %v3623_v11, %v3606_v10  ;;  %v7405_v11 = vld [vmem:[#allocation110_spill] sm:$0xff]  ;;  %v4271_v10 = vld [vmem:[%s4969_s27 + $0x10] sm:$0xff] }
 0x3da   : > { %v3600_v24 = vpop.permute.xlu0 %3599  ;;  %v1724_v42 = vadd.f32 %v7405_v11, %v1703_v20 }
 0x3db   : > { %v3605_v4 = vadd.f32 %v3600_v24, %v3584_v49  ;;  %v7407_v24 = vld [vmem:[#allocation113_spill] sm:$0xff] }
 0x3dc   : > { %v2693_v55 = vpop.permute.xlu1 %2692  ;;  %v1745_v18 = vadd.f32 %v7406_v5, %v1724_v42 }
 0x3dd   : > { %v2697_v53 = vadd.f32 %v2693_v55, %v6661_v46 }
 0x3de   : > { %v3621_v26 = vpop.permute.xlu0 %3620  ;;  %v1766_v55 = vadd.f32 %v7407_v24, %v1745_v18 }
 0x3df   : > { %v3626_v46 = vadd.f32 %v3621_v26, %v3605_v4 }
 0x3e0   : > { %v3644_v62 = vpop.permute.xlu1 %3643 }
 0x3e1   : > { %v3648_v44 = vadd.f32 %v3644_v62, %v3627_v31 }
 0x3e2   : > { %v2691_v15 = vpop.permute.xlu0 %2690 }
 0x3e3   : > { %v2696_v1 = vadd.f32 %v2691_v15, %v6683_v13 }
 0x3e4   : > { %v2714_v39 = vpop.permute.xlu1 %2713 }
 0x3e5   : > { %v2718_v36 = vadd.f32 %v2714_v39, %v2697_v53  ;;  %v4273_v39 = vld [vmem:[%s4969_s27 + $0x30] sm:$0xff] }
 0x3e6   : > { %v3642_v0 = vpop.permute.xlu0 %3641 }
 0x3e7   : > { %v3671_v54 = vadd.f32 %v2718_v36, %v1767_v2  ;;  %v3647_v6 = vadd.f32 %v3642_v0, %v3626_v46 }
 0x3e8   : > { %v3665_v58 = vpop.permute.xlu1 %3664 }
 0x3e9   : > { %v3669_v59 = vadd.f32 %v3665_v58, %v3648_v44 }
 0x3ea   : > { %v2712_v8 = vpop.permute.xlu0 %2711 }
 0x3eb   : > { %v3675_v12 = vadd.f32 %v3673_v35, %v3669_v59  ;;  %v2717_v21 = vadd.f32 %v2712_v8, %v2696_v1 }
 0x3ed   : > { %v3677_v37 = vadd.f32 %v3675_v12, %v3671_v54  ;;  %v3670_v50 = vadd.f32 %v2717_v21, %v1766_v55 }
 0x3ee   : > { %v3663_v23 = vpop.permute.xlu0 %3662 }
 0x3ef   : > { %v3668_v63 = vadd.f32 %v3663_v23, %v3647_v6  ;;  %v3679_v52 = vsub.f32 0.0, %v3677_v37 }
 0x3f1   : > { %v3674_v3 = vadd.f32 %v3673_v35, %v3668_v63  ;;  %v3682_v7 = vmul.f32 1.442695, %v3679_v52 }
 0x3f3   : > { %v3676_v26 = vadd.f32 %v3674_v3, %v3670_v50  ;;  %4246 = vpow2.f32 %v3682_v7 }
 0x3f5   : > { %v3678_v13 = vsub.f32 0.0, %v3676_v26 }
 0x3f7   : > { %v3680_v30 = vmul.f32 1.442695, %v3678_v13 }
 0x3f9   : > { %4248 = vpow2.f32 %v3680_v30 }
 0x3fd   : > { %v4247_v43 = vpop.eup %4246 }
 0x3fe   : > { %v3685_v41 = vadd.f32 1.0, %v4247_v43 }
 0x400   : > { %4250 = vrcp.f32 %v3685_v41 }
 0x403   : > { %v4249_v27 = vpop.eup %4248 }
 0x404   : > { %v3684_v61 = vadd.f32 1.0, %v4249_v27 }
 0x406   : > { %4252 = vrcp.f32 %v3684_v61 }
 0x40a   : > { %v4251_v29 = vpop.eup %4250 }
 0x40b   : > { %v3691_v62 = vmul.f32 %v4266_v38, %v4251_v29  ;;  %v3693_v45 = vmul.f32 %v4267_v33, %v4251_v29  ;;  %v3695_v15 = vmul.f32 %v4268_v56, %v4251_v29  ;;  %v3697_v60 = vmul.f32 %v4269_v9, %v4251_v29 }
 0x40d   : > { %3699 = vst.msk [vmem:[%s610_s26 + $0x8] sm:$0xff] %vm642_vm0, %v3691_v62  ;;  %3701 = vst.msk [vmem:[%s610_s26 + $0x18] sm:$0xff] %vm642_vm0, %v3693_v45 }
 0x40e   : > { %3703 = vst.msk [vmem:[%s610_s26 + $0x28] sm:$0xff] %vm642_vm0, %v3695_v15  ;;  %3705 = vst.msk [vmem:[%s610_s26 + $0x38] sm:$0xff] %vm642_vm0, %v3697_v60 }
 0x410   : > { %v4253_v19 = vpop.eup %4252 }
 0x411   : > { %v3690_v16 = vmul.f32 %v4270_v32, %v4253_v19  ;;  %v3692_v14 = vmul.f32 %v4271_v10, %v4253_v19  ;;  %v3694_v47 = vmul.f32 %v4272_v51, %v4253_v19  ;;  %v3696_v17 = vmul.f32 %v4273_v39, %v4253_v19 }
 0x413   : > { %3698 = vst.msk [vmem:[%s610_s26] sm:$0xff] %vm642_vm0, %v3690_v16  ;;  %3700 = vst.msk [vmem:[%s610_s26 + $0x10] sm:$0xff] %vm642_vm0, %v3692_v14 }
 0x414   : > { %3702 = vst.msk [vmem:[%s610_s26 + $0x20] sm:$0xff] %vm642_vm0, %v3694_v47  ;;  %3704 = vst.msk [vmem:[%s610_s26 + $0x30] sm:$0xff] %vm642_vm0, %v3696_v17 }
 0x415   : > { %4482 = shalt.err (!%p4479_p1)
}
 0x416   : > { %s4483_s27 = scalar_lea.hbm %s7099_s8, 1024  ;;  %s4487_s6 = scalar_lea.hbm %s7409_s14, 2048 }
 0x417   : > { %p4484_p2 = scmp.ne.s32.totalorder %s7099_s8, %s4483_s27  ;;  %p4488_p9 = scmp.lt.u32.totalorder %s7099_s8, %s7409_s14 }
 0x418   : > { %p4489_p11 = scmp.lt.u32.totalorder %s4487_s6, %s4483_s27  ;;  %p4491_p12 = scmp.lt.u32.totalorder %s4483_s27, %s7099_s8 }
 0x419   : > { %p4485_p5 = pnand %p4484_p2, %p7410_p4 }
 0x41a   : > { %p4490_p6 = por %p4489_p11, %p4488_p9 }
 0x41b   : > { %p4486_p10 = pneg %p4485_p5 }
 0x41c   : > { %p4492_p8 = por %p4491_p12, %p4490_p6 }
 0x41e   : > { %p4493_p3 = pnand %p4492_p8, %p4486_p10 }
 0x420   : > { %4496 = shalt.err (!%p4493_p3)
}
 0x421   : > { %s4588_s16 = smov 128   ;;  %s4589_s7 = smov 8  }
 0x422   : > { %4151 = dma.vmem_to_hbm [thread:$0]  (%p7410_p4), %s7101_s1, 1024, %s7099_s8, %s3707_s11, %s4588_s16, %s4588_s16, %s4589_s7  }
 0x423 PF: > { %s7411_s22 = sld [smem:[#allocation27_spill]]  ;;  %s3737_s17 = sand.u32 1, %s4547_s29  }
 0x424   : > { %p7412_p13 = scmp.ne.s32.totalorder %s7205_s12, 0  ;;  %s3738_s23 = scalar_lea.sflag [#allocation6], %s3737_s17 }
 0x429   : > { %p7413_p0 = scmp.ge.s32.totalorder %s7411_s22, 2 }
 0x42b   : > { %p4177_p7 = pnand %p7413_p0, %p7412_p13 }
 0x42d   : > { %4542 = dma.done.wait (!%p4177_p7), %s3738_s23, 1024  }
 0x42e   : > { %4544 = vsyncadd (!%p4177_p7), %s3738_s23, 4294966272  ;;  %s35_s11 = sadd.s32 1, %s7411_s22   ;;  %s7414_s26 = sld [smem:[#allocation24_spill]] }
 0x42f   : > { %p32_p1 = scmp.ge.s32.totalorder %s35_s11, 4   ;;  %s7415_s9 = sld [smem:[#allocation29_spill]] }
 0x430   : > { %s7416_s10 = sld [smem:[#allocation26_spill]]  ;;  %s7417_s7 = sld [smem:[#allocation28_spill]] }
 0x431   : > { %s7418_s29 = smov %s4551_s30  ;;  %34 = sbr.rel (!%p32_p1) target bundleno = 19 (0x13), region = 165 }
 0x434   : > { %s7419_s30 = smov %s7414_s26 }
 0x438   :  { %3743 = vsyncpa [#allocation5], 1 }
 0x439   :  { %3745 = vsyncpa [#allocation5 + $0x1], 1 }
 0x43a   :  { %3746 = vsyncpa [#allocation9], 1 }
 0x43b   :  { %3748 = vsyncpa [#allocation9 + $0x1], 1 }
 0x43c   :  { %3749 = vsyncpa [#allocation12], 1 }
 0x43d   :  { %3751 = vsyncpa [#allocation12 + $0x1], 1 }
 0x43e   :  { %3752 = vsyncpa [#allocation15], 1 }
 0x43f   :  { %3754 = vsyncpa [#allocation15 + $0x1], 1 }
 0x440   :  { %3755 = vsyncpa [#allocation6], 1 }
 0x441   :  { %3757 = vsyncpa [#allocation6 + $0x1], 1 }
 0x442   :  { %3758 = vsyncpa [#allocation7], 1 }
 0x443   :  { %3760 = vsyncpa [#allocation7 + $0x1], 1 }

</bundles_post_ra>
